<compile_context>
chip_gen: v7x
topology: tpu7x:2x2x1
jax: 0.10.0
libtpu: 0.0.40
codegen_flags: <defaults>
</compile_context>

<pallas_src>
import jax
import jax.numpy as jnp
import numpy as np
from jax.experimental import pallas as pl
from jax.experimental.pallas import tpu as pltpu

# Small, module-consistent shapes (in_features must be divisible by groups=16).
B = 2            # batch
F = 64           # in_features
T = 128          # sequence length
K = 25           # position_encoder (conv kernel size)
PAD = K // 2     # 12 -> "same" output length
G = 16           # conv groups
TD = 3 * F       # transformer_dim
EPS = 1e-5       # LayerNorm eps (PyTorch default)
Tp = T + 2 * PAD # padded time length


def _encaug_kernel(xpad_ref, w_ref, bconv_ref, w1f_ref, b1f_ref, out_ref):
    # xpad_ref: (1, F, Tp)   zero-padded input for THIS batch (per-batch padding,
    #                        so conv taps never leak across the batch boundary)
    # w_ref:    (K, F, F)    densified grouped-conv weight, one (F,F) block per tap
    # bconv_ref:(F, 1)       conv bias
    # w1f_ref:  (TD, F)      1x1 conv weight with LayerNorm gamma folded in
    # b1f_ref:  (TD, 1)      1x1 conv bias with LayerNorm beta folded in
    # out_ref:  (1, TD, T)   final-layout output block
    xpad = xpad_ref[0]                                        # (F, Tp), VMEM-resident

    # --- relative_position: grouped Conv1d ("same") as K accumulated per-tap
    #     MXU matmuls over static lane-shifted views, then exact GELU ---
    pos = jnp.dot(w_ref[0], xpad[:, 0:T], preferred_element_type=jnp.float32)
    for k in range(1, K):                                     # unrolled at trace time
        pos = pos + jnp.dot(w_ref[k], xpad[:, k:k + T],
                            preferred_element_type=jnp.float32)
    pos = pos + bconv_ref[...]                                # (F, T), bias bcast over lanes
    pos = 0.5 * pos * (1.0 + jax.lax.erf(pos * jnp.float32(0.7071067811865476)))

    # --- residual add (the unpadded x is the center slice of the same buffer) ---
    y = xpad[:, PAD:PAD + T] + pos                            # (F, T)

    # --- input_conditioning: LayerNorm over features (affine folded into w1f/b1f),
    #     Dropout is identity in eval, then 1x1 Conv1d(F -> 3F) as an MXU matmul ---
    mean = jnp.mean(y, axis=0, keepdims=True)                 # (1, T)
    var = jnp.mean((y - mean) ** 2, axis=0, keepdims=True)
    yn = (y - mean) * jax.lax.rsqrt(var + EPS)
    out = jnp.dot(w1f_ref[...], yn, preferred_element_type=jnp.float32) + b1f_ref[...]
    out_ref[0] = out.astype(out_ref.dtype)                    # (TD, T), lane-dense store


def fold_params(params):
    """One-time (init-time) weight folding; keeps the per-call path DMA-only."""
    return dict(
        w_dense=params["w_dense"],                                   # (K, F, F)
        b_conv2=params["b_conv"][:, None],                           # (F, 1)
        w1f=params["w1"] * params["ln_w"][None, :],                  # (TD, F)
        b1f=(params["b1"] + params["w1"] @ params["ln_b"])[:, None], # (TD, 1)
        mask_replacement=params["mask_replacement"],                 # (F,)
    )


def encoding_augment(x, folded, mask_t=None, mask_c=None):
    """EncodingAugment.forward (eval mode). x: (B, F, T) float32 -> (B, 3F, T)."""
    # TODO(synk): training-time random mask generation (_make_mask) not implemented;
    # explicit masks are applied here in glue with identical semantics.
    if mask_t is not None:   # x.transpose(2,1)[mask_t] = mask_replacement
        x = jnp.where(mask_t[:, None, :], folded["mask_replacement"][None, :, None], x)
    if mask_c is not None:   # x[mask_c] = 0
        x = jnp.where(mask_c[:, :, None], jnp.float32(0.0), x)

    # Only zero padding happens outside the kernel (≈76 KiB, one tiny HLO).
    xpad = jnp.pad(x, ((0, 0), (0, 0), (PAD, PAD)))                   # (B, F, Tp)

    kernel = pl.pallas_call(
        _encaug_kernel,
        out_shape=jax.ShapeDtypeStruct((B, TD, T), jnp.float32),
        grid_spec=pltpu.PrefetchScalarGridSpec(
            num_scalar_prefetch=0,
            grid=(B,),
            in_specs=[
                pl.BlockSpec((1, F, Tp), lambda b: (b, 0, 0)),        # per-batch input
                pl.BlockSpec((K, F, F), lambda b: (0, 0, 0)),         # weights: fetched once
                pl.BlockSpec((F, 1), lambda b: (0, 0)),
                pl.BlockSpec((TD, F), lambda b: (0, 0)),
                pl.BlockSpec((TD, 1), lambda b: (0, 0)),
            ],
            out_specs=pl.BlockSpec((1, TD, T), lambda b: (b, 0, 0)),
        ),
        compiler_params=pltpu.CompilerParams(
            dimension_semantics=("parallel",)),                       # v7x: one batch per TC
    )
    return kernel(xpad, folded["w_dense"], folded["b_conv2"], folded["w1f"], folded["b1f"])


def init_params(key):
    ks = jax.random.split(key, 5)
    cpg = F // G
    # Conv1d(F, F, K, groups=16) weight ~ N(0, 2/transformer_dim), bias = 0,
    # then weight_norm(dim=2): w = g * v / ||v||  (norm over dims (0,1) per tap).
    v = (2.0 / TD) * jax.random.normal(ks[0], (F, cpg, K), jnp.float32)
    norm = jnp.sqrt(jnp.sum(v * v, axis=(0, 1), keepdims=True))   # (1,1,K)
    g_wn = norm                      # PyTorch initializes g to ||v|| at wrap time
    w_conv = g_wn * v / norm         # (F, cpg, K)
    b_conv = jnp.zeros((F,), jnp.float32)

    # Densify grouped weight into a block-diagonal (K, F, F) matrix per tap (init-time only).
    w_dense = jnp.zeros((K, F, F), jnp.float32)
    for g in range(G):
        blk = jnp.transpose(w_conv[g * cpg:(g + 1) * cpg], (2, 0, 1))  # (K, cpg, cpg)
        w_dense = w_dense.at[:, g * cpg:(g + 1) * cpg, g * cpg:(g + 1) * cpg].set(blk)

    ln_w = 1.0 + 0.1 * jax.random.normal(ks[1], (F,), jnp.float32)
    ln_b = 0.1 * jax.random.normal(ks[2], (F,), jnp.float32)
    w1 = (1.0 / np.sqrt(F)) * jax.random.normal(ks[3], (TD, F), jnp.float32)  # 1x1 conv
    b1 = 0.1 * jax.random.normal(ks[4], (TD,), jnp.float32)
    mask_replacement = jnp.zeros((F,), jnp.float32)
    return dict(w_conv=w_conv, w_dense=w_dense, b_conv=b_conv, ln_w=ln_w, ln_b=ln_b,
                w1=w1, b1=b1, mask_replacement=mask_replacement)


def ref_forward(x, params):
    """Pure-JAX reference mirroring the PyTorch forward (eval mode)."""
    pos = jax.lax.conv_general_dilated(
        x, params["w_conv"], window_strides=(1,), padding=[(PAD, PAD)],
        dimension_numbers=("NCH", "OIH", "NCH"), feature_group_count=G)
    pos = pos + params["b_conv"][None, :, None]
    pos = 0.5 * pos * (1.0 + jax.lax.erf(pos / jnp.sqrt(2.0)))        # exact GELU
    y = x + pos
    yt = jnp.transpose(y, (0, 2, 1))                                  # (B, T, F)
    mean = yt.mean(-1, keepdims=True)
    var = ((yt - mean) ** 2).mean(-1, keepdims=True)
    yn = (yt - mean) / jnp.sqrt(var + EPS) * params["ln_w"] + params["ln_b"]
    yn = jnp.transpose(yn, (0, 2, 1))                                 # (B, F, T)
    return jnp.einsum("of,bft->bot", params["w1"], yn) + params["b1"][None, :, None]


if __name__ == "__main__":
    key = jax.random.PRNGKey(0)
    kx, kp = jax.random.split(key)
    x = jax.random.normal(kx, (B, F, T), jnp.float32)
    params = init_params(kp)
    folded = fold_params(params)            # weight folding done ONCE, outside the forward

    fwd = jax.jit(lambda xx: encoding_augment(xx, folded))
    out = jax.block_until_ready(fwd(x))

    assert out.shape == (B, TD, T) and out.dtype == jnp.float32
    ref = ref_forward(x, params)
    np.testing.assert_allclose(np.asarray(out), np.asarray(ref), rtol=2e-4, atol=2e-4)
    print("KERNEL_OK")
</pallas_src>

<mosaic_0001>
module attributes {stable_mosaic.version = 11 : i64} {
  func.func @_encaug_kernel(%arg0: i32, %arg1: memref<1x64x152xf32, #tpu.memory_space<vmem>>, %arg2: memref<25x64x64xf32, #tpu.memory_space<vmem>>, %arg3: memref<64x1xf32, #tpu.memory_space<vmem>>, %arg4: memref<192x64xf32, #tpu.memory_space<vmem>>, %arg5: memref<192x1xf32, #tpu.memory_space<vmem>>, %arg6: memref<1x192x128xf32, #tpu.memory_space<vmem>>) attributes {dimension_semantics = [#tpu.dimension_semantics<parallel>], iteration_bounds = array<i64: 2>, scalar_prefetch = 0 : i64, scratch_operands = 0 : i64, tpu.core_type = #tpu.core_type<tc>, window_params = [{transform_indices = @transform_0, window_bounds = array<i64: 1, 64, 152>}, {pipeline_mode = #tpu.pipeline_mode<synchronous>, transform_indices = @transform_1, window_bounds = array<i64: 25, 64, 64>}, {pipeline_mode = #tpu.pipeline_mode<synchronous>, transform_indices = @transform_2, window_bounds = array<i64: 64, 1>}, {pipeline_mode = #tpu.pipeline_mode<synchronous>, transform_indices = @transform_3, window_bounds = array<i64: 192, 64>}, {pipeline_mode = #tpu.pipeline_mode<synchronous>, transform_indices = @transform_4, window_bounds = array<i64: 192, 1>}, {transform_indices = @transform_5, window_bounds = array<i64: 1, 192, 128>}]} {
    %c0 = arith.constant 0 : index
    %c0_0 = arith.constant 0 : index
    %c0_1 = arith.constant 0 : index
    %0 = vector.load %arg1[%c0, %c0_0, %c0_1] : memref<1x64x152xf32, #tpu.memory_space<vmem>>, vector<1x64x152xf32>
    %1 = vector.shape_cast %0 : vector<1x64x152xf32> to vector<64x152xf32>
    %c0_2 = arith.constant 0 : index
    %c0_3 = arith.constant 0 : index
    %c0_4 = arith.constant 0 : index
    %2 = vector.load %arg2[%c0_2, %c0_3, %c0_4] : memref<25x64x64xf32, #tpu.memory_space<vmem>>, vector<1x64x64xf32>
    %3 = vector.shape_cast %2 : vector<1x64x64xf32> to vector<64x64xf32>
    %4 = vector.extract_strided_slice %1 {offsets = [0, 0], sizes = [64, 128], strides = [1, 1]} : vector<64x152xf32> to vector<64x128xf32>
    %cst = arith.constant dense<0.000000e+00> : vector<64x128xf32>
    %5 = tpu.matmul %3, %4, %cst {dimension_numbers = #tpu.dot_dimension_numbers<[1], [0], [0], [1], [0, 0, 1, 1], [], []>} : vector<64x64xf32>, vector<64x128xf32>, vector<64x128xf32> -> vector<64x128xf32>
    %c1 = arith.constant 1 : index
    %c0_5 = arith.constant 0 : index
    %c0_6 = arith.constant 0 : index
    %6 = vector.load %arg2[%c1, %c0_5, %c0_6] : memref<25x64x64xf32, #tpu.memory_space<vmem>>, vector<1x64x64xf32>
    %7 = vector.shape_cast %6 : vector<1x64x64xf32> to vector<64x64xf32>
    %8 = vector.extract_strided_slice %1 {offsets = [0, 1], sizes = [64, 128], strides = [1, 1]} : vector<64x152xf32> to vector<64x128xf32>
    %cst_7 = arith.constant dense<0.000000e+00> : vector<64x128xf32>
    %9 = tpu.matmul %7, %8, %cst_7 {dimension_numbers = #tpu.dot_dimension_numbers<[1], [0], [0], [1], [0, 0, 1, 1], [], []>} : vector<64x64xf32>, vector<64x128xf32>, vector<64x128xf32> -> vector<64x128xf32>
    %10 = arith.addf %5, %9 : vector<64x128xf32>
    %c2 = arith.constant 2 : index
    %c0_8 = arith.constant 0 : index
    %c0_9 = arith.constant 0 : index
    %11 = vector.load %arg2[%c2, %c0_8, %c0_9] : memref<25x64x64xf32, #tpu.memory_space<vmem>>, vector<1x64x64xf32>
    %12 = vector.shape_cast %11 : vector<1x64x64xf32> to vector<64x64xf32>
    %13 = vector.extract_strided_slice %1 {offsets = [0, 2], sizes = [64, 128], strides = [1, 1]} : vector<64x152xf32> to vector<64x128xf32>
    %cst_10 = arith.constant dense<0.000000e+00> : vector<64x128xf32>
    %14 = tpu.matmul %12, %13, %cst_10 {dimension_numbers = #tpu.dot_dimension_numbers<[1], [0], [0], [1], [0, 0, 1, 1], [], []>} : vector<64x64xf32>, vector<64x128xf32>, vector<64x128xf32> -> vector<64x128xf32>
    %15 = arith.addf %10, %14 : vector<64x128xf32>
    %c3 = arith.constant 3 : index
    %c0_11 = arith.constant 0 : index
    %c0_12 = arith.constant 0 : index
    %16 = vector.load %arg2[%c3, %c0_11, %c0_12] : memref<25x64x64xf32, #tpu.memory_space<vmem>>, vector<1x64x64xf32>
    %17 = vector.shape_cast %16 : vector<1x64x64xf32> to vector<64x64xf32>
    %18 = vector.extract_strided_slice %1 {offsets = [0, 3], sizes = [64, 128], strides = [1, 1]} : vector<64x152xf32> to vector<64x128xf32>
    %cst_13 = arith.constant dense<0.000000e+00> : vector<64x128xf32>
    %19 = tpu.matmul %17, %18, %cst_13 {dimension_numbers = #tpu.dot_dimension_numbers<[1], [0], [0], [1], [0, 0, 1, 1], [], []>} : vector<64x64xf32>, vector<64x128xf32>, vector<64x128xf32> -> vector<64x128xf32>
    %20 = arith.addf %15, %19 : vector<64x128xf32>
    %c4 = arith.constant 4 : index
    %c0_14 = arith.constant 0 : index
    %c0_15 = arith.constant 0 : index
    %21 = vector.load %arg2[%c4, %c0_14, %c0_15] : memref<25x64x64xf32, #tpu.memory_space<vmem>>, vector<1x64x64xf32>
    %22 = vector.shape_cast %21 : vector<1x64x64xf32> to vector<64x64xf32>
    %23 = vector.extract_strided_slice %1 {offsets = [0, 4], sizes = [64, 128], strides = [1, 1]} : vector<64x152xf32> to vector<64x128xf32>
    %cst_16 = arith.constant dense<0.000000e+00> : vector<64x128xf32>
    %24 = tpu.matmul %22, %23, %cst_16 {dimension_numbers = #tpu.dot_dimension_numbers<[1], [0], [0], [1], [0, 0, 1, 1], [], []>} : vector<64x64xf32>, vector<64x128xf32>, vector<64x128xf32> -> vector<64x128xf32>
    %25 = arith.addf %20, %24 : vector<64x128xf32>
    %c5 = arith.constant 5 : index
    %c0_17 = arith.constant 0 : index
    %c0_18 = arith.constant 0 : index
    %26 = vector.load %arg2[%c5, %c0_17, %c0_18] : memref<25x64x64xf32, #tpu.memory_space<vmem>>, vector<1x64x64xf32>
    %27 = vector.shape_cast %26 : vector<1x64x64xf32> to vector<64x64xf32>
    %28 = vector.extract_strided_slice %1 {offsets = [0, 5], sizes = [64, 128], strides = [1, 1]} : vector<64x152xf32> to vector<64x128xf32>
    %cst_19 = arith.constant dense<0.000000e+00> : vector<64x128xf32>
    %29 = tpu.matmul %27, %28, %cst_19 {dimension_numbers = #tpu.dot_dimension_numbers<[1], [0], [0], [1], [0, 0, 1, 1], [], []>} : vector<64x64xf32>, vector<64x128xf32>, vector<64x128xf32> -> vector<64x128xf32>
    %30 = arith.addf %25, %29 : vector<64x128xf32>
    %c6 = arith.constant 6 : index
    %c0_20 = arith.constant 0 : index
    %c0_21 = arith.constant 0 : index
    %31 = vector.load %arg2[%c6, %c0_20, %c0_21] : memref<25x64x64xf32, #tpu.memory_space<vmem>>, vector<1x64x64xf32>
    %32 = vector.shape_cast %31 : vector<1x64x64xf32> to vector<64x64xf32>
    %33 = vector.extract_strided_slice %1 {offsets = [0, 6], sizes = [64, 128], strides = [1, 1]} : vector<64x152xf32> to vector<64x128xf32>
    %cst_22 = arith.constant dense<0.000000e+00> : vector<64x128xf32>
    %34 = tpu.matmul %32, %33, %cst_22 {dimension_numbers = #tpu.dot_dimension_numbers<[1], [0], [0], [1], [0, 0, 1, 1], [], []>} : vector<64x64xf32>, vector<64x128xf32>, vector<64x128xf32> -> vector<64x128xf32>
    %35 = arith.addf %30, %34 : vector<64x128xf32>
    %c7 = arith.constant 7 : index
    %c0_23 = arith.constant 0 : index
    %c0_24 = arith.constant 0 : index
    %36 = vector.load %arg2[%c7, %c0_23, %c0_24] : memref<25x64x64xf32, #tpu.memory_space<vmem>>, vector<1x64x64xf32>
    %37 = vector.shape_cast %36 : vector<1x64x64xf32> to vector<64x64xf32>
    %38 = vector.extract_strided_slice %1 {offsets = [0, 7], sizes = [64, 128], strides = [1, 1]} : vector<64x152xf32> to vector<64x128xf32>
    %cst_25 = arith.constant dense<0.000000e+00> : vector<64x128xf32>
    %39 = tpu.matmul %37, %38, %cst_25 {dimension_numbers = #tpu.dot_dimension_numbers<[1], [0], [0], [1], [0, 0, 1, 1], [], []>} : vector<64x64xf32>, vector<64x128xf32>, vector<64x128xf32> -> vector<64x128xf32>
    %40 = arith.addf %35, %39 : vector<64x128xf32>
    %c8 = arith.constant 8 : index
    %c0_26 = arith.constant 0 : index
    %c0_27 = arith.constant 0 : index
    %41 = vector.load %arg2[%c8, %c0_26, %c0_27] : memref<25x64x64xf32, #tpu.memory_space<vmem>>, vector<1x64x64xf32>
    %42 = vector.shape_cast %41 : vector<1x64x64xf32> to vector<64x64xf32>
    %43 = vector.extract_strided_slice %1 {offsets = [0, 8], sizes = [64, 128], strides = [1, 1]} : vector<64x152xf32> to vector<64x128xf32>
    %cst_28 = arith.constant dense<0.000000e+00> : vector<64x128xf32>
    %44 = tpu.matmul %42, %43, %cst_28 {dimension_numbers = #tpu.dot_dimension_numbers<[1], [0], [0], [1], [0, 0, 1, 1], [], []>} : vector<64x64xf32>, vector<64x128xf32>, vector<64x128xf32> -> vector<64x128xf32>
    %45 = arith.addf %40, %44 : vector<64x128xf32>
    %c9 = arith.constant 9 : index
    %c0_29 = arith.constant 0 : index
    %c0_30 = arith.constant 0 : index
    %46 = vector.load %arg2[%c9, %c0_29, %c0_30] : memref<25x64x64xf32, #tpu.memory_space<vmem>>, vector<1x64x64xf32>
    %47 = vector.shape_cast %46 : vector<1x64x64xf32> to vector<64x64xf32>
    %48 = vector.extract_strided_slice %1 {offsets = [0, 9], sizes = [64, 128], strides = [1, 1]} : vector<64x152xf32> to vector<64x128xf32>
    %cst_31 = arith.constant dense<0.000000e+00> : vector<64x128xf32>
    %49 = tpu.matmul %47, %48, %cst_31 {dimension_numbers = #tpu.dot_dimension_numbers<[1], [0], [0], [1], [0, 0, 1, 1], [], []>} : vector<64x64xf32>, vector<64x128xf32>, vector<64x128xf32> -> vector<64x128xf32>
    %50 = arith.addf %45, %49 : vector<64x128xf32>
    %c10 = arith.constant 10 : index
    %c0_32 = arith.constant 0 : index
    %c0_33 = arith.constant 0 : index
    %51 = vector.load %arg2[%c10, %c0_32, %c0_33] : memref<25x64x64xf32, #tpu.memory_space<vmem>>, vector<1x64x64xf32>
    %52 = vector.shape_cast %51 : vector<1x64x64xf32> to vector<64x64xf32>
    %53 = vector.extract_strided_slice %1 {offsets = [0, 10], sizes = [64, 128], strides = [1, 1]} : vector<64x152xf32> to vector<64x128xf32>
    %cst_34 = arith.constant dense<0.000000e+00> : vector<64x128xf32>
    %54 = tpu.matmul %52, %53, %cst_34 {dimension_numbers = #tpu.dot_dimension_numbers<[1], [0], [0], [1], [0, 0, 1, 1], [], []>} : vector<64x64xf32>, vector<64x128xf32>, vector<64x128xf32> -> vector<64x128xf32>
    %55 = arith.addf %50, %54 : vector<64x128xf32>
    %c11 = arith.constant 11 : index
    %c0_35 = arith.constant 0 : index
    %c0_36 = arith.constant 0 : index
    %56 = vector.load %arg2[%c11, %c0_35, %c0_36] : memref<25x64x64xf32, #tpu.memory_space<vmem>>, vector<1x64x64xf32>
    %57 = vector.shape_cast %56 : vector<1x64x64xf32> to vector<64x64xf32>
    %58 = vector.extract_strided_slice %1 {offsets = [0, 11], sizes = [64, 128], strides = [1, 1]} : vector<64x152xf32> to vector<64x128xf32>
    %cst_37 = arith.constant dense<0.000000e+00> : vector<64x128xf32>
    %59 = tpu.matmul %57, %58, %cst_37 {dimension_numbers = #tpu.dot_dimension_numbers<[1], [0], [0], [1], [0, 0, 1, 1], [], []>} : vector<64x64xf32>, vector<64x128xf32>, vector<64x128xf32> -> vector<64x128xf32>
    %60 = arith.addf %55, %59 : vector<64x128xf32>
    %c12 = arith.constant 12 : index
    %c0_38 = arith.constant 0 : index
    %c0_39 = arith.constant 0 : index
    %61 = vector.load %arg2[%c12, %c0_38, %c0_39] : memref<25x64x64xf32, #tpu.memory_space<vmem>>, vector<1x64x64xf32>
    %62 = vector.shape_cast %61 : vector<1x64x64xf32> to vector<64x64xf32>
    %63 = vector.extract_strided_slice %1 {offsets = [0, 12], sizes = [64, 128], strides = [1, 1]} : vector<64x152xf32> to vector<64x128xf32>
    %cst_40 = arith.constant dense<0.000000e+00> : vector<64x128xf32>
    %64 = tpu.matmul %62, %63, %cst_40 {dimension_numbers = #tpu.dot_dimension_numbers<[1], [0], [0], [1], [0, 0, 1, 1], [], []>} : vector<64x64xf32>, vector<64x128xf32>, vector<64x128xf32> -> vector<64x128xf32>
    %65 = arith.addf %60, %64 : vector<64x128xf32>
    %c13 = arith.constant 13 : index
    %c0_41 = arith.constant 0 : index
    %c0_42 = arith.constant 0 : index
    %66 = vector.load %arg2[%c13, %c0_41, %c0_42] : memref<25x64x64xf32, #tpu.memory_space<vmem>>, vector<1x64x64xf32>
    %67 = vector.shape_cast %66 : vector<1x64x64xf32> to vector<64x64xf32>
    %68 = vector.extract_strided_slice %1 {offsets = [0, 13], sizes = [64, 128], strides = [1, 1]} : vector<64x152xf32> to vector<64x128xf32>
    %cst_43 = arith.constant dense<0.000000e+00> : vector<64x128xf32>
    %69 = tpu.matmul %67, %68, %cst_43 {dimension_numbers = #tpu.dot_dimension_numbers<[1], [0], [0], [1], [0, 0, 1, 1], [], []>} : vector<64x64xf32>, vector<64x128xf32>, vector<64x128xf32> -> vector<64x128xf32>
    %70 = arith.addf %65, %69 : vector<64x128xf32>
    %c14 = arith.constant 14 : index
    %c0_44 = arith.constant 0 : index
    %c0_45 = arith.constant 0 : index
    %71 = vector.load %arg2[%c14, %c0_44, %c0_45] : memref<25x64x64xf32, #tpu.memory_space<vmem>>, vector<1x64x64xf32>
    %72 = vector.shape_cast %71 : vector<1x64x64xf32> to vector<64x64xf32>
    %73 = vector.extract_strided_slice %1 {offsets = [0, 14], sizes = [64, 128], strides = [1, 1]} : vector<64x152xf32> to vector<64x128xf32>
    %cst_46 = arith.constant dense<0.000000e+00> : vector<64x128xf32>
    %74 = tpu.matmul %72, %73, %cst_46 {dimension_numbers = #tpu.dot_dimension_numbers<[1], [0], [0], [1], [0, 0, 1, 1], [], []>} : vector<64x64xf32>, vector<64x128xf32>, vector<64x128xf32> -> vector<64x128xf32>
    %75 = arith.addf %70, %74 : vector<64x128xf32>
    %c15 = arith.constant 15 : index
    %c0_47 = arith.constant 0 : index
    %c0_48 = arith.constant 0 : index
    %76 = vector.load %arg2[%c15, %c0_47, %c0_48] : memref<25x64x64xf32, #tpu.memory_space<vmem>>, vector<1x64x64xf32>
    %77 = vector.shape_cast %76 : vector<1x64x64xf32> to vector<64x64xf32>
    %78 = vector.extract_strided_slice %1 {offsets = [0, 15], sizes = [64, 128], strides = [1, 1]} : vector<64x152xf32> to vector<64x128xf32>
    %cst_49 = arith.constant dense<0.000000e+00> : vector<64x128xf32>
    %79 = tpu.matmul %77, %78, %cst_49 {dimension_numbers = #tpu.dot_dimension_numbers<[1], [0], [0], [1], [0, 0, 1, 1], [], []>} : vector<64x64xf32>, vector<64x128xf32>, vector<64x128xf32> -> vector<64x128xf32>
    %80 = arith.addf %75, %79 : vector<64x128xf32>
    %c16 = arith.constant 16 : index
    %c0_50 = arith.constant 0 : index
    %c0_51 = arith.constant 0 : index
    %81 = vector.load %arg2[%c16, %c0_50, %c0_51] : memref<25x64x64xf32, #tpu.memory_space<vmem>>, vector<1x64x64xf32>
    %82 = vector.shape_cast %81 : vector<1x64x64xf32> to vector<64x64xf32>
    %83 = vector.extract_strided_slice %1 {offsets = [0, 16], sizes = [64, 128], strides = [1, 1]} : vector<64x152xf32> to vector<64x128xf32>
    %cst_52 = arith.constant dense<0.000000e+00> : vector<64x128xf32>
    %84 = tpu.matmul %82, %83, %cst_52 {dimension_numbers = #tpu.dot_dimension_numbers<[1], [0], [0], [1], [0, 0, 1, 1], [], []>} : vector<64x64xf32>, vector<64x128xf32>, vector<64x128xf32> -> vector<64x128xf32>
    %85 = arith.addf %80, %84 : vector<64x128xf32>
    %c17 = arith.constant 17 : index
    %c0_53 = arith.constant 0 : index
    %c0_54 = arith.constant 0 : index
    %86 = vector.load %arg2[%c17, %c0_53, %c0_54] : memref<25x64x64xf32, #tpu.memory_space<vmem>>, vector<1x64x64xf32>
    %87 = vector.shape_cast %86 : vector<1x64x64xf32> to vector<64x64xf32>
    %88 = vector.extract_strided_slice %1 {offsets = [0, 17], sizes = [64, 128], strides = [1, 1]} : vector<64x152xf32> to vector<64x128xf32>
    %cst_55 = arith.constant dense<0.000000e+00> : vector<64x128xf32>
    %89 = tpu.matmul %87, %88, %cst_55 {dimension_numbers = #tpu.dot_dimension_numbers<[1], [0], [0], [1], [0, 0, 1, 1], [], []>} : vector<64x64xf32>, vector<64x128xf32>, vector<64x128xf32> -> vector<64x128xf32>
    %90 = arith.addf %85, %89 : vector<64x128xf32>
    %c18 = arith.constant 18 : index
    %c0_56 = arith.constant 0 : index
    %c0_57 = arith.constant 0 : index
    %91 = vector.load %arg2[%c18, %c0_56, %c0_57] : memref<25x64x64xf32, #tpu.memory_space<vmem>>, vector<1x64x64xf32>
    %92 = vector.shape_cast %91 : vector<1x64x64xf32> to vector<64x64xf32>
    %93 = vector.extract_strided_slice %1 {offsets = [0, 18], sizes = [64, 128], strides = [1, 1]} : vector<64x152xf32> to vector<64x128xf32>
    %cst_58 = arith.constant dense<0.000000e+00> : vector<64x128xf32>
    %94 = tpu.matmul %92, %93, %cst_58 {dimension_numbers = #tpu.dot_dimension_numbers<[1], [0], [0], [1], [0, 0, 1, 1], [], []>} : vector<64x64xf32>, vector<64x128xf32>, vector<64x128xf32> -> vector<64x128xf32>
    %95 = arith.addf %90, %94 : vector<64x128xf32>
    %c19 = arith.constant 19 : index
    %c0_59 = arith.constant 0 : index
    %c0_60 = arith.constant 0 : index
    %96 = vector.load %arg2[%c19, %c0_59, %c0_60] : memref<25x64x64xf32, #tpu.memory_space<vmem>>, vector<1x64x64xf32>
    %97 = vector.shape_cast %96 : vector<1x64x64xf32> to vector<64x64xf32>
    %98 = vector.extract_strided_slice %1 {offsets = [0, 19], sizes = [64, 128], strides = [1, 1]} : vector<64x152xf32> to vector<64x128xf32>
    %cst_61 = arith.constant dense<0.000000e+00> : vector<64x128xf32>
    %99 = tpu.matmul %97, %98, %cst_61 {dimension_numbers = #tpu.dot_dimension_numbers<[1], [0], [0], [1], [0, 0, 1, 1], [], []>} : vector<64x64xf32>, vector<64x128xf32>, vector<64x128xf32> -> vector<64x128xf32>
    %100 = arith.addf %95, %99 : vector<64x128xf32>
    %c20 = arith.constant 20 : index
    %c0_62 = arith.constant 0 : index
    %c0_63 = arith.constant 0 : index
    %101 = vector.load %arg2[%c20, %c0_62, %c0_63] : memref<25x64x64xf32, #tpu.memory_space<vmem>>, vector<1x64x64xf32>
    %102 = vector.shape_cast %101 : vector<1x64x64xf32> to vector<64x64xf32>
    %103 = vector.extract_strided_slice %1 {offsets = [0, 20], sizes = [64, 128], strides = [1, 1]} : vector<64x152xf32> to vector<64x128xf32>
    %cst_64 = arith.constant dense<0.000000e+00> : vector<64x128xf32>
    %104 = tpu.matmul %102, %103, %cst_64 {dimension_numbers = #tpu.dot_dimension_numbers<[1], [0], [0], [1], [0, 0, 1, 1], [], []>} : vector<64x64xf32>, vector<64x128xf32>, vector<64x128xf32> -> vector<64x128xf32>
    %105 = arith.addf %100, %104 : vector<64x128xf32>
    %c21 = arith.constant 21 : index
    %c0_65 = arith.constant 0 : index
    %c0_66 = arith.constant 0 : index
    %106 = vector.load %arg2[%c21, %c0_65, %c0_66] : memref<25x64x64xf32, #tpu.memory_space<vmem>>, vector<1x64x64xf32>
    %107 = vector.shape_cast %106 : vector<1x64x64xf32> to vector<64x64xf32>
    %108 = vector.extract_strided_slice %1 {offsets = [0, 21], sizes = [64, 128], strides = [1, 1]} : vector<64x152xf32> to vector<64x128xf32>
    %cst_67 = arith.constant dense<0.000000e+00> : vector<64x128xf32>
    %109 = tpu.matmul %107, %108, %cst_67 {dimension_numbers = #tpu.dot_dimension_numbers<[1], [0], [0], [1], [0, 0, 1, 1], [], []>} : vector<64x64xf32>, vector<64x128xf32>, vector<64x128xf32> -> vector<64x128xf32>
    %110 = arith.addf %105, %109 : vector<64x128xf32>
    %c22 = arith.constant 22 : index
    %c0_68 = arith.constant 0 : index
    %c0_69 = arith.constant 0 : index
    %111 = vector.load %arg2[%c22, %c0_68, %c0_69] : memref<25x64x64xf32, #tpu.memory_space<vmem>>, vector<1x64x64xf32>
    %112 = vector.shape_cast %111 : vector<1x64x64xf32> to vector<64x64xf32>
    %113 = vector.extract_strided_slice %1 {offsets = [0, 22], sizes = [64, 128], strides = [1, 1]} : vector<64x152xf32> to vector<64x128xf32>
    %cst_70 = arith.constant dense<0.000000e+00> : vector<64x128xf32>
    %114 = tpu.matmul %112, %113, %cst_70 {dimension_numbers = #tpu.dot_dimension_numbers<[1], [0], [0], [1], [0, 0, 1, 1], [], []>} : vector<64x64xf32>, vector<64x128xf32>, vector<64x128xf32> -> vector<64x128xf32>
    %115 = arith.addf %110, %114 : vector<64x128xf32>
    %c23 = arith.constant 23 : index
    %c0_71 = arith.constant 0 : index
    %c0_72 = arith.constant 0 : index
    %116 = vector.load %arg2[%c23, %c0_71, %c0_72] : memref<25x64x64xf32, #tpu.memory_space<vmem>>, vector<1x64x64xf32>
    %117 = vector.shape_cast %116 : vector<1x64x64xf32> to vector<64x64xf32>
    %118 = vector.extract_strided_slice %1 {offsets = [0, 23], sizes = [64, 128], strides = [1, 1]} : vector<64x152xf32> to vector<64x128xf32>
    %cst_73 = arith.constant dense<0.000000e+00> : vector<64x128xf32>
    %119 = tpu.matmul %117, %118, %cst_73 {dimension_numbers = #tpu.dot_dimension_numbers<[1], [0], [0], [1], [0, 0, 1, 1], [], []>} : vector<64x64xf32>, vector<64x128xf32>, vector<64x128xf32> -> vector<64x128xf32>
    %120 = arith.addf %115, %119 : vector<64x128xf32>
    %c24 = arith.constant 24 : index
    %c0_74 = arith.constant 0 : index
    %c0_75 = arith.constant 0 : index
    %121 = vector.load %arg2[%c24, %c0_74, %c0_75] : memref<25x64x64xf32, #tpu.memory_space<vmem>>, vector<1x64x64xf32>
    %122 = vector.shape_cast %121 : vector<1x64x64xf32> to vector<64x64xf32>
    %123 = vector.extract_strided_slice %1 {offsets = [0, 24], sizes = [64, 128], strides = [1, 1]} : vector<64x152xf32> to vector<64x128xf32>
    %cst_76 = arith.constant dense<0.000000e+00> : vector<64x128xf32>
    %124 = tpu.matmul %122, %123, %cst_76 {dimension_numbers = #tpu.dot_dimension_numbers<[1], [0], [0], [1], [0, 0, 1, 1], [], []>} : vector<64x64xf32>, vector<64x128xf32>, vector<64x128xf32> -> vector<64x128xf32>
    %125 = arith.addf %120, %124 : vector<64x128xf32>
    %c0_77 = arith.constant 0 : index
    %c0_78 = arith.constant 0 : index
    %126 = vector.load %arg3[%c0_77, %c0_78] : memref<64x1xf32, #tpu.memory_space<vmem>>, vector<64x1xf32>
    %127 = vector.broadcast %126 : vector<64x1xf32> to vector<64x128xf32>
    %128 = arith.addf %125, %127 : vector<64x128xf32>
    %cst_79 = arith.constant 5.000000e-01 : f32
    %129 = vector.broadcast %cst_79 : f32 to vector<64x128xf32>
    %130 = arith.mulf %129, %128 : vector<64x128xf32>
    %cst_80 = arith.constant 0.707106769 : f32
    %131 = vector.broadcast %cst_80 : f32 to vector<64x128xf32>
    %132 = arith.mulf %128, %131 : vector<64x128xf32>
    %133 = math.erf %132 : vector<64x128xf32>
    %cst_81 = arith.constant 1.000000e+00 : f32
    %134 = vector.broadcast %cst_81 : f32 to vector<64x128xf32>
    %135 = arith.addf %134, %133 : vector<64x128xf32>
    %136 = arith.mulf %130, %135 : vector<64x128xf32>
    %137 = vector.extract_strided_slice %1 {offsets = [0, 12], sizes = [64, 128], strides = [1, 1]} : vector<64x152xf32> to vector<64x128xf32>
    %138 = arith.addf %137, %136 : vector<64x128xf32>
    %cst_82 = arith.constant dense<0.000000e+00> : vector<128xf32>
    %139 = vector.multi_reduction <add>, %138, %cst_82 [0] : vector<64x128xf32> to vector<128xf32>
    %140 = vector.shape_cast %139 : vector<128xf32> to vector<1x128xf32>
    %cst_83 = arith.constant 6.400000e+01 : f32
    %141 = vector.broadcast %cst_83 : f32 to vector<1x128xf32>
    %142 = arith.divf %140, %141 : vector<1x128xf32>
    %143 = vector.broadcast %142 : vector<1x128xf32> to vector<64x128xf32>
    %144 = arith.subf %138, %143 : vector<64x128xf32>
    %145 = arith.mulf %144, %144 : vector<64x128xf32>
    %cst_84 = arith.constant dense<0.000000e+00> : vector<128xf32>
    %146 = vector.multi_reduction <add>, %145, %cst_84 [0] : vector<64x128xf32> to vector<128xf32>
    %147 = vector.shape_cast %146 : vector<128xf32> to vector<1x128xf32>
    %cst_85 = arith.constant 6.400000e+01 : f32
    %148 = vector.broadcast %cst_85 : f32 to vector<1x128xf32>
    %149 = arith.divf %147, %148 : vector<1x128xf32>
    %150 = vector.broadcast %142 : vector<1x128xf32> to vector<64x128xf32>
    %151 = arith.subf %138, %150 : vector<64x128xf32>
    %cst_86 = arith.constant 9.99999974E-6 : f32
    %152 = vector.broadcast %cst_86 : f32 to vector<1x128xf32>
    %153 = arith.addf %149, %152 : vector<1x128xf32>
    %154 = math.rsqrt %153 : vector<1x128xf32>
    %155 = vector.broadcast %154 : vector<1x128xf32> to vector<64x128xf32>
    %156 = arith.mulf %151, %155 : vector<64x128xf32>
    %c0_87 = arith.constant 0 : index
    %c0_88 = arith.constant 0 : index
    %157 = vector.load %arg4[%c0_87, %c0_88] : memref<192x64xf32, #tpu.memory_space<vmem>>, vector<192x64xf32>
    %cst_89 = arith.constant dense<0.000000e+00> : vector<192x128xf32>
    %158 = tpu.matmul %157, %156, %cst_89 {dimension_numbers = #tpu.dot_dimension_numbers<[1], [0], [0], [1], [0, 0, 1, 1], [], []>} : vector<192x64xf32>, vector<64x128xf32>, vector<192x128xf32> -> vector<192x128xf32>
    %c0_90 = arith.constant 0 : index
    %c0_91 = arith.constant 0 : index
    %159 = vector.load %arg5[%c0_90, %c0_91] : memref<192x1xf32, #tpu.memory_space<vmem>>, vector<192x1xf32>
    %160 = vector.broadcast %159 : vector<192x1xf32> to vector<192x128xf32>
    %161 = arith.addf %158, %160 : vector<192x128xf32>
    %c0_92 = arith.constant 0 : index
    %c0_93 = arith.constant 0 : index
    %c0_94 = arith.constant 0 : index
    %162 = vector.load %arg6[%c0_92, %c0_93, %c0_94] : memref<1x192x128xf32, #tpu.memory_space<vmem>>, vector<1x192x128xf32>
    %163 = vector.shape_cast %162 : vector<1x192x128xf32> to vector<192x128xf32>
    %164 = vector.shape_cast %161 : vector<192x128xf32> to vector<1x192x128xf32>
    tpu.vector_store %arg6[%c0_92, %c0_93, %c0_94], %164 {strides = array<i32>} : memref<1x192x128xf32, #tpu.memory_space<vmem>>, vector<1x192x128xf32>,
    return
  }
  func.func @transform_0(%arg0: i32) -> (i32, i32, i32) {
    %c0_i32 = arith.constant 0 : i32
    %c0_i32_0 = arith.constant 0 : i32
    %c0_i32_1 = arith.constant 0 : i32
    return %arg0, %c0_i32, %c0_i32_0 : i32, i32, i32
  }
  func.func @transform_1(%arg0: i32) -> (i32, i32, i32) {
    %c0_i32 = arith.constant 0 : i32
    %c0_i32_0 = arith.constant 0 : i32
    %c0_i32_1 = arith.constant 0 : i32
    %c0_i32_2 = arith.constant 0 : i32
    return %c0_i32, %c0_i32_0, %c0_i32_1 : i32, i32, i32
  }
  func.func @transform_2(%arg0: i32) -> (i32, i32) {
    %c0_i32 = arith.constant 0 : i32
    %c0_i32_0 = arith.constant 0 : i32
    %c0_i32_1 = arith.constant 0 : i32
    return %c0_i32, %c0_i32_0 : i32, i32
  }
  func.func @transform_3(%arg0: i32) -> (i32, i32) {
    %c0_i32 = arith.constant 0 : i32
    %c0_i32_0 = arith.constant 0 : i32
    %c0_i32_1 = arith.constant 0 : i32
    return %c0_i32, %c0_i32_0 : i32, i32
  }
  func.func @transform_4(%arg0: i32) -> (i32, i32) {
    %c0_i32 = arith.constant 0 : i32
    %c0_i32_0 = arith.constant 0 : i32
    %c0_i32_1 = arith.constant 0 : i32
    return %c0_i32, %c0_i32_0 : i32, i32
  }
  func.func @transform_5(%arg0: i32) -> (i32, i32, i32) {
    %c0_i32 = arith.constant 0 : i32
    %c0_i32_0 = arith.constant 0 : i32
    %c0_i32_1 = arith.constant 0 : i32
    return %arg0, %c0_i32, %c0_i32_0 : i32, i32, i32
  }
}

</mosaic_0001>

<bundles_post_ra>
// kernel: _lambda_.1
= control target key start
LH: loop header
LB: loop body
LE: loop exit
PB: predicated region body
PF: predicated region fallthrough
CT: control target
= control target key end

     0   :  { %10 = vsyncpa [#allocation3], 0  ;;  %s10712_s0 = inlined_call_operand.vmem [shape: f32[2,64,152], index: 0, kind: input, shape index: {}]   ;;  %s10713_s1 = inlined_call_operand.hbm [shape: f32[25,64,64], index: 1, kind: input, shape index: {}]   ;;  %s10714_s2 = inlined_call_operand.vmem [shape: f32[64,1], index: 2, kind: input, shape index: {}]   ;;  %s10715_s3 = inlined_call_operand.vmem [shape: f32[192,64], index: 3, kind: input, shape index: {}]   ;;  %s10716_s4 = inlined_call_operand.vmem [shape: f32[192,1], index: 4, kind: input, shape index: {}]   ;;  %s10717_s5 = inlined_call_operand.hbm [shape: f32[2,192,128], index: 5, kind: output, shape index: {}]  }
   0x1   :  { %11 = vsyncpa [#allocation4], 0 }
   0x2   :  { %13 = vsyncpa [#allocation4 + $0x1], 0  ;;  %s9306_s18 = smov 0   ;;  %s9308_s19 = smov 0  }
   0x3   :  { %s9310_s20 = smov 0   ;;  %s9312_s21 = smov 0  }
   0x4 LB: > { %s9327_s22 = sadd.s32 4294967295, %s9242_s21   ;;  %s5968_s23 = sadd.s32 4294967294, %s9242_s21   ;;  %s9242_s21 = sphi %s9312_s21, %s10733_s21   ;;  %s9238_s20 = sphi %s9310_s20, %s10732_s20   ;;  %s9234_s19 = sphi %s9308_s19, %s10731_s19   ;;  %s9230_s18 = sphi %s9306_s18, %s10730_s18  }
   0x5   : > { %s9331_s24 = sadd.s32 1, %s9242_s21   ;;  %s136_s25 = sadd.s32 1, %s9238_s20 }
   0x6   : > { %s133_s26 = ssub.s32 %s9242_s21, %s9331_s24  ;;  %p146_p0 = scmp.ne.s32.totalorder %s9238_s20, %s9234_s19 }
   0x7   : > { %p134_p1 = scmp.eq.s32.totalorder %s133_s26, 0  ;;  %p147_p2 = scmp.eq.s32.totalorder %s9327_s22, 1 }
   0x8   : > { %p152_p3 = scmp.ne.s32.totalorder %s9234_s19, %s9230_s18  ;;  %p153_p4 = scmp.eq.s32.totalorder %s5968_s23, 1 }
   0x9   : > { %s9342_s27 = scalar_select %p134_p1, %s9238_s20, %s136_s25  }
   0xa   : > { %p9344_p5 = por %p147_p2, %p146_p0  ;;  %p9348_p6 = por %p153_p4, %p152_p3 }
   0xb   : > { %p5969_p7 = scmp.ge.s32.totalorder %s9242_s21, 1  ;;  %p160_p8 = scmp.lt.s32.totalorder %s9242_s21, 3 }
   0xc   : > { %s10721_s28 = scalar_select %p9344_p5, 1, 0 }
   0xd   : > { %s10722_s29 = scalar_select %p9348_p6, 1, 0 }
   0xe   : > { %p10718_p9 = scmp.eq.s32.totalorder %s9327_s22, 0  ;;  %p9355_p10 = pnand %p5969_p7, %p160_p8 }
   0xf   : > { %s9244_s6 = smov [#allocation2]   ;;  %s9148_s11 = scalar_lea.hbm %s10713_s1, 25600 }
  0x10   : > { %s10723_s30 = scalar_select %p9355_p10, 1, 0 }
  0x11   : > { %s172_s7 = sshll.u32 %s9244_s6, 4  ;;  %p8004_p11 = pneg %p9355_p10  ;;  %s173_s7 = int_to_ptr.vmem [resolvable:$true] %s172_s7 }
  0x12   : > { %p9149_p13 = scmp.ne.s32.totalorder %s10713_s1, %s9148_s11  ;;  %p9155_p3 = scmp.lt.u32.totalorder %s9148_s11, %s10713_s1 }
  0x13   : > { %p9363_p12 = pnand %p10718_p9, %p8004_p11 }
  0x15   : > { %p9150_p0 = pneg %p9363_p12 }
  0x17   : > { %p9151_p1 = pnand %p9150_p0, %p9149_p13 }
  0x19   : > { %p9152_p2 = pneg %p9151_p1 }
  0x1b   : > { %p9157_p4 = pnand %p9155_p3, %p9152_p2 }
  0x1d   : > { %9160 = shalt.err (!%p9157_p4)
}
  0x1e   : > { %s9161_s16 = scalar_lea.vmem %s173_s7, 25600  ;;  %p9169_p9 = scmp.lt.s32.totalorder %s173_s7, %s173_s7 }
  0x1f   : > { %p9162_p7 = scmp.ne.s32.totalorder %s173_s7, %s9161_s16  ;;  %p9170_p6 = scmp.lt.s32.totalorder %s9161_s16, %s9161_s16 }
  0x21   : > { %p9164_p8 = pnand %p9162_p7, %p9150_p0  ;;  %p9171_p5 = por %p9170_p6, %p9169_p9 }
  0x23   : > { %p9165_p11 = pneg %p9164_p8 }
  0x25   : > { %p9172_p10 = pnand %p9171_p5, %p9165_p11 }
  0x27   : > { %9175 = shalt.err (!%p9172_p10)
}
  0x28   : > { %s9245_s17 = smov 128   ;;  %s9246_s23 = smov 8  }
  0x29   : > { %8007 = dma.hbm_to_vmem [thread:$0]  (!%p9363_p12), %s10713_s1, 25600, %s173_s7, [#allocation3], %s9245_s17, %s9245_s17, %s9246_s23  }
  0x2a   : > { %p10725_p13 = scmp.ne.s32.totalorder %s10723_s30, 0 }
  0x2b   : > { %p10726_p1 = scmp.eq.s32.totalorder (!%p10725_p13), %s9327_s22, 0 }
  0x2c   : > { %205 = sbr.rel (%p10725_p13) target bundleno = 1410 (0x582), region = 40 }
  0x33   : > { %9221 = dma.done.wait (%p10726_p1), [#allocation3], 25600   ;;  %p10727_p0 = pmov %p10726_p1 }
  0x34   : > { %p233_p5 = scmp.lt.s32.totalorder %s9327_s22, 1  ;;  %s9247_s30 = smov 117   ;;  %v2351_v24 = vld [vmem:[#allocation2 + $0x2c0] sm:$0xff]  ;;  %vm336_vm0 = vcmask 523264   ;;  %vm2391_vm1 = vcmask 957440   ;;  %vm2586_vm2 = vcmask 949248  }
  0x35   : > { %9223 = vsyncadd (%p10727_p0), [#allocation3], 4294941696  ;;  %s9248_s7 = smov 116   ;;  %6960 = vmatprep.mubr.msk.f32.mxu0 %vm336_vm0, %v2351_v24  ;;  %s9249_s12 = smov 115   ;;  %v263_v25 = vld [vmem:[#allocation2 + $0x40] sm:$0xff]  ;;  %vm2781_vm3 = vcmask 941056  }
  0x36   : > { %s234_s6 = scalar_select %p233_p5, %s9327_s22, 1  ;;  %6652 = vmatprep.mubr.msk.f32.mxu1 %vm336_vm0, %v263_v25  ;;  %v2352_v25 = vld [vmem:[#allocation2 + $0x2c8] sm:$0xff]  ;;  %vm319_vm4 = vcmask 1039360   ;;  %vm2976_vm5 = vcmask 932864   ;;  %vm3171_vm6 = vcmask 924672   ;;  %vm636_vm7 = vcmask 1031168  }
  0x37   : > { %s9250_s13 = smov 127   ;;  %s9251_s14 = smov 114   ;;  %vm3366_vm8 = vcmask 916480   ;;  %vm831_vm9 = vcmask 1022976   ;;  %vm3561_vm10 = vcmask 908288   ;;  %vm1026_vm11 = vcmask 1014784  }
  0x38   : > { %s6203_s9 = sshll.u32 %s234_s6, 7  ;;  %s9252_s15 = smov 113   ;;  %vm3756_vm12 = vcmask 900096   ;;  %vm1221_vm13 = vcmask 1006592   ;;  %vm3951_vm14 = vcmask 891904   ;;  %vm1416_vm15 = vcmask 998400  }
  0x39   : > { %s9394_s11 = scalar_lea.vmem %s10712_s0, %s6203_s9  ;;  %s9253_s16 = smov 126  }
  0x3a   : > { %v242_v0 = vld [vmem:[%s9394_s11 + $0x20] sm:$0xff]  ;;  %v243_v1 = vld [vmem:[%s9394_s11 + $0x28] sm:$0xff]  ;;  %v9405_v5 = vld [vmem:[%s9394_s11 + $0x30] sm:$0xff]  ;;  %s9254_s17 = smov 112   ;;  %s9255_s23 = smov 125  }
  0x3b   : > { %v9399_v2 = vld [vmem:[%s9394_s11] sm:$0xff]  ;;  %v9401_v3 = vpack.i.bf16 %v243_v1, %v242_v0  ;;  %v239_v4 = vld [vmem:[%s9394_s11 + $0x8] sm:$0xff]  ;;  %v245_v6 = vld [vmem:[%s9394_s11 + $0x38] sm:$0xff]  ;;  %s9256_s25 = smov 111   ;;  %s9257_s26 = smov 124  }
  0x3c   : > { %v9409_v7 = vpack.i.bf16 %v239_v4, %v9399_v2  ;;  %v9412_v8 = vld [vmem:[%s9394_s11 + $0x10] sm:$0xff]  ;;  %v241_v9 = vld [vmem:[%s9394_s11 + $0x18] sm:$0xff]  ;;  %v9417_v10 = vpack.i.bf16 %v245_v6, %v9405_v5  ;;  %v246_v14 = vld [vmem:[%s9394_s11 + $0x40] sm:$0xff]  ;;  %s9258_s6 = smov 110   ;;  %s9259_s9 = smov 123  }
  0x3d   : > { %8089 = vrot.lane.b32.xlu1 %v9401_v3, %s9247_s30  ;;  %v9421_v11 = vpack.i.bf16 %v241_v9, %v9412_v8  ;;  %v248_v12 = vld [vmem:[%s9394_s11 + $0x50] sm:$0xff]  ;;  %v249_v13 = vld [vmem:[%s9394_s11 + $0x58] sm:$0xff]  ;;  %v247_v15 = vld [vmem:[%s9394_s11 + $0x48] sm:$0xff]  ;;  %s9260_s10 = smov 109   ;;  %s9261_s8 = smov 122  }
  0x3e   : > { %8079 = vrot.lane.b32.xlu0 %v9409_v7, %s9247_s30  ;;  %v9428_v16 = vpack.i.bf16 %v249_v13, %v248_v12  ;;  %v9431_v17 = vpack.i.bf16 %v247_v15, %v246_v14  ;;  %v252_v18 = vld [vmem:[%s9394_s11 + $0x70] sm:$0xff]  ;;  %v253_v19 = vld [vmem:[%s9394_s11 + $0x78] sm:$0xff]  ;;  %v250_v20 = vld [vmem:[%s9394_s11 + $0x60] sm:$0xff]  ;;  %p10728_p9 = scmp.ne.s32.totalorder %s10721_s28, 0 }
  0x3f   : > { %v251_v21 = vld [vmem:[%s9394_s11 + $0x68] sm:$0xff]  ;;  %v9438_v22 = vpack.i.bf16 %v253_v19, %v252_v18 }
  0x40   : > { %v9441_v23 = vpack.i.bf16 %v251_v21, %v250_v20 }
  0x41   : > { %8094 = vrot.lane.b32.xlu1 %v9417_v10, %s9247_s30 }
  0x42   : > { %8084 = vrot.lane.b32.xlu0 %v9421_v11, %s9247_s30 }
  0x45   : > { %8104 = vrot.lane.b32.xlu1 %v9428_v16, %s9247_s30 }
  0x46   : > { %8099 = vrot.lane.b32.xlu0 %v9431_v17, %s9247_s30 }
  0x49   : > { %8114 = vrot.lane.b32.xlu1 %v9438_v22, %s9247_s30 }
  0x4a   : > { %8109 = vrot.lane.b32.xlu0 %v9441_v23, %s9247_s30  ;;  %s9262_s30 = smov 108  }
  0x4d   : > { %8124 = vrot.lane.b32.xlu1 %v9421_v11, %s9248_s7 }
  0x4e   : > { %8119 = vrot.lane.b32.xlu0 %v9409_v7, %s9248_s7 }
  0x51   : > { %8134 = vrot.lane.b32.xlu1 %v9417_v10, %s9248_s7 }
  0x52   : > { %8129 = vrot.lane.b32.xlu0 %v9401_v3, %s9248_s7 }
  0x55   : > { %8144 = vrot.lane.b32.xlu1 %v9428_v16, %s9248_s7 }
  0x56   : > { %8139 = vrot.lane.b32.xlu0 %v9431_v17, %s9248_s7 }
  0x59   : > { %8154 = vrot.lane.b32.xlu1 %v9438_v22, %s9248_s7 }
  0x5a   : > { %8149 = vrot.lane.b32.xlu0 %v9441_v23, %s9248_s7 }
  0x5d   : > { %8164 = vrot.lane.b32.xlu1 %v9421_v11, %s9249_s12 }
  0x5e   : > { %8159 = vrot.lane.b32.xlu0 %v9409_v7, %s9249_s12 }
  0x61   : > { %8174 = vrot.lane.b32.xlu1 %v9417_v10, %s9249_s12 }
  0x62   : > { %8169 = vrot.lane.b32.xlu0 %v9401_v3, %s9249_s12 }
  0x65   : > { %8184 = vrot.lane.b32.xlu1 %v9428_v16, %s9249_s12 }
  0x66   : > { %8179 = vrot.lane.b32.xlu0 %v9431_v17, %s9249_s12 }
  0x69   : > { %8194 = vrot.lane.b32.xlu1 %v9438_v22, %s9249_s12 }
  0x6a   : > { %8189 = vrot.lane.b32.xlu0 %v9441_v23, %s9249_s12  ;;  %s9263_s12 = smov 121  }
  0x6d   : > { %8204 = vrot.lane.b32.xlu1 %v9421_v11, %s9250_s13 }
  0x6e   : > { %8199 = vrot.lane.b32.xlu0 %v9409_v7, %s9250_s13 }
  0x71   : > { %8214 = vrot.lane.b32.xlu1 %v9421_v11, %s9251_s14 }
  0x72   : > { %8209 = vrot.lane.b32.xlu0 %v9409_v7, %s9251_s14 }
  0x75   : > { %8224 = vrot.lane.b32.xlu1 %v9417_v10, %s9250_s13 }
  0x76   : > { %8219 = vrot.lane.b32.xlu0 %v9401_v3, %s9250_s13 }
  0x79   : > { %8234 = vrot.lane.b32.xlu1 %v9417_v10, %s9251_s14 }
  0x7a   : > { %8229 = vrot.lane.b32.xlu0 %v9401_v3, %s9251_s14 }
  0x7d   : > { %8244 = vrot.lane.b32.xlu1 %v9428_v16, %s9250_s13 }
  0x7e   : > { %8239 = vrot.lane.b32.xlu0 %v9431_v17, %s9250_s13 }
  0x81   : > { %8254 = vrot.lane.b32.xlu1 %v9428_v16, %s9251_s14 }
  0x82   : > { %8249 = vrot.lane.b32.xlu0 %v9431_v17, %s9251_s14 }
  0x85   : > { %8264 = vrot.lane.b32.xlu1 %v9438_v22, %s9250_s13 }
  0x86   : > { %8259 = vrot.lane.b32.xlu0 %v9441_v23, %s9250_s13  ;;  %s9264_s13 = smov 107  }
  0x89   : > { %8274 = vrot.lane.b32.xlu1 %v9438_v22, %s9251_s14 }
  0x8a   : > { %8269 = vrot.lane.b32.xlu0 %v9441_v23, %s9251_s14  ;;  %s9265_s14 = smov 120  }
  0x8d   : > { %8284 = vrot.lane.b32.xlu1 %v9421_v11, %s9252_s15 }
  0x8e   : > { %8279 = vrot.lane.b32.xlu0 %v9409_v7, %s9252_s15 }
  0x91   : > { %8294 = vrot.lane.b32.xlu1 %v9417_v10, %s9252_s15 }
  0x92   : > { %8289 = vrot.lane.b32.xlu0 %v9401_v3, %s9252_s15 }
  0x95   : > { %8304 = vrot.lane.b32.xlu1 %v9428_v16, %s9252_s15 }
  0x96   : > { %8299 = vrot.lane.b32.xlu0 %v9431_v17, %s9252_s15 }
  0x99   : > { %8314 = vrot.lane.b32.xlu1 %v9438_v22, %s9252_s15 }
  0x9a   : > { %8309 = vrot.lane.b32.xlu0 %v9441_v23, %s9252_s15  ;;  %s9266_s15 = smov 106  }
  0x9d   : > { %8324 = vrot.lane.b32.xlu1 %v9421_v11, %s9253_s16 }
  0x9e   : > { %8319 = vrot.lane.b32.xlu0 %v9409_v7, %s9253_s16 }
  0xa1   : > { %8334 = vrot.lane.b32.xlu1 %v9421_v11, %s9254_s17 }
  0xa2   : > { %8329 = vrot.lane.b32.xlu0 %v9409_v7, %s9254_s17 }
  0xa5   : > { %8344 = vrot.lane.b32.xlu1 %v9417_v10, %s9253_s16 }
  0xa6   : > { %8339 = vrot.lane.b32.xlu0 %v9401_v3, %s9253_s16 }
  0xa9   : > { %8354 = vrot.lane.b32.xlu1 %v9417_v10, %s9254_s17 }
  0xaa   : > { %8349 = vrot.lane.b32.xlu0 %v9401_v3, %s9254_s17 }
  0xad   : > { %8364 = vrot.lane.b32.xlu1 %v9428_v16, %s9253_s16 }
  0xae   : > { %8359 = vrot.lane.b32.xlu0 %v9431_v17, %s9253_s16 }
  0xaf   : > { %v8090_v26 = vpop.permute.xlu1 %8089 }
  0xb0   : > { %v8080_v27 = vpop.permute.xlu0 %8079  ;;  %v8092_v34 = vunpack.i.h.bf16 %v8090_v26  ;;  %v8091_v35 = vunpack.i.l.bf16 %v8090_v26 }
  0xb1   : > { %8374 = vrot.lane.b32.xlu1 %v9428_v16, %s9254_s17  ;;  %v8082_v28 = vunpack.i.h.bf16 %v8080_v27  ;;  %v8081_v29 = vunpack.i.l.bf16 %v8080_v27 }
  0xb2   : > { %8369 = vrot.lane.b32.xlu0 %v9431_v17, %s9254_s17  ;;  %v2394_v48 = vsel %vm2391_vm1, %v8091_v35, %v8092_v34 }
  0xb3   : > { %v8095_v30 = vpop.permute.xlu1 %8094  ;;  %v2392_v39 = vsel %vm2391_vm1, %v8081_v29, %v8082_v28 }
  0xb4   : > { %v8097_v31 = vunpack.i.h.bf16 %v8095_v30  ;;  %v8096_v32 = vunpack.i.l.bf16 %v8095_v30  ;;  %v8085_v33 = vpop.permute.xlu0 %8084 }
  0xb5   : > { %v8087_v36 = vunpack.i.h.bf16 %v8085_v33  ;;  %v8086_v37 = vunpack.i.l.bf16 %v8085_v33  ;;  %8384 = vrot.lane.b32.xlu1 %v9438_v22, %s9253_s16 }
  0xb6   : > { %8379 = vrot.lane.b32.xlu0 %v9441_v23, %s9253_s16  ;;  %v2395_v41 = vsel %vm2391_vm1, %v8096_v32, %v8097_v31  ;;  %v2353_v31 = vld [vmem:[#allocation2 + $0x2d0] sm:$0xff]  ;;  %s9267_s16 = smov 119  }
  0xb7   : > { %v8105_v38 = vpop.permute.xlu1 %8104  ;;  %v2393_v40 = vsel %vm2391_vm1, %v8086_v37, %v8087_v36  ;;  %v7568_v49 = vpack.c.bf16 %v2395_v41, %v2394_v48  ;;  %v2354_v36 = vld [vmem:[#allocation2 + $0x2d8] sm:$0xff] }
  0xb8   : > { %v8107_v42 = vunpack.i.h.bf16 %v8105_v38  ;;  %v8106_v43 = vunpack.i.l.bf16 %v8105_v38  ;;  %v8100_v44 = vpop.permute.xlu0 %8099  ;;  %v7564_v45 = vpack.c.bf16 %v2393_v40, %v2392_v39 }
  0xb9   : > { %v8102_v46 = vunpack.i.h.bf16 %v8100_v44  ;;  %v8101_v47 = vunpack.i.l.bf16 %v8100_v44  ;;  %8394 = vrot.lane.b32.xlu1 %v9438_v22, %s9254_s17 }
  0xba   : > { %8389 = vrot.lane.b32.xlu0 %v9441_v23, %s9254_s17  ;;  %7565 = vmatprep.subr.bf16.mxu0 %v7564_v45  ;;  %v2397_v52 = vsel %vm2391_vm1, %v8106_v43, %v8107_v42  ;;  %v2355_v42 = vld [vmem:[#allocation2 + $0x2e0] sm:$0xff]  ;;  %s9268_s17 = smov 105  }
  0xbb   : > { %7567 = vmatpush3.bf16.msra.mxu0 %v7564_v45  ;;  %v8115_v50 = vpop.permute.xlu1 %8114  ;;  %v2396_v51 = vsel %vm2391_vm1, %v8101_v47, %v8102_v46  ;;  %v2356_v47 = vld [vmem:[#allocation2 + $0x2e8] sm:$0xff] }
  0xbc   : > { %v8117_v53 = vunpack.i.h.bf16 %v8115_v50  ;;  %v8116_v54 = vunpack.i.l.bf16 %v8115_v50  ;;  %v8110_v55 = vpop.permute.xlu0 %8109  ;;  %7569 = vmatprep.subr.bf16.mxu0 %v7568_v49  ;;  %v7572_v58 = vpack.c.bf16 %v2397_v52, %v2396_v51 }
  0xbd   : > { %v8112_v56 = vunpack.i.h.bf16 %v8110_v55  ;;  %v8111_v57 = vunpack.i.l.bf16 %v8110_v55  ;;  %8404 = vrot.lane.b32.xlu1 %v9421_v11, %s9255_s23 }
  0xbe   : > { %8399 = vrot.lane.b32.xlu0 %v9409_v7, %s9255_s23  ;;  %v2399_v61 = vsel %vm2391_vm1, %v8116_v54, %v8117_v53  ;;  %v2357_v53 = vld [vmem:[#allocation2 + $0x2f0] sm:$0xff] }
  0xbf   : > { %7571 = vmatpush3.bf16.msra.mxu0 %v7568_v49  ;;  %v8125_v59 = vpop.permute.xlu1 %8124  ;;  %v2398_v60 = vsel %vm2391_vm1, %v8111_v57, %v8112_v56  ;;  %vm4146_vm1 = vcmask 883712  }
  0xc0   : > { %v8127_v62 = vunpack.i.h.bf16 %v8125_v59  ;;  %v8126_v63 = vunpack.i.l.bf16 %v8125_v59  ;;  %v8120_v0 = vpop.permute.xlu0 %8119  ;;  %7573 = vmatprep.subr.bf16.mxu0 %v7572_v58  ;;  %v7576_v6 = vpack.c.bf16 %v2399_v61, %v2398_v60 }
  0xc1   : > { %v8122_v1 = vunpack.i.h.bf16 %v8120_v0  ;;  %v8121_v4 = vunpack.i.l.bf16 %v8120_v0  ;;  %8414 = vrot.lane.b32.xlu1 %v9421_v11, %s9256_s25  ;;  %v2546_v0 = vld [vmem:[#allocation2 + $0x300] sm:$0xff] }
  0xc2   : > { %8409 = vrot.lane.b32.xlu0 %v9409_v7, %s9256_s25  ;;  %v2588_v13 = vsel %vm2586_vm2, %v8126_v63, %v8127_v62 }
  0xc3   : > { %7575 = vmatpush3.bf16.msra.mxu0 %v7572_v58  ;;  %v8135_v9 = vpop.permute.xlu1 %8134  ;;  %v2587_v12 = vsel %vm2586_vm2, %v8121_v4, %v8122_v1  ;;  %v2358_v58 = vld [vmem:[#allocation2 + $0x2f8] sm:$0xff] }
  0xc4   : > { %v8137_v14 = vunpack.i.h.bf16 %v8135_v9  ;;  %v8136_v15 = vunpack.i.l.bf16 %v8135_v9  ;;  %v8130_v18 = vpop.permute.xlu0 %8129  ;;  %7577 = vmatprep.subr.bf16.mxu0 %v7576_v6  ;;  %v7580_v21 = vpack.c.bf16 %v2588_v13, %v2587_v12  ;;  %v2547_v12 = vld [vmem:[#allocation2 + $0x308] sm:$0xff] }
  0xc5   : > { %v8132_v19 = vunpack.i.h.bf16 %v8130_v18  ;;  %v8131_v20 = vunpack.i.l.bf16 %v8130_v18  ;;  %8424 = vrot.lane.b32.xlu1 %v9417_v10, %s9255_s23 }
  0xc6   : > { %8419 = vrot.lane.b32.xlu0 %v9401_v3, %s9255_s23  ;;  %v2590_v27 = vsel %vm2586_vm2, %v8136_v15, %v8137_v14 }
  0xc7   : > { %7579 = vmatpush3.bf16.msra.mxu0 %v7576_v6  ;;  %v8145_v24 = vpop.permute.xlu1 %8144  ;;  %v2589_v26 = vsel %vm2586_vm2, %v8131_v20, %v8132_v19  ;;  %v2548_v20 = vld [vmem:[#allocation2 + $0x310] sm:$0xff] }
  0xc8   : > { %v8147_v28 = vunpack.i.h.bf16 %v8145_v24  ;;  %v8146_v29 = vunpack.i.l.bf16 %v8145_v24  ;;  %v8140_v30 = vpop.permute.xlu0 %8139  ;;  %7581 = vmatprep.subr.bf16.mxu0 %v7580_v21  ;;  %v7584_v34 = vpack.c.bf16 %v2590_v27, %v2589_v26  ;;  %v2549_v27 = vld [vmem:[#allocation2 + $0x318] sm:$0xff] }
  0xc9   : > { %v8142_v32 = vunpack.i.h.bf16 %v8140_v30  ;;  %v8141_v33 = vunpack.i.l.bf16 %v8140_v30  ;;  %8434 = vrot.lane.b32.xlu1 %v9417_v10, %s9256_s25 }
  0xca   : > { %8429 = vrot.lane.b32.xlu0 %v9401_v3, %s9256_s25  ;;  %6961 = vmatmul.mubr.msk.f32.vlgmr.msra.gmra.mrb[0].mxu0 %vm336_vm0, %v2352_v25  ;;  %v2592_v38 = vsel %vm2586_vm2, %v8146_v29, %v8147_v28 }
  0xcb   : > { %7583 = vmatpush3.bf16.msra.mxu0 %v7580_v21  ;;  %v8155_v35 = vpop.permute.xlu1 %8154  ;;  %6963 = vmatprep.mubr.msk.f32.mxu0 %vm336_vm0, %v2353_v31  ;;  %v2591_v37 = vsel %vm2586_vm2, %v8141_v33, %v8142_v32  ;;  %v2550_v33 = vld [vmem:[#allocation2 + $0x320] sm:$0xff] }
  0xcc   : > { %v8157_v39 = vunpack.i.h.bf16 %v8155_v35  ;;  %v8156_v40 = vunpack.i.l.bf16 %v8155_v35  ;;  %v8150_v41 = vpop.permute.xlu0 %8149  ;;  %7585 = vmatprep.subr.bf16.mxu0 %v7584_v34  ;;  %v7588_v45 = vpack.c.bf16 %v2592_v38, %v2591_v37  ;;  %v2551_v38 = vld [vmem:[#allocation2 + $0x328] sm:$0xff] }
  0xcd   : > { %v8152_v43 = vunpack.i.h.bf16 %v8150_v41  ;;  %v8151_v44 = vunpack.i.l.bf16 %v8150_v41  ;;  %8444 = vrot.lane.b32.xlu1 %v9428_v16, %s9255_s23 }
  0xce   : > { %8439 = vrot.lane.b32.xlu0 %v9431_v17, %s9255_s23  ;;  %6964 = vmatmul.mubr.msk.f32.gmra.mrb[2].mxu0 %vm336_vm0, %v2354_v36  ;;  %v2594_v49 = vsel %vm2586_vm2, %v8156_v40, %v8157_v39 }
  0xcf   : > { %7587 = vmatpush3.bf16.msra.mxu0 %v7584_v34  ;;  %v8165_v46 = vpop.permute.xlu1 %8164  ;;  %6966 = vmatprep.mubr.msk.f32.mxu0 %vm336_vm0, %v2355_v42  ;;  %v2593_v48 = vsel %vm2586_vm2, %v8151_v44, %v8152_v43  ;;  %v2552_v44 = vld [vmem:[#allocation2 + $0x330] sm:$0xff] }
  0xd0   : > { %v8167_v50 = vunpack.i.h.bf16 %v8165_v46  ;;  %v8166_v51 = vunpack.i.l.bf16 %v8165_v46  ;;  %v8160_v52 = vpop.permute.xlu0 %8159  ;;  %7589 = vmatprep.subr.bf16.mxu0 %v7588_v45  ;;  %v7592_v56 = vpack.c.bf16 %v2594_v49, %v2593_v48 }
  0xd1   : > { %v8162_v54 = vunpack.i.h.bf16 %v8160_v52  ;;  %v8161_v55 = vunpack.i.l.bf16 %v8160_v52  ;;  %8454 = vrot.lane.b32.xlu1 %v9428_v16, %s9256_s25 }
  0xd2   : > { %8449 = vrot.lane.b32.xlu0 %v9431_v17, %s9256_s25  ;;  %6967 = vmatmul.mubr.msk.f32.gmra.mrb[4].mxu0 %vm336_vm0, %v2356_v47  ;;  %v2783_v60 = vsel %vm2781_vm3, %v8166_v51, %v8167_v50 }
  0xd3   : > { %7591 = vmatpush3.bf16.msra.mxu0 %v7588_v45  ;;  %v8175_v57 = vpop.permute.xlu1 %8174  ;;  %6969 = vmatprep.mubr.msk.f32.mxu0 %vm336_vm0, %v2357_v53  ;;  %v2782_v59 = vsel %vm2781_vm3, %v8161_v55, %v8162_v54  ;;  %v2553_v55 = vld [vmem:[#allocation2 + $0x338] sm:$0xff] }
  0xd4   : > { %v8177_v61 = vunpack.i.h.bf16 %v8175_v57  ;;  %v8176_v62 = vunpack.i.l.bf16 %v8175_v57  ;;  %v8170_v63 = vpop.permute.xlu0 %8169  ;;  %7593 = vmatprep.subr.bf16.mxu0 %v7592_v56  ;;  %v7596_v6 = vpack.c.bf16 %v2783_v60, %v2782_v59 }
  0xd5   : > { %v8172_v1 = vunpack.i.h.bf16 %v8170_v63  ;;  %v8171_v4 = vunpack.i.l.bf16 %v8170_v63  ;;  %8464 = vrot.lane.b32.xlu1 %v9438_v22, %s9255_s23 }
  0xd6   : > { %8459 = vrot.lane.b32.xlu0 %v9441_v23, %s9255_s23  ;;  %6970 = vmatmul.mubr.msk.f32.gmra.mrb[6].mxu0 %vm336_vm0, %v2358_v58  ;;  %v2785_v14 = vsel %vm2781_vm3, %v8176_v62, %v8177_v61  ;;  %v2741_v58 = vld [vmem:[#allocation2 + $0x340] sm:$0xff]  ;;  %s9269_s23 = smov 118  }
  0xd7   : > { %7595 = vmatpush3.bf16.msra.mxu0 %v7592_v56  ;;  %v8185_v9 = vpop.permute.xlu1 %8184  ;;  %6988 = vmatprep.mubr.msk.f32.mxu0 %vm336_vm0, %v2546_v0  ;;  %v2784_v13 = vsel %vm2781_vm3, %v8171_v4, %v8172_v1  ;;  %v2742_v4 = vld [vmem:[#allocation2 + $0x348] sm:$0xff] }
  0xd8   : > { %v8187_v15 = vunpack.i.h.bf16 %v8185_v9  ;;  %v8186_v18 = vunpack.i.l.bf16 %v8185_v9  ;;  %v8180_v19 = vpop.permute.xlu0 %8179  ;;  %7597 = vmatprep.subr.bf16.mxu0 %v7596_v6  ;;  %v7600_v25 = vpack.c.bf16 %v2785_v14, %v2784_v13 }
  0xd9   : > { %v8182_v21 = vunpack.i.h.bf16 %v8180_v19  ;;  %v8181_v24 = vunpack.i.l.bf16 %v8180_v19  ;;  %8474 = vrot.lane.b32.xlu1 %v9438_v22, %s9256_s25 }
  0xda   : > { %8469 = vrot.lane.b32.xlu0 %v9441_v23, %s9256_s25  ;;  %6989 = vmatmul.mubr.msk.f32.vlgmr.msra.gmra.mrb[0].mxu0 %vm336_vm0, %v2547_v12  ;;  %v2787_v29 = vsel %vm2781_vm3, %v8186_v18, %v8187_v15  ;;  %v2743_v12 = vld [vmem:[#allocation2 + $0x350] sm:$0xff]  ;;  %s9270_s25 = smov 104  }
  0xdb   : > { %7599 = vmatpush3.bf16.msra.mxu0 %v7596_v6  ;;  %v8195_v26 = vpop.permute.xlu1 %8194  ;;  %6991 = vmatprep.mubr.msk.f32.mxu0 %vm336_vm0, %v2548_v20  ;;  %v2786_v28 = vsel %vm2781_vm3, %v8181_v24, %v8182_v21  ;;  %v2744_v24 = vld [vmem:[#allocation2 + $0x358] sm:$0xff] }
  0xdc   : > { %v8197_v30 = vunpack.i.h.bf16 %v8195_v26  ;;  %v8196_v31 = vunpack.i.l.bf16 %v8195_v26  ;;  %v8190_v32 = vpop.permute.xlu0 %8189  ;;  %7601 = vmatprep.subr.bf16.mxu0 %v7600_v25  ;;  %v7604_v36 = vpack.c.bf16 %v2787_v29, %v2786_v28 }
  0xdd   : > { %v8192_v34 = vunpack.i.h.bf16 %v8190_v32  ;;  %v8191_v35 = vunpack.i.l.bf16 %v8190_v32  ;;  %8484 = vrot.lane.b32.xlu1 %v9421_v11, %s9257_s26 }
  0xde   : > { %8479 = vrot.lane.b32.xlu0 %v9409_v7, %s9257_s26  ;;  %6992 = vmatmul.mubr.msk.f32.gmra.mrb[2].mxu0 %vm336_vm0, %v2549_v27  ;;  %v2789_v40 = vsel %vm2781_vm3, %v8196_v31, %v8197_v30 }
  0xdf   : > { %7603 = vmatpush3.bf16.msra.mxu0 %v7600_v25  ;;  %v8205_v37 = vpop.permute.xlu1 %8204  ;;  %6994 = vmatprep.mubr.msk.f32.mxu0 %vm336_vm0, %v2550_v33  ;;  %v2788_v39 = vsel %vm2781_vm3, %v8191_v35, %v8192_v34  ;;  %vm1611_vm3 = vcmask 990208  }
  0xe0   : > { %v8207_v41 = vunpack.i.h.bf16 %v8205_v37  ;;  %v8206_v42 = vunpack.i.l.bf16 %v8205_v37  ;;  %v8200_v43 = vpop.permute.xlu0 %8199  ;;  %7605 = vmatprep.subr.bf16.mxu0 %v7604_v36  ;;  %v7608_v47 = vpack.c.bf16 %v2789_v40, %v2788_v39 }
  0xe1   : > { %v8202_v45 = vunpack.i.h.bf16 %v8200_v43  ;;  %v8201_v46 = vunpack.i.l.bf16 %v8200_v43  ;;  %8494 = vrot.lane.b32.xlu1 %v9421_v11, %s9258_s6 }
  0xe2   : > { %8489 = vrot.lane.b32.xlu0 %v9409_v7, %s9258_s6  ;;  %6995 = vmatmul.mubr.msk.f32.gmra.mrb[4].mxu0 %vm336_vm0, %v2551_v38  ;;  %v321_v48 = vsel %vm319_vm4, %v8206_v42, %v8207_v41  ;;  %v2747_v38 = vld [vmem:[#allocation2 + $0x370] sm:$0xff] }
  0xe3   : > { %7607 = vmatpush3.bf16.msra.mxu0 %v7604_v36  ;;  %v8215_v49 = vpop.permute.xlu1 %8214  ;;  %v320_v50 = vsel %vm319_vm4, %v8201_v46, %v8202_v45  ;;  %6997 = vmatprep.mubr.msk.f32.mxu0 %vm336_vm0, %v2552_v44  ;;  %v2746_v36 = vld [vmem:[#allocation2 + $0x368] sm:$0xff] }
  0xe4   : > { %v8217_v51 = vunpack.i.h.bf16 %v8215_v49  ;;  %v8216_v52 = vunpack.i.l.bf16 %v8215_v49  ;;  %v8210_v53 = vpop.permute.xlu0 %8209  ;;  %7609 = vmatprep.subr.bf16.mxu0 %v7608_v47  ;;  %v7388_v54 = vpack.c.bf16 %v321_v48, %v320_v50 }
  0xe5   : > { %v8212_v56 = vunpack.i.h.bf16 %v8210_v53  ;;  %v8211_v57 = vunpack.i.l.bf16 %v8210_v53  ;;  %8504 = vrot.lane.b32.xlu1 %v9417_v10, %s9257_s26 }
  0xe6   : > { %8499 = vrot.lane.b32.xlu0 %v9401_v3, %s9257_s26  ;;  %7389 = vmatprep.subr.bf16.mxu1 %v7388_v54  ;;  %v2978_v59 = vsel %vm2976_vm5, %v8216_v52, %v8217_v51 }
  0xe7   : > { %7391 = vmatpush3.bf16.msra.mxu1 %v7388_v54  ;;  %6998 = vmatmul.mubr.msk.f32.gmra.mrb[6].mxu0 %vm336_vm0, %v2553_v55  ;;  %v8225_v60 = vpop.permute.xlu1 %8224  ;;  %v2977_v61 = vsel %vm2976_vm5, %v8211_v57, %v8212_v56 }
  0xe8   : > { %7611 = vmatpush3.bf16.msra.mxu0 %v7608_v47  ;;  %v8227_v62 = vunpack.i.h.bf16 %v8225_v60  ;;  %v8226_v63 = vunpack.i.l.bf16 %v8225_v60  ;;  %v8220_v0 = vpop.permute.xlu0 %8219  ;;  %7016 = vmatprep.mubr.msk.f32.mxu0 %vm336_vm0, %v2741_v58  ;;  %v7612_v1 = vpack.c.bf16 %v2978_v59, %v2977_v61  ;;  %v2936_v47 = vld [vmem:[#allocation2 + $0x380] sm:$0xff] }
  0xe9   : > { %v8222_v6 = vunpack.i.h.bf16 %v8220_v0  ;;  %v8221_v9 = vunpack.i.l.bf16 %v8220_v0  ;;  %8514 = vrot.lane.b32.xlu1 %v9417_v10, %s9258_s6 }
  0xea   : > { %8509 = vrot.lane.b32.xlu0 %v9401_v3, %s9258_s6  ;;  %7613 = vmatprep.subr.bf16.mxu0 %v7612_v1  ;;  %v323_v13 = vsel %vm319_vm4, %v8226_v63, %v8227_v62  ;;  %v2745_v3 = vld [vmem:[#allocation2 + $0x360] sm:$0xff]  ;;  %v7404_v63 = vpack.c.bf16 %v9412_v8, %v9399_v2 }
  0xeb   : > { %7017 = vmatmul.mubr.msk.f32.vlgmr.msra.gmra.mrb[0].mxu0 %vm336_vm0, %v2742_v4  ;;  %v8235_v14 = vpop.permute.xlu1 %8234  ;;  %v322_v15 = vsel %vm319_vm4, %v8221_v9, %v8222_v6 }
  0xec   : > { %7615 = vmatpush3.bf16.msra.mxu0 %v7612_v1  ;;  %v8237_v18 = vunpack.i.h.bf16 %v8235_v14  ;;  %v8236_v19 = vunpack.i.l.bf16 %v8235_v14  ;;  %v8230_v20 = vpop.permute.xlu0 %8229  ;;  %v7392_v21 = vpack.c.bf16 %v323_v13, %v322_v15  ;;  %7019 = vmatprep.mubr.msk.f32.mxu0 %vm336_vm0, %v2743_v12  ;;  %v264_v12 = vld [vmem:[#allocation2 + $0x48] sm:$0xff]  ;;  %v265_v15 = vld [vmem:[#allocation2 + $0x50] sm:$0xff] }
  0xed   : > { %v8232_v25 = vunpack.i.h.bf16 %v8230_v20  ;;  %v8231_v26 = vunpack.i.l.bf16 %v8230_v20  ;;  %8524 = vrot.lane.b32.xlu1 %v9428_v16, %s9257_s26  ;;  %v9101_v20 = vld [vmem:[%s9394_s11 + $0x28] sm:$0xff] }
  0xee   : > { %8519 = vrot.lane.b32.xlu0 %v9431_v17, %s9257_s26  ;;  %7393 = vmatprep.subr.bf16.mxu1 %v7392_v21  ;;  %v2980_v27 = vsel %vm2976_vm5, %v8236_v19, %v8237_v18  ;;  %v9100_v18 = vld [vmem:[%s9394_s11 + $0x20] sm:$0xff] }
  0xef   : > { %7395 = vmatpush3.bf16.msra.mxu1 %v7392_v21  ;;  %v8245_v28 = vpop.permute.xlu1 %8244  ;;  %v2979_v29 = vsel %vm2976_vm5, %v8231_v26, %v8232_v25  ;;  %7020 = vmatmul.mubr.msk.f32.gmra.mrb[2].mxu0 %vm336_vm0, %v2744_v24  ;;  %v7408_v19 = vpack.c.bf16 %v9405_v5, %v9100_v18  ;;  %v9660_v21 = vpack.i.bf16 %v9101_v20, %v9100_v18 }
  0xf0   : > { %v8247_v30 = vunpack.i.h.bf16 %v8245_v28  ;;  %v8246_v31 = vunpack.i.l.bf16 %v8245_v28  ;;  %v8240_v32 = vpop.permute.xlu0 %8239  ;;  %v7616_v33 = vpack.c.bf16 %v2980_v27, %v2979_v29  ;;  %7022 = vmatprep.mubr.msk.f32.mxu0 %vm336_vm0, %v2745_v3  ;;  %v266_v28 = vld [vmem:[#allocation2 + $0x58] sm:$0xff] }
  0xf1   : > { %v8242_v34 = vunpack.i.h.bf16 %v8240_v32  ;;  %v8241_v35 = vunpack.i.l.bf16 %v8240_v32  ;;  %8534 = vrot.lane.b32.xlu1 %v9428_v16, %s9258_s6  ;;  %v9103_v32 = vld [vmem:[%s9394_s11 + $0x38] sm:$0xff] }
  0xf2   : > { %8529 = vrot.lane.b32.xlu0 %v9431_v17, %s9258_s6  ;;  %7617 = vmatprep.subr.bf16.mxu0 %v7616_v33  ;;  %v325_v37 = vsel %vm319_vm4, %v8246_v31, %v8247_v30  ;;  %v2748_v17 = vld [vmem:[#allocation2 + $0x378] sm:$0xff]  ;;  %v9102_v31 = vld [vmem:[%s9394_s11 + $0x30] sm:$0xff] }
  0xf3   : > { %7619 = vmatpush3.bf16.msra.mxu0 %v7616_v33  ;;  %v8255_v39 = vpop.permute.xlu1 %8254  ;;  %v324_v40 = vsel %vm319_vm4, %v8241_v35, %v8242_v34  ;;  %v9670_v33 = vpack.i.bf16 %v9103_v32, %v9102_v31  ;;  %v267_v35 = vld [vmem:[#allocation2 + $0x60] sm:$0xff]  ;;  %v2943_v32 = vld [vmem:[#allocation2 + $0x3b8] sm:$0xff] }
  0xf4   : > { %v8257_v41 = vunpack.i.h.bf16 %v8255_v39  ;;  %v8256_v42 = vunpack.i.l.bf16 %v8255_v39  ;;  %v8250_v43 = vpop.permute.xlu0 %8249  ;;  %v7396_v44 = vpack.c.bf16 %v325_v37, %v324_v40  ;;  %7023 = vmatmul.mubr.msk.f32.gmra.mrb[4].mxu0 %vm336_vm0, %v2746_v36 }
  0xf5   : > { %v8252_v45 = vunpack.i.h.bf16 %v8250_v43  ;;  %v8251_v16 = vunpack.i.l.bf16 %v8250_v43  ;;  %8544 = vrot.lane.b32.xlu1 %v9438_v22, %s9257_s26  ;;  %7025 = vmatprep.mubr.msk.f32.mxu0 %vm336_vm0, %v2747_v38  ;;  %v9105_v38 = vld [vmem:[%s9394_s11 + $0x40] sm:$0xff] }
  0xf6   : > { %8539 = vrot.lane.b32.xlu0 %v9441_v23, %s9257_s26  ;;  %7397 = vmatprep.subr.bf16.mxu1 %v7396_v44  ;;  %v2982_v46 = vsel %vm2976_vm5, %v8256_v42, %v8257_v41 }
  0xf7   : > { %7399 = vmatpush3.bf16.msra.mxu1 %v7396_v44  ;;  %v8265_v48 = vpop.permute.xlu1 %8264  ;;  %v2981_v49 = vsel %vm2976_vm5, %v8251_v16, %v8252_v45  ;;  %v2938_v44 = vld [vmem:[#allocation2 + $0x390] sm:$0xff] }
  0xf8   : > { %v8267_v50 = vunpack.i.h.bf16 %v8265_v48  ;;  %v8266_v51 = vunpack.i.l.bf16 %v8265_v48  ;;  %v8260_v52 = vpop.permute.xlu0 %8259  ;;  %v7620_v53 = vpack.c.bf16 %v2982_v46, %v2981_v49  ;;  %7026 = vmatmul.mubr.msk.f32.gmra.mrb[6].mxu0 %vm336_vm0, %v2748_v17  ;;  %v9683_v17 = vld [vmem:[%s9394_s11 + $0x58] sm:$0xff]  ;;  %v9692_v48 = vld [vmem:[%s9394_s11 + $0x48] sm:$0xff] }
  0xf9   : > { %v8262_v54 = vunpack.i.h.bf16 %v8260_v52  ;;  %v8261_v55 = vunpack.i.l.bf16 %v8260_v52  ;;  %8554 = vrot.lane.b32.xlu1 %v9438_v22, %s9258_s6  ;;  %7044 = vmatprep.mubr.msk.f32.mxu0 %vm336_vm0, %v2936_v47  ;;  %v268_v47 = vld [vmem:[#allocation2 + $0x68] sm:$0xff]  ;;  %v9695_v49 = vpack.i.bf16 %v9692_v48, %v9105_v38 }
  0xfa   : > { %8549 = vrot.lane.b32.xlu0 %v9441_v23, %s9258_s6  ;;  %7621 = vmatprep.subr.bf16.mxu0 %v7620_v53  ;;  %v327_v56 = vsel %vm319_vm4, %v8266_v51, %v8267_v50 }
  0xfb   : > { %7623 = vmatpush3.bf16.msra.mxu0 %v7620_v53  ;;  %v8275_v57 = vpop.permute.xlu1 %8274  ;;  %v326_v58 = vsel %vm319_vm4, %v8261_v55, %v8262_v54  ;;  %vm4341_vm4 = vcmask 875520  }
  0xfc   : > { %v8277_v59 = vunpack.i.h.bf16 %v8275_v57  ;;  %v8276_v60 = vunpack.i.l.bf16 %v8275_v57  ;;  %v8270_v61 = vpop.permute.xlu0 %8269  ;;  %v7400_v62 = vpack.c.bf16 %v327_v56, %v326_v58  ;;  %v2939_v57 = vld [vmem:[#allocation2 + $0x398] sm:$0xff]  ;;  %v269_v58 = vld [vmem:[#allocation2 + $0x70] sm:$0xff] }
  0xfd   : > { %v8272_v22 = vunpack.i.h.bf16 %v8270_v61  ;;  %v8271_v0 = vunpack.i.l.bf16 %v8270_v61  ;;  %8564 = vrot.lane.b32.xlu1 %v9421_v11, %s9259_s9 }
  0xfe   : > { %8559 = vrot.lane.b32.xlu0 %v9409_v7, %s9259_s9  ;;  %7401 = vmatprep.subr.bf16.mxu1 %v7400_v62  ;;  %v2984_v23 = vsel %vm2976_vm5, %v8276_v60, %v8277_v59  ;;  %v9108_v59 = vld [vmem:[%s9394_s11 + $0x70] sm:$0xff]  ;;  %v9109_v60 = vld [vmem:[%s9394_s11 + $0x60] sm:$0xff] }
  0xff   : > { %7403 = vmatpush3.bf16.msra.mxu1 %v7400_v62  ;;  %v8285_v1 = vpop.permute.xlu1 %8284  ;;  %v2983_v4 = vsel %vm2976_vm5, %v8271_v0, %v8272_v22  ;;  %v7416_v61 = vpack.c.bf16 %v9108_v59, %v9109_v60  ;;  %v2940_v22 = vld [vmem:[#allocation2 + $0x3a0] sm:$0xff]  ;;  %vm1806_vm5 = vcmask 982016  }
 0x100   : > { %v8287_v2 = vunpack.i.h.bf16 %v8285_v1  ;;  %v8286_v8 = vunpack.i.l.bf16 %v8285_v1  ;;  %v8280_v6 = vpop.permute.xlu0 %8279  ;;  %v7624_v9 = vpack.c.bf16 %v2984_v23, %v2983_v4  ;;  %7405 = vmatprep.subr.bf16.mxu1 %v7404_v63 }
 0x101   : > { %v8282_v13 = vunpack.i.h.bf16 %v8280_v6  ;;  %v8281_v14 = vunpack.i.l.bf16 %v8280_v6  ;;  %8574 = vrot.lane.b32.xlu1 %v9421_v11, %s9260_s10 }
 0x102   : > { %8569 = vrot.lane.b32.xlu0 %v9409_v7, %s9260_s10  ;;  %7625 = vmatprep.subr.bf16.mxu0 %v7624_v9  ;;  %v3173_v24 = vsel %vm3171_vm6, %v8286_v8, %v8287_v2  ;;  %v2937_v7 = vld [vmem:[#allocation2 + $0x388] sm:$0xff] }
 0x103   : > { %7627 = vmatpush3.bf16.msra.mxu0 %v7624_v9  ;;  %v8295_v25 = vpop.permute.xlu1 %8294  ;;  %v3172_v26 = vsel %vm3171_vm6, %v8281_v14, %v8282_v13  ;;  %6653 = vmatmul.mubr.msk.f32.vlgmr.msra.gmra.mrb[0].mxu1 %vm336_vm0, %v264_v12  ;;  %v270_v9 = vld [vmem:[#allocation2 + $0x78] sm:$0xff]  ;;  %v2941_v12 = vld [vmem:[#allocation2 + $0x3a8] sm:$0xff] }
 0x104   : > { %v8297_v11 = vunpack.i.h.bf16 %v8295_v25  ;;  %v8296_v3 = vunpack.i.l.bf16 %v8295_v25  ;;  %v8290_v5 = vpop.permute.xlu0 %8289  ;;  %v7628_v27 = vpack.c.bf16 %v3173_v24, %v3172_v26  ;;  %7407 = vmatpush3.bf16.msra.mxu1 %v7404_v63  ;;  %6655 = vmatprep.mubr.msk.f32.mxu1 %vm336_vm0, %v265_v15  ;;  %v9715_v15 = vld [vmem:[%s9394_s11 + $0x78] sm:$0xff]  ;;  %v254_v24 = vld [vmem:[#allocation2] sm:$0xff] }
 0x105   : > { %v8292_v29 = vunpack.i.h.bf16 %v8290_v5  ;;  %v8291_v30 = vunpack.i.l.bf16 %v8290_v5  ;;  %8584 = vrot.lane.b32.xlu1 %v9417_v10, %s9259_s9  ;;  %7409 = vmatprep.subr.bf16.mxu1 %v7408_v19  ;;  %v9104_v10 = vld [vmem:[%s9394_s11 + $0x50] sm:$0xff]  ;;  %v9718_v18 = vpack.i.bf16 %v9715_v15, %v9108_v59 }
 0x106   : > { %8579 = vrot.lane.b32.xlu0 %v9660_v21, %s9259_s9  ;;  %7629 = vmatprep.subr.bf16.mxu0 %v7628_v27  ;;  %v3175_v34 = vsel %vm3171_vm6, %v8296_v3, %v8297_v11  ;;  %v7412_v39 = vpack.c.bf16 %v9104_v10, %v9105_v38  ;;  %v9686_v46 = vpack.i.bf16 %v9683_v17, %v9104_v10 }
 0x107   : > { %7045 = vmatmul.mubr.msk.f32.vlgmr.msra.gmra.mrb[0].mxu0 %vm336_vm0, %v2937_v7  ;;  %v8305_v36 = vpop.permute.xlu1 %8304  ;;  %v3174_v37 = vsel %vm3171_vm6, %v8291_v30, %v8292_v29  ;;  %6656 = vmatmul.mubr.msk.f32.gmra.mrb[2].mxu1 %vm336_vm0, %v266_v28  ;;  %v2942_v28 = vld [vmem:[#allocation2 + $0x3b0] sm:$0xff]  ;;  %v255_v29 = vld [vmem:[#allocation2 + $0x8] sm:$0xff] }
 0x108   : > { %7631 = vmatpush3.bf16.msra.mxu0 %v7628_v27  ;;  %v8307_v40 = vunpack.i.h.bf16 %v8305_v36  ;;  %v8306_v41 = vunpack.i.l.bf16 %v8305_v36  ;;  %v8300_v42 = vpop.permute.xlu0 %8299  ;;  %v7632_v43 = vpack.c.bf16 %v3175_v34, %v3174_v37  ;;  %7411 = vmatpush3.bf16.msra.mxu1 %v7408_v19  ;;  %v9723_v19 = vld [vmem:[%s9394_s11 + $0x68] sm:$0xff]  ;;  %v3131_v34 = vld [vmem:[#allocation2 + $0x3c0] sm:$0xff] }
 0x109   : > { %v8302_v45 = vunpack.i.h.bf16 %v8300_v42  ;;  %v8301_v16 = vunpack.i.l.bf16 %v8300_v42  ;;  %8594 = vrot.lane.b32.xlu1 %v9670_v33, %s9260_s10  ;;  %6658 = vmatprep.mubr.msk.f32.mxu1 %vm336_vm0, %v267_v35  ;;  %v9726_v20 = vpack.i.bf16 %v9723_v19, %v9109_v60 }
 0x10a   : > { %8589 = vrot.lane.b32.xlu0 %v9660_v21, %s9260_s10  ;;  %7633 = vmatprep.subr.bf16.mxu0 %v7632_v43  ;;  %v3177_v50 = vsel %vm3171_vm6, %v8306_v41, %v8307_v40  ;;  %v256_v41 = vld [vmem:[#allocation2 + $0x10] sm:$0xff] }
 0x10b   : > { %v8315_v51 = vpop.permute.xlu1 %8314  ;;  %7413 = vmatprep.subr.bf16.mxu1 %v7412_v39  ;;  %7047 = vmatprep.mubr.msk.f32.mxu0 %vm336_vm0, %v2938_v44  ;;  %v3176_v52 = vsel %vm3171_vm6, %v8301_v16, %v8302_v45  ;;  %v3132_v44 = vld [vmem:[#allocation2 + $0x3c8] sm:$0xff]  ;;  %v9112_v45 = vld [vmem:[%s9394_s11 + $0x10] sm:$0xff]  ;;  %v9113_v16 = vld [vmem:[%s9394_s11 + $0x18] sm:$0xff] }
 0x10c   : > { %7635 = vmatpush3.bf16.msra.mxu0 %v7632_v43  ;;  %v8317_v53 = vunpack.i.h.bf16 %v8315_v51  ;;  %v8316_v54 = vunpack.i.l.bf16 %v8315_v51  ;;  %v8310_v55 = vpop.permute.xlu0 %8309  ;;  %v7636_v56 = vpack.c.bf16 %v3177_v50, %v3176_v52  ;;  %6659 = vmatmul.mubr.msk.f32.gmra.mrb[4].mxu1 %vm336_vm0, %v268_v47  ;;  %v9747_v47 = vpack.i.bf16 %v9113_v16, %v9112_v45  ;;  %v257_v50 = vld [vmem:[#allocation2 + $0x18] sm:$0xff]  ;;  %v9114_v51 = vld [vmem:[%s9394_s11] sm:$0xff]  ;;  %v9115_v52 = vld [vmem:[%s9394_s11 + $0x8] sm:$0xff] }
 0x10d   : > { %v8312_v62 = vunpack.i.h.bf16 %v8310_v55  ;;  %v8311_v63 = vunpack.i.l.bf16 %v8310_v55  ;;  %8604 = vrot.lane.b32.xlu1 %v9686_v46, %s9259_s9  ;;  %7415 = vmatpush3.bf16.msra.mxu1 %v7412_v39 }
 0x10e   : > { %8599 = vrot.lane.b32.xlu0 %v9695_v49, %s9259_s9  ;;  %7637 = vmatprep.subr.bf16.mxu0 %v7636_v56  ;;  %v3179_v0 = vsel %vm3171_vm6, %v8316_v54, %v8317_v53  ;;  %v9753_v53 = vpack.i.bf16 %v9115_v52, %v9114_v51 }
 0x10f   : > { %7048 = vmatmul.mubr.msk.f32.gmra.mrb[2].mxu0 %vm336_vm0, %v2939_v57  ;;  %v8325_v23 = vpop.permute.xlu1 %8324  ;;  %6661 = vmatprep.mubr.msk.f32.mxu1 %vm336_vm0, %v269_v58  ;;  %v3178_v1 = vsel %vm3171_vm6, %v8311_v63, %v8312_v62  ;;  %vm4536_vm6 = vcmask 867328  }
 0x110   : > { %7639 = vmatpush3.bf16.msra.mxu0 %v7636_v56  ;;  %v8327_v4 = vunpack.i.h.bf16 %v8325_v23  ;;  %v8326_v2 = vunpack.i.l.bf16 %v8325_v23  ;;  %v8320_v8 = vpop.permute.xlu0 %8319  ;;  %7417 = vmatprep.subr.bf16.mxu1 %v7416_v61  ;;  %v7640_v6 = vpack.c.bf16 %v3179_v0, %v3178_v1  ;;  %v259_v0 = vld [vmem:[#allocation2 + $0x28] sm:$0xff]  ;;  %v3134_v1 = vld [vmem:[#allocation2 + $0x3d8] sm:$0xff] }
 0x111   : > { %v8322_v13 = vunpack.i.h.bf16 %v8320_v8  ;;  %v8321_v14 = vunpack.i.l.bf16 %v8320_v8  ;;  %8614 = vrot.lane.b32.xlu1 %v9686_v46, %s9260_s10  ;;  %7050 = vmatprep.mubr.msk.f32.mxu0 %vm336_vm0, %v2940_v22  ;;  %v3133_v22 = vld [vmem:[#allocation2 + $0x3d0] sm:$0xff] }
 0x112   : > { %8609 = vrot.lane.b32.xlu0 %v9695_v49, %s9260_s10  ;;  %7641 = vmatprep.subr.bf16.mxu0 %v7640_v6  ;;  %v638_v25 = vsel %vm636_vm7, %v8326_v2, %v8327_v4 }
 0x113   : > { %6662 = vmatmul.mubr.msk.f32.gmra.mrb[6].mxu1 %vm336_vm0, %v270_v9  ;;  %7051 = vmatmul.mubr.msk.f32.gmra.mrb[4].mxu0 %vm336_vm0, %v2941_v12  ;;  %v8335_v26 = vpop.permute.xlu1 %8334  ;;  %v637_v11 = vsel %vm636_vm7, %v8321_v14, %v8322_v13  ;;  %v260_v13 = vld [vmem:[#allocation2 + $0x30] sm:$0xff] }
 0x114   : > { %7419 = vmatpush3.bf16.msra.mxu1 %v7416_v61  ;;  %7643 = vmatpush3.bf16.msra.mxu0 %v7640_v6  ;;  %v8337_v3 = vunpack.i.h.bf16 %v8335_v26  ;;  %v8336_v5 = vunpack.i.l.bf16 %v8335_v26  ;;  %v8330_v27 = vpop.permute.xlu0 %8329  ;;  %v7420_v7 = vpack.c.bf16 %v638_v25, %v637_v11  ;;  %v258_v61 = vld [vmem:[#allocation2 + $0x20] sm:$0xff]  ;;  %v261_v26 = vld [vmem:[#allocation2 + $0x38] sm:$0xff] }
 0x115   : > { %v8332_v30 = vunpack.i.h.bf16 %v8330_v27  ;;  %v8331_v31 = vunpack.i.l.bf16 %v8330_v27  ;;  %8624 = vrot.lane.b32.xlu1 %v9718_v18, %s9259_s9  ;;  %6680 = vmatprep.mubr.msk.f32.mxu1 %vm336_vm0, %v254_v24  ;;  %v3135_v25 = vld [vmem:[#allocation2 + $0x3e0] sm:$0xff] }
 0x116   : > { %8619 = vrot.lane.b32.xlu0 %v9726_v20, %s9259_s9  ;;  %7421 = vmatprep.subr.bf16.mxu1 %v7420_v7  ;;  %v3368_v35 = vsel %vm3366_vm8, %v8336_v5, %v8337_v3  ;;  %v3136_v3 = vld [vmem:[#allocation2 + $0x3e8] sm:$0xff]  ;;  %s9272_s9 = smov 12  }
 0x117   : > { %7053 = vmatprep.mubr.msk.f32.mxu0 %vm336_vm0, %v2942_v28  ;;  %6681 = vmatmul.mubr.msk.f32.vlgmr.msra.gmra.mrb[0].mxu1 %vm336_vm0, %v255_v29  ;;  %v8345_v36 = vpop.permute.xlu1 %8344  ;;  %v3367_v37 = vsel %vm3366_vm8, %v8331_v31, %v8332_v30  ;;  %v596_v31 = vld [vmem:[#allocation2 + $0x80] sm:$0xff] }
 0x118   : > { %7423 = vmatpush3.bf16.msra.mxu1 %v7420_v7  ;;  %7054 = vmatmul.mubr.msk.f32.gmra.mrb[6].mxu0 %vm336_vm0, %v2943_v32  ;;  %v8347_v10 = vunpack.i.h.bf16 %v8345_v36  ;;  %v8346_v38 = vunpack.i.l.bf16 %v8345_v36  ;;  %v8340_v39 = vpop.permute.xlu0 %8339  ;;  %v7644_v40 = vpack.c.bf16 %v3368_v35, %v3367_v37  ;;  %v3137_v35 = vld [vmem:[#allocation2 + $0x3f0] sm:$0xff]  ;;  %v3138_v37 = vld [vmem:[#allocation2 + $0x3f8] sm:$0xff] }
 0x119   : > { %v8342_v42 = vunpack.i.h.bf16 %v8340_v39  ;;  %v8341_v43 = vunpack.i.l.bf16 %v8340_v39  ;;  %8634 = vrot.lane.b32.xlu1 %v9718_v18, %s9260_s10  ;;  %7072 = vmatprep.mubr.msk.f32.mxu0 %vm336_vm0, %v3131_v34 }
 0x11a   : > { %8629 = vrot.lane.b32.xlu0 %v9726_v20, %s9260_s10  ;;  %7645 = vmatprep.subr.bf16.mxu0 %v7644_v40  ;;  %v640_v54 = vsel %vm636_vm7, %v8346_v38, %v8347_v10 }
 0x11b   : > { %v8355_v55 = vpop.permute.xlu1 %8354  ;;  %v639_v56 = vsel %vm636_vm7, %v8341_v43, %v8342_v42  ;;  %6683 = vmatprep.mubr.msk.f32.mxu1 %vm336_vm0, %v256_v41  ;;  %v3326_v43 = vld [vmem:[#allocation2 + $0x400] sm:$0xff] }
 0x11c   : > { %7073 = vmatmul.mubr.msk.f32.vlgmr.msra.gmra.mrb[0].mxu0 %vm336_vm0, %v3132_v44  ;;  %v8357_v57 = vunpack.i.h.bf16 %v8355_v55  ;;  %v8356_v58 = vunpack.i.l.bf16 %v8355_v55  ;;  %v8350_v59 = vpop.permute.xlu0 %8349  ;;  %v7424_v60 = vpack.c.bf16 %v640_v54, %v639_v56  ;;  %6684 = vmatmul.mubr.msk.f32.gmra.mrb[2].mxu1 %vm336_vm0, %v257_v50 }
 0x11d   : > { %7647 = vmatpush3.bf16.msra.mxu0 %v7644_v40  ;;  %v8352_v62 = vunpack.i.h.bf16 %v8350_v59  ;;  %v8351_v63 = vunpack.i.l.bf16 %v8350_v59  ;;  %8644 = vrot.lane.b32.xlu1 %v9747_v47, %s9261_s8 }
 0x11e   : > { %8639 = vrot.lane.b32.xlu0 %v9753_v53, %s9261_s8  ;;  %7425 = vmatprep.subr.bf16.mxu1 %v7424_v60  ;;  %v3370_v23 = vsel %vm3366_vm8, %v8356_v58, %v8357_v57 }
 0x11f   : > { %7427 = vmatpush3.bf16.msra.mxu1 %v7424_v60  ;;  %v8365_v4 = vpop.permute.xlu1 %8364  ;;  %v3369_v2 = vsel %vm3366_vm8, %v8351_v63, %v8352_v62  ;;  %6686 = vmatprep.mubr.msk.f32.mxu1 %vm336_vm0, %v258_v61 }
 0x120   : > { %v8367_v8 = vunpack.i.h.bf16 %v8365_v4  ;;  %v8366_v6 = vunpack.i.l.bf16 %v8365_v4  ;;  %v8360_v9 = vpop.permute.xlu0 %8359  ;;  %v7648_v12 = vpack.c.bf16 %v3370_v23, %v3369_v2  ;;  %7075 = vmatprep.mubr.msk.f32.mxu0 %vm336_vm0, %v3133_v22  ;;  %6687 = vmatmul.mubr.msk.f32.gmra.mrb[4].mxu1 %vm336_vm0, %v259_v0  ;;  %v597_v23 = vld [vmem:[#allocation2 + $0x88] sm:$0xff]  ;;  %v598_v2 = vld [vmem:[#allocation2 + $0x90] sm:$0xff] }
 0x121   : > { %v8362_v14 = vunpack.i.h.bf16 %v8360_v9  ;;  %v8361_v24 = vunpack.i.l.bf16 %v8360_v9  ;;  %8654 = vrot.lane.b32.xlu1 %v9747_v47, %s9262_s30  ;;  %7076 = vmatmul.mubr.msk.f32.gmra.mrb[2].mxu0 %vm336_vm0, %v3134_v1 }
 0x122   : > { %8649 = vrot.lane.b32.xlu0 %v9753_v53, %s9262_s30  ;;  %7649 = vmatprep.subr.bf16.mxu0 %v7648_v12  ;;  %v642_v11 = vsel %vm636_vm7, %v8366_v6, %v8367_v8 }
 0x123   : > { %7651 = vmatpush3.bf16.msra.mxu0 %v7648_v12  ;;  %v8375_v5 = vpop.permute.xlu1 %8374  ;;  %v641_v27 = vsel %vm636_vm7, %v8361_v24, %v8362_v14  ;;  %6689 = vmatprep.mubr.msk.f32.mxu1 %vm336_vm0, %v260_v13 }
 0x124   : > { %v8377_v7 = vunpack.i.h.bf16 %v8375_v5  ;;  %v8376_v28 = vunpack.i.l.bf16 %v8375_v5  ;;  %v8370_v29 = vpop.permute.xlu0 %8369  ;;  %v7428_v30 = vpack.c.bf16 %v642_v11, %v641_v27  ;;  %7078 = vmatprep.mubr.msk.f32.mxu0 %vm336_vm0, %v3135_v25  ;;  %6690 = vmatmul.mubr.msk.f32.gmra.mrb[6].mxu1 %vm336_vm0, %v261_v26  ;;  %v3327_v25 = vld [vmem:[#allocation2 + $0x408] sm:$0xff]  ;;  %v3328_v5 = vld [vmem:[#allocation2 + $0x410] sm:$0xff] }
 0x125   : > { %v8372_v32 = vunpack.i.h.bf16 %v8370_v29  ;;  %v8371_v34 = vunpack.i.l.bf16 %v8370_v29  ;;  %8664 = vrot.lane.b32.xlu1 %v9670_v33, %s9261_s8  ;;  %7079 = vmatmul.mubr.msk.f32.gmra.mrb[4].mxu0 %vm336_vm0, %v3136_v3  ;;  %v599_v3 = vld [vmem:[#allocation2 + $0x98] sm:$0xff] }
 0x126   : > { %8659 = vrot.lane.b32.xlu0 %v9660_v21, %s9261_s8  ;;  %7429 = vmatprep.subr.bf16.mxu1 %v7428_v30  ;;  %v3372_v36 = vsel %vm3366_vm8, %v8376_v28, %v8377_v7  ;;  %v600_v7 = vld [vmem:[#allocation2 + $0xa0] sm:$0xff] }
 0x127   : > { %7431 = vmatpush3.bf16.msra.mxu1 %v7428_v30  ;;  %v8385_v10 = vpop.permute.xlu1 %8384  ;;  %v3371_v38 = vsel %vm3366_vm8, %v8371_v34, %v8372_v32  ;;  %6708 = vmatprep.mubr.msk.f32.mxu1 %vm336_vm0, %v596_v31 }
 0x128   : > { %v8387_v39 = vunpack.i.h.bf16 %v8385_v10  ;;  %v8386_v40 = vunpack.i.l.bf16 %v8385_v10  ;;  %v8380_v41 = vpop.permute.xlu0 %8379  ;;  %v7652_v42 = vpack.c.bf16 %v3372_v36, %v3371_v38  ;;  %7081 = vmatprep.mubr.msk.f32.mxu0 %vm336_vm0, %v3137_v35  ;;  %v3329_v10 = vld [vmem:[#allocation2 + $0x418] sm:$0xff] }
 0x129   : > { %v8382_v44 = vunpack.i.h.bf16 %v8380_v41  ;;  %v8381_v45 = vunpack.i.l.bf16 %v8380_v41  ;;  %8674 = vrot.lane.b32.xlu1 %v9670_v33, %s9262_s30  ;;  %7082 = vmatmul.mubr.msk.f32.gmra.mrb[6].mxu0 %vm336_vm0, %v3138_v37  ;;  %v601_v37 = vld [vmem:[#allocation2 + $0xa8] sm:$0xff] }
 0x12a   : > { %8669 = vrot.lane.b32.xlu0 %v9660_v21, %s9262_s30  ;;  %7653 = vmatprep.subr.bf16.mxu0 %v7652_v42  ;;  %v644_v16 = vsel %vm636_vm7, %v8386_v40, %v8387_v39  ;;  %v602_v39 = vld [vmem:[#allocation2 + $0xb0] sm:$0xff] }
 0x12b   : > { %7655 = vmatpush3.bf16.msra.mxu0 %v7652_v42  ;;  %v8395_v50 = vpop.permute.xlu1 %8394  ;;  %v643_v51 = vsel %vm636_vm7, %v8381_v45, %v8382_v44  ;;  %7100 = vmatprep.mubr.msk.f32.mxu0 %vm336_vm0, %v3326_v43  ;;  %vm2001_vm7 = vcmask 973824  }
 0x12c   : > { %v8397_v52 = vunpack.i.h.bf16 %v8395_v50  ;;  %v8396_v54 = vunpack.i.l.bf16 %v8395_v50  ;;  %v8390_v55 = vpop.permute.xlu0 %8389  ;;  %v7432_v56 = vpack.c.bf16 %v644_v16, %v643_v51  ;;  %v3330_v16 = vld [vmem:[#allocation2 + $0x420] sm:$0xff] }
 0x12d   : > { %v8392_v57 = vunpack.i.h.bf16 %v8390_v55  ;;  %v8391_v58 = vunpack.i.l.bf16 %v8390_v55  ;;  %8684 = vrot.lane.b32.xlu1 %v9686_v46, %s9261_s8 }
 0x12e   : > { %8679 = vrot.lane.b32.xlu0 %v9695_v49, %s9261_s8  ;;  %7433 = vmatprep.subr.bf16.mxu1 %v7432_v56  ;;  %v3374_v59 = vsel %vm3366_vm8, %v8396_v54, %v8397_v52  ;;  %v603_v52 = vld [vmem:[#allocation2 + $0xb8] sm:$0xff]  ;;  %v3331_v54 = vld [vmem:[#allocation2 + $0x428] sm:$0xff] }
 0x12f   : > { %7435 = vmatpush3.bf16.msra.mxu1 %v7432_v56  ;;  %v8405_v60 = vpop.permute.xlu1 %8404  ;;  %v3373_v61 = vsel %vm3366_vm8, %v8391_v58, %v8392_v57  ;;  %v791_v56 = vld [vmem:[#allocation2 + $0xc0] sm:$0xff]  ;;  %vm4731_vm8 = vcmask 859136  }
 0x130   : > { %v8407_v62 = vunpack.i.h.bf16 %v8405_v60  ;;  %v8406_v63 = vunpack.i.l.bf16 %v8405_v60  ;;  %v8400_v22 = vpop.permute.xlu0 %8399  ;;  %v7656_v0 = vpack.c.bf16 %v3374_v59, %v3373_v61 }
 0x131   : > { %v8402_v1 = vunpack.i.h.bf16 %v8400_v22  ;;  %v8401_v4 = vunpack.i.l.bf16 %v8400_v22  ;;  %8694 = vrot.lane.b32.xlu1 %v9686_v46, %s9262_s30 }
 0x132   : > { %8689 = vrot.lane.b32.xlu0 %v9695_v49, %s9262_s30  ;;  %7657 = vmatprep.subr.bf16.mxu0 %v7656_v0  ;;  %v833_v8 = vsel %vm831_vm9, %v8406_v63, %v8407_v62  ;;  %v3332_v63 = vld [vmem:[#allocation2 + $0x430] sm:$0xff] }
 0x133   : > { %7659 = vmatpush3.bf16.msra.mxu0 %v7656_v0  ;;  %v8415_v6 = vpop.permute.xlu1 %8414  ;;  %v832_v9 = vsel %vm831_vm9, %v8401_v4, %v8402_v1  ;;  %6709 = vmatmul.mubr.msk.f32.vlgmr.msra.gmra.mrb[0].mxu1 %vm336_vm0, %v597_v23  ;;  %v3333_v23 = vld [vmem:[#allocation2 + $0x438] sm:$0xff]  ;;  %v3521_v4 = vld [vmem:[#allocation2 + $0x440] sm:$0xff] }
 0x134   : > { %v8417_v12 = vunpack.i.h.bf16 %v8415_v6  ;;  %v8416_v13 = vunpack.i.l.bf16 %v8415_v6  ;;  %v8410_v14 = vpop.permute.xlu0 %8409  ;;  %v7436_v24 = vpack.c.bf16 %v833_v8, %v832_v9  ;;  %6711 = vmatprep.mubr.msk.f32.mxu1 %vm336_vm0, %v598_v2 }
 0x135   : > { %v8412_v26 = vunpack.i.h.bf16 %v8410_v14  ;;  %v8411_v11 = vunpack.i.l.bf16 %v8410_v14  ;;  %8704 = vrot.lane.b32.xlu1 %v9718_v18, %s9261_s8 }
 0x136   : > { %8699 = vrot.lane.b32.xlu0 %v9726_v20, %s9261_s8  ;;  %7437 = vmatprep.subr.bf16.mxu1 %v7436_v24  ;;  %v3563_v27 = vsel %vm3561_vm10, %v8416_v13, %v8417_v12 }
 0x137   : > { %7439 = vmatpush3.bf16.msra.mxu1 %v7436_v24  ;;  %v8425_v28 = vpop.permute.xlu1 %8424  ;;  %v3562_v29 = vsel %vm3561_vm10, %v8411_v11, %v8412_v26  ;;  %7101 = vmatmul.mubr.msk.f32.vlgmr.msra.gmra.mrb[0].mxu0 %vm336_vm0, %v3327_v25 }
 0x138   : > { %v8427_v30 = vunpack.i.h.bf16 %v8425_v28  ;;  %v8426_v31 = vunpack.i.l.bf16 %v8425_v28  ;;  %v8420_v32 = vpop.permute.xlu0 %8419  ;;  %v7660_v34 = vpack.c.bf16 %v3563_v27, %v3562_v29  ;;  %6712 = vmatmul.mubr.msk.f32.gmra.mrb[2].mxu1 %vm336_vm0, %v599_v3  ;;  %7103 = vmatprep.mubr.msk.f32.mxu0 %vm336_vm0, %v3328_v5 }
 0x139   : > { %v8422_v35 = vunpack.i.h.bf16 %v8420_v32  ;;  %v8421_v36 = vunpack.i.l.bf16 %v8420_v32  ;;  %8714 = vrot.lane.b32.xlu1 %v9718_v18, %s9262_s30  ;;  %6714 = vmatprep.mubr.msk.f32.mxu1 %vm336_vm0, %v600_v7 }
 0x13a   : > { %8709 = vrot.lane.b32.xlu0 %v9726_v20, %s9262_s30  ;;  %7661 = vmatprep.subr.bf16.mxu0 %v7660_v34  ;;  %v835_v38 = vsel %vm831_vm9, %v8426_v31, %v8427_v30  ;;  %s7997_s30 = smul.u32 3072, %s9327_s22 }
 0x13b   : > { %7663 = vmatpush3.bf16.msra.mxu0 %v7660_v34  ;;  %v8435_v40 = vpop.permute.xlu1 %8434  ;;  %v834_v41 = vsel %vm831_vm9, %v8421_v36, %v8422_v35 }
 0x13c   : > { %v8437_v42 = vunpack.i.h.bf16 %v8435_v40  ;;  %v8436_v43 = vunpack.i.l.bf16 %v8435_v40  ;;  %v8430_v44 = vpop.permute.xlu0 %8429  ;;  %v7440_v45 = vpack.c.bf16 %v835_v38, %v834_v41  ;;  %6715 = vmatmul.mubr.msk.f32.gmra.mrb[4].mxu1 %vm336_vm0, %v601_v37  ;;  %7104 = vmatmul.mubr.msk.f32.gmra.mrb[2].mxu0 %vm336_vm0, %v3329_v10 }
 0x13d   : > { %v8432_v50 = vunpack.i.h.bf16 %v8430_v44  ;;  %v8431_v51 = vunpack.i.l.bf16 %v8430_v44  ;;  %8724 = vrot.lane.b32.xlu1 %v9747_v47, %s9263_s12  ;;  %6717 = vmatprep.mubr.msk.f32.mxu1 %vm336_vm0, %v602_v39 }
 0x13e   : > { %8719 = vrot.lane.b32.xlu0 %v9753_v53, %s9263_s12  ;;  %7441 = vmatprep.subr.bf16.mxu1 %v7440_v45  ;;  %v3565_v55 = vsel %vm3561_vm10, %v8436_v43, %v8437_v42 }
 0x13f   : > { %7443 = vmatpush3.bf16.msra.mxu1 %v7440_v45  ;;  %v8445_v57 = vpop.permute.xlu1 %8444  ;;  %v3564_v58 = vsel %vm3561_vm10, %v8431_v51, %v8432_v50  ;;  %7106 = vmatprep.mubr.msk.f32.mxu0 %vm336_vm0, %v3330_v16  ;;  %v792_v16 = vld [vmem:[#allocation2 + $0xc8] sm:$0xff] }
 0x140   : > { %v8447_v59 = vunpack.i.h.bf16 %v8445_v57  ;;  %v8446_v60 = vunpack.i.l.bf16 %v8445_v57  ;;  %v8440_v61 = vpop.permute.xlu0 %8439  ;;  %v7664_v62 = vpack.c.bf16 %v3565_v55, %v3564_v58  ;;  %6718 = vmatmul.mubr.msk.f32.gmra.mrb[6].mxu1 %vm336_vm0, %v603_v52  ;;  %7107 = vmatmul.mubr.msk.f32.gmra.mrb[4].mxu0 %vm336_vm0, %v3331_v54  ;;  %v793_v52 = vld [vmem:[#allocation2 + $0xd0] sm:$0xff] }
 0x141   : > { %v8442_v22 = vunpack.i.h.bf16 %v8440_v61  ;;  %v8441_v0 = vunpack.i.l.bf16 %v8440_v61  ;;  %8734 = vrot.lane.b32.xlu1 %v9747_v47, %s9264_s13  ;;  %6736 = vmatprep.mubr.msk.f32.mxu1 %vm336_vm0, %v791_v56  ;;  %v3522_v61 = vld [vmem:[#allocation2 + $0x448] sm:$0xff] }
 0x142   : > { %8729 = vrot.lane.b32.xlu0 %v9753_v53, %s9264_s13  ;;  %7665 = vmatprep.subr.bf16.mxu0 %v7664_v62  ;;  %v837_v1 = vsel %vm831_vm9, %v8446_v60, %v8447_v59 }
 0x143   : > { %7667 = vmatpush3.bf16.msra.mxu0 %v7664_v62  ;;  %v8455_v2 = vpop.permute.xlu1 %8454  ;;  %v836_v8 = vsel %vm831_vm9, %v8441_v0, %v8442_v22  ;;  %7109 = vmatprep.mubr.msk.f32.mxu0 %vm336_vm0, %v3332_v63  ;;  %v794_v22 = vld [vmem:[#allocation2 + $0xd8] sm:$0xff]  ;;  %v3523_v0 = vld [vmem:[#allocation2 + $0x450] sm:$0xff] }
 0x144   : > { %v8457_v6 = vunpack.i.h.bf16 %v8455_v2  ;;  %v8456_v9 = vunpack.i.l.bf16 %v8455_v2  ;;  %v8450_v12 = vpop.permute.xlu0 %8449  ;;  %v7444_v13 = vpack.c.bf16 %v837_v1, %v836_v8  ;;  %7110 = vmatmul.mubr.msk.f32.gmra.mrb[6].mxu0 %vm336_vm0, %v3333_v23  ;;  %v795_v1 = vld [vmem:[#allocation2 + $0xe0] sm:$0xff] }
 0x145   : > { %v8452_v14 = vunpack.i.h.bf16 %v8450_v12  ;;  %v8451_v24 = vunpack.i.l.bf16 %v8450_v12  ;;  %8744 = vrot.lane.b32.xlu1 %v9670_v33, %s9263_s12  ;;  %7128 = vmatprep.mubr.msk.f32.mxu0 %vm336_vm0, %v3521_v4 }
 0x146   : > { %8739 = vrot.lane.b32.xlu0 %v9660_v21, %s9263_s12  ;;  %7445 = vmatprep.subr.bf16.mxu1 %v7444_v13  ;;  %v3567_v25 = vsel %vm3561_vm10, %v8456_v9, %v8457_v6 }
 0x147   : > { %7447 = vmatpush3.bf16.msra.mxu1 %v7444_v13  ;;  %v8465_v26 = vpop.permute.xlu1 %8464  ;;  %v3566_v11 = vsel %vm3561_vm10, %v8451_v24, %v8452_v14  ;;  %v796_v24 = vld [vmem:[#allocation2 + $0xe8] sm:$0xff] }
 0x148   : > { %v8467_v3 = vunpack.i.h.bf16 %v8465_v26  ;;  %v8466_v5 = vunpack.i.l.bf16 %v8465_v26  ;;  %v8460_v27 = vpop.permute.xlu0 %8459  ;;  %v7668_v7 = vpack.c.bf16 %v3567_v25, %v3566_v11  ;;  %v3524_v25 = vld [vmem:[#allocation2 + $0x458] sm:$0xff]  ;;  %v797_v11 = vld [vmem:[#allocation2 + $0xf0] sm:$0xff] }
 0x149   : > { %v8462_v28 = vunpack.i.h.bf16 %v8460_v27  ;;  %v8461_v29 = vunpack.i.l.bf16 %v8460_v27  ;;  %8754 = vrot.lane.b32.xlu1 %v9670_v33, %s9264_s13 }
 0x14a   : > { %8749 = vrot.lane.b32.xlu0 %v9660_v21, %s9264_s13  ;;  %7669 = vmatprep.subr.bf16.mxu0 %v7668_v7  ;;  %v839_v30 = vsel %vm831_vm9, %v8466_v5, %v8467_v3 }
 0x14b   : > { %7671 = vmatpush3.bf16.msra.mxu0 %v7668_v7  ;;  %v8475_v31 = vpop.permute.xlu1 %8474  ;;  %v838_v32 = vsel %vm831_vm9, %v8461_v29, %v8462_v28  ;;  %vm2196_vm9 = vcmask 965632  }
 0x14c   : > { %v8477_v34 = vunpack.i.h.bf16 %v8475_v31  ;;  %v8476_v35 = vunpack.i.l.bf16 %v8475_v31  ;;  %v8470_v36 = vpop.permute.xlu0 %8469  ;;  %v7448_v37 = vpack.c.bf16 %v839_v30, %v838_v32  ;;  %v3525_v30 = vld [vmem:[#allocation2 + $0x460] sm:$0xff] }
 0x14d   : > { %v8472_v10 = vunpack.i.h.bf16 %v8470_v36  ;;  %v8471_v38 = vunpack.i.l.bf16 %v8470_v36  ;;  %8764 = vrot.lane.b32.xlu1 %v9686_v46, %s9263_s12  ;;  %v986_v36 = vld [vmem:[#allocation2 + $0x100] sm:$0xff] }
 0x14e   : > { %8759 = vrot.lane.b32.xlu0 %v9695_v49, %s9263_s12  ;;  %7449 = vmatprep.subr.bf16.mxu1 %v7448_v37  ;;  %v3569_v39 = vsel %vm3561_vm10, %v8476_v35, %v8477_v34  ;;  %v3526_v34 = vld [vmem:[#allocation2 + $0x468] sm:$0xff] }
 0x14f   : > { %7451 = vmatpush3.bf16.msra.mxu1 %v7448_v37  ;;  %v8485_v40 = vpop.permute.xlu1 %8484  ;;  %v3568_v41 = vsel %vm3561_vm10, %v8471_v38, %v8472_v10  ;;  %vm4926_vm10 = vcmask 850944  }
 0x150   : > { %v8487_v42 = vunpack.i.h.bf16 %v8485_v40  ;;  %v8486_v43 = vunpack.i.l.bf16 %v8485_v40  ;;  %v8480_v44 = vpop.permute.xlu0 %8479  ;;  %v7672_v45 = vpack.c.bf16 %v3569_v39, %v3568_v41 }
 0x151   : > { %v8482_v50 = vunpack.i.h.bf16 %v8480_v44  ;;  %v8481_v51 = vunpack.i.l.bf16 %v8480_v44  ;;  %8774 = vrot.lane.b32.xlu1 %v9686_v46, %s9264_s13 }
 0x152   : > { %8769 = vrot.lane.b32.xlu0 %v9695_v49, %s9264_s13  ;;  %7673 = vmatprep.subr.bf16.mxu0 %v7672_v45  ;;  %v1028_v54 = vsel %vm1026_vm11, %v8486_v43, %v8487_v42  ;;  %v3527_v42 = vld [vmem:[#allocation2 + $0x470] sm:$0xff] }
 0x153   : > { %7675 = vmatpush3.bf16.msra.mxu0 %v7672_v45  ;;  %v8495_v55 = vpop.permute.xlu1 %8494  ;;  %v1027_v56 = vsel %vm1026_vm11, %v8481_v51, %v8482_v50  ;;  %6737 = vmatmul.mubr.msk.f32.vlgmr.msra.gmra.mrb[0].mxu1 %vm336_vm0, %v792_v16  ;;  %v3528_v45 = vld [vmem:[#allocation2 + $0x478] sm:$0xff]  ;;  %v3716_v50 = vld [vmem:[#allocation2 + $0x480] sm:$0xff] }
 0x154   : > { %v8497_v57 = vunpack.i.h.bf16 %v8495_v55  ;;  %v8496_v58 = vunpack.i.l.bf16 %v8495_v55  ;;  %v8490_v59 = vpop.permute.xlu0 %8489  ;;  %v7452_v60 = vpack.c.bf16 %v1028_v54, %v1027_v56  ;;  %6739 = vmatprep.mubr.msk.f32.mxu1 %vm336_vm0, %v793_v52 }
 0x155   : > { %v8492_v62 = vunpack.i.h.bf16 %v8490_v59  ;;  %v8491_v63 = vunpack.i.l.bf16 %v8490_v59  ;;  %8784 = vrot.lane.b32.xlu1 %v9718_v18, %s9263_s12 }
 0x156   : > { %8779 = vrot.lane.b32.xlu0 %v9726_v20, %s9263_s12  ;;  %7453 = vmatprep.subr.bf16.mxu1 %v7452_v60  ;;  %v3758_v23 = vsel %vm3756_vm12, %v8496_v58, %v8497_v57 }
 0x157   : > { %7455 = vmatpush3.bf16.msra.mxu1 %v7452_v60  ;;  %v8505_v4 = vpop.permute.xlu1 %8504  ;;  %v3757_v2 = vsel %vm3756_vm12, %v8491_v63, %v8492_v62  ;;  %7129 = vmatmul.mubr.msk.f32.vlgmr.msra.gmra.mrb[0].mxu0 %vm336_vm0, %v3522_v61  ;;  %v9116_v60 = vld [vmem:[%s9394_s11 + $0x20] sm:$0xff]  ;;  %v9117_v61 = vld [vmem:[%s9394_s11 + $0x28] sm:$0xff] }
 0x158   : > { %v8507_v8 = vunpack.i.h.bf16 %v8505_v4  ;;  %v8506_v6 = vunpack.i.l.bf16 %v8505_v4  ;;  %v8500_v9 = vpop.permute.xlu0 %8499  ;;  %v7676_v12 = vpack.c.bf16 %v3758_v23, %v3757_v2  ;;  %6740 = vmatmul.mubr.msk.f32.gmra.mrb[2].mxu1 %vm336_vm0, %v794_v22  ;;  %7131 = vmatprep.mubr.msk.f32.mxu0 %vm336_vm0, %v3523_v0  ;;  %v9918_v62 = vpack.i.bf16 %v9117_v61, %v9116_v60  ;;  %v991_v60 = vld [vmem:[#allocation2 + $0x128] sm:$0xff]  ;;  %v3719_v61 = vld [vmem:[#allocation2 + $0x498] sm:$0xff] }
 0x159   : > { %v8502_v13 = vunpack.i.h.bf16 %v8500_v9  ;;  %v8501_v14 = vunpack.i.l.bf16 %v8500_v9  ;;  %8794 = vrot.lane.b32.xlu1 %v9718_v18, %s9264_s13  ;;  %6742 = vmatprep.mubr.msk.f32.mxu1 %vm336_vm0, %v795_v1 }
 0x15a   : > { %8789 = vrot.lane.b32.xlu0 %v9726_v20, %s9264_s13  ;;  %7677 = vmatprep.subr.bf16.mxu0 %v7676_v12  ;;  %v1030_v26 = vsel %vm1026_vm11, %v8506_v6, %v8507_v8  ;;  %v798_v20 = vld [vmem:[#allocation2 + $0xf8] sm:$0xff] }
 0x15b   : > { %7679 = vmatpush3.bf16.msra.mxu0 %v7676_v12  ;;  %v8515_v3 = vpop.permute.xlu1 %8514  ;;  %v1029_v5 = vsel %vm1026_vm11, %v8501_v14, %v8502_v13 }
 0x15c   : > { %v8517_v27 = vunpack.i.h.bf16 %v8515_v3  ;;  %v8516_v7 = vunpack.i.l.bf16 %v8515_v3  ;;  %v8510_v28 = vpop.permute.xlu0 %8509  ;;  %v7456_v29 = vpack.c.bf16 %v1030_v26, %v1029_v5  ;;  %6743 = vmatmul.mubr.msk.f32.gmra.mrb[4].mxu1 %vm336_vm0, %v796_v24  ;;  %7132 = vmatmul.mubr.msk.f32.gmra.mrb[2].mxu0 %vm336_vm0, %v3524_v25  ;;  %v9938_v5 = vld [vmem:[%s9394_s11 + $0x40] sm:$0xff] }
 0x15d   : > { %v8512_v31 = vunpack.i.h.bf16 %v8510_v28  ;;  %v8511_v32 = vunpack.i.l.bf16 %v8510_v28  ;;  %8804 = vrot.lane.b32.xlu1 %v9747_v47, %s9265_s14  ;;  %6745 = vmatprep.mubr.msk.f32.mxu1 %vm336_vm0, %v797_v11 }
 0x15e   : > { %8799 = vrot.lane.b32.xlu0 %v9753_v53, %s9265_s14  ;;  %7457 = vmatprep.subr.bf16.mxu1 %v7456_v29  ;;  %v3760_v35 = vsel %vm3756_vm12, %v8516_v7, %v8517_v27  ;;  %v8848_v27 = vpack.i.bf16 %v9692_v48, %v9938_v5  ;;  %v9947_v48 = vld [vmem:[%s9394_s11 + $0x60] sm:$0xff] }
 0x15f   : > { %7459 = vmatpush3.bf16.msra.mxu1 %v7456_v29  ;;  %v8525_v37 = vpop.permute.xlu1 %8524  ;;  %v3759_v10 = vsel %vm3756_vm12, %v8511_v32, %v8512_v31  ;;  %7134 = vmatprep.mubr.msk.f32.mxu0 %vm336_vm0, %v3525_v30  ;;  %v987_v32 = vld [vmem:[#allocation2 + $0x108] sm:$0xff] }
 0x160   : > { %v8527_v38 = vunpack.i.h.bf16 %v8525_v37  ;;  %v8526_v39 = vunpack.i.l.bf16 %v8525_v37  ;;  %v8520_v40 = vpop.permute.xlu0 %8519  ;;  %v7680_v41 = vpack.c.bf16 %v3760_v35, %v3759_v10  ;;  %6746 = vmatmul.mubr.msk.f32.gmra.mrb[6].mxu1 %vm336_vm0, %v798_v20  ;;  %7135 = vmatmul.mubr.msk.f32.gmra.mrb[4].mxu0 %vm336_vm0, %v3526_v34  ;;  %v988_v34 = vld [vmem:[#allocation2 + $0x110] sm:$0xff]  ;;  %v8858_v35 = vpack.i.bf16 %v9723_v19, %v9947_v48 }
 0x161   : > { %v8522_v43 = vunpack.i.h.bf16 %v8520_v40  ;;  %v8521_v44 = vunpack.i.l.bf16 %v8520_v40  ;;  %8814 = vrot.lane.b32.xlu1 %v9747_v47, %s9266_s15  ;;  %6764 = vmatprep.mubr.msk.f32.mxu1 %vm336_vm0, %v986_v36  ;;  %v9958_v19 = vld [vmem:[%s9394_s11 + $0x70] sm:$0xff] }
 0x162   : > { %8809 = vrot.lane.b32.xlu0 %v9753_v53, %s9266_s15  ;;  %7681 = vmatprep.subr.bf16.mxu0 %v7680_v41  ;;  %v1032_v16 = vsel %vm1026_vm11, %v8526_v39, %v8527_v38 }
 0x163   : > { %7683 = vmatpush3.bf16.msra.mxu0 %v7680_v41  ;;  %v8535_v51 = vpop.permute.xlu1 %8534  ;;  %v1031_v52 = vsel %vm1026_vm11, %v8521_v44, %v8522_v43  ;;  %7137 = vmatprep.mubr.msk.f32.mxu0 %vm336_vm0, %v3527_v42  ;;  %v3717_v42 = vld [vmem:[#allocation2 + $0x488] sm:$0xff] }
 0x164   : > { %v8537_v54 = vunpack.i.h.bf16 %v8535_v51  ;;  %v8536_v55 = vunpack.i.l.bf16 %v8535_v51  ;;  %v8530_v56 = vpop.permute.xlu0 %8529  ;;  %v7460_v57 = vpack.c.bf16 %v1032_v16, %v1031_v52  ;;  %7138 = vmatmul.mubr.msk.f32.gmra.mrb[6].mxu0 %vm336_vm0, %v3528_v45  ;;  %v8873_v45 = vpack.i.bf16 %v9715_v15, %v9958_v19  ;;  %v989_v16 = vld [vmem:[#allocation2 + $0x118] sm:$0xff]  ;;  %v990_v52 = vld [vmem:[#allocation2 + $0x120] sm:$0xff] }
 0x165   : > { %v8532_v58 = vunpack.i.h.bf16 %v8530_v56  ;;  %v8531_v59 = vunpack.i.l.bf16 %v8530_v56  ;;  %8824 = vrot.lane.b32.xlu1 %v9670_v33, %s9265_s14  ;;  %7156 = vmatprep.mubr.msk.f32.mxu0 %vm336_vm0, %v3716_v50  ;;  %v3718_v50 = vld [vmem:[#allocation2 + $0x490] sm:$0xff] }
 0x166   : > { %8819 = vrot.lane.b32.xlu0 %v9660_v21, %s9265_s14  ;;  %7461 = vmatprep.subr.bf16.mxu1 %v7460_v57  ;;  %v3762_v63 = vsel %vm3756_vm12, %v8536_v55, %v8537_v54 }
 0x167   : > { %7463 = vmatpush3.bf16.msra.mxu1 %v7460_v57  ;;  %v8545_v22 = vpop.permute.xlu1 %8544  ;;  %v3761_v0 = vsel %vm3756_vm12, %v8531_v59, %v8532_v58 }
 0x168   : > { %v8547_v23 = vunpack.i.h.bf16 %v8545_v22  ;;  %v8546_v1 = vunpack.i.l.bf16 %v8545_v22  ;;  %v8540_v4 = vpop.permute.xlu0 %8539  ;;  %v7684_v2 = vpack.c.bf16 %v3762_v63, %v3761_v0  ;;  %v992_v22 = vld [vmem:[#allocation2 + $0x130] sm:$0xff] }
 0x169   : > { %v8542_v8 = vunpack.i.h.bf16 %v8540_v4  ;;  %v8541_v6 = vunpack.i.l.bf16 %v8540_v4  ;;  %8834 = vrot.lane.b32.xlu1 %v9670_v33, %s9266_s15  ;;  %v9931_v33 = vld [vmem:[%s9394_s11 + $0x50] sm:$0xff] }
 0x16a   : > { %8829 = vrot.lane.b32.xlu0 %v9918_v62, %s9266_s15  ;;  %7685 = vmatprep.subr.bf16.mxu0 %v7684_v2  ;;  %v1034_v21 = vsel %vm1026_vm11, %v8546_v1, %v8547_v23  ;;  %v8853_v3 = vpack.i.bf16 %v9683_v17, %v9931_v33 }
 0x16b   : > { %7687 = vmatpush3.bf16.msra.mxu0 %v7684_v2  ;;  %v8555_v9 = vpop.permute.xlu1 %8554  ;;  %v1033_v12 = vsel %vm1026_vm11, %v8541_v6, %v8542_v8  ;;  %v3720_v6 = vld [vmem:[#allocation2 + $0x4a0] sm:$0xff]  ;;  %vm5224_vm11 = vcmask 1047648  }
 0x16c   : > { %v8557_v13 = vunpack.i.h.bf16 %v8555_v9  ;;  %v8556_v14 = vunpack.i.l.bf16 %v8555_v9  ;;  %v8550_v24 = vpop.permute.xlu0 %8549  ;;  %v7464_v25 = vpack.c.bf16 %v1034_v21, %v1033_v12  ;;  %v993_v12 = vld [vmem:[#allocation2 + $0x138] sm:$0xff] }
 0x16d   : > { %v8552_v26 = vunpack.i.h.bf16 %v8550_v24  ;;  %v8551_v11 = vunpack.i.l.bf16 %v8550_v24  ;;  %8844 = vrot.lane.b32.xlu1 %v9686_v46, %s9265_s14  ;;  %v1181_v24 = vld [vmem:[#allocation2 + $0x140] sm:$0xff] }
 0x16e   : > { %8839 = vrot.lane.b32.xlu0 %v9695_v49, %s9265_s14  ;;  %7465 = vmatprep.subr.bf16.mxu1 %v7464_v25  ;;  %v3764_v7 = vsel %vm3756_vm12, %v8556_v14, %v8557_v13  ;;  %v3721_v13 = vld [vmem:[#allocation2 + $0x4a8] sm:$0xff] }
 0x16f   : > { %7467 = vmatpush3.bf16.msra.mxu1 %v7464_v25  ;;  %v8565_v28 = vpop.permute.xlu1 %8564  ;;  %v3763_v46 = vsel %vm3756_vm12, %v8551_v11, %v8552_v26  ;;  %vm5246_vm12 = vcmask 97280  }
 0x170   : > { %v8567_v29 = vunpack.i.h.bf16 %v8565_v28  ;;  %v8566_v30 = vunpack.i.l.bf16 %v8565_v28  ;;  %v8560_v17 = vpop.permute.xlu0 %8559  ;;  %v7688_v31 = vpack.c.bf16 %v3764_v7, %v3763_v46  ;;  %v3722_v28 = vld [vmem:[#allocation2 + $0x4b0] sm:$0xff] }
 0x171   : > { %v8562_v49 = vunpack.i.h.bf16 %v8560_v17  ;;  %v8561_v20 = vunpack.i.l.bf16 %v8560_v17  ;;  %8854 = vrot.lane.b32.xlu1 %v8853_v3, %s9266_s15  ;;  %v9123_v17 = vld [vmem:[%s9394_s11 + $0x38] sm:$0xff] }
 0x172   : > { %8849 = vrot.lane.b32.xlu0 %v8848_v27, %s9266_s15  ;;  %7689 = vmatprep.subr.bf16.mxu0 %v7688_v31  ;;  %v1223_v36 = vsel %vm1221_vm13, %v8566_v30, %v8567_v29  ;;  %v9122_v30 = vld [vmem:[%s9394_s11 + $0x30] sm:$0xff] }
 0x173   : > { %7691 = vmatpush3.bf16.msra.mxu0 %v7688_v31  ;;  %v8575_v37 = vpop.permute.xlu1 %8574  ;;  %v1222_v10 = vsel %vm1221_vm13, %v8561_v20, %v8562_v49  ;;  %6765 = vmatmul.mubr.msk.f32.vlgmr.msra.gmra.mrb[0].mxu1 %vm336_vm0, %v987_v32  ;;  %v9989_v31 = vpack.i.bf16 %v9123_v17, %v9122_v30  ;;  %v3723_v32 = vld [vmem:[#allocation2 + $0x4b8] sm:$0xff]  ;;  %v3911_v20 = vld [vmem:[#allocation2 + $0x4c0] sm:$0xff] }
 0x174   : > { %v8577_v38 = vunpack.i.h.bf16 %v8575_v37  ;;  %v8576_v39 = vunpack.i.l.bf16 %v8575_v37  ;;  %v8570_v40 = vpop.permute.xlu0 %8569  ;;  %v7468_v41 = vpack.c.bf16 %v1223_v36, %v1222_v10  ;;  %6767 = vmatprep.mubr.msk.f32.mxu1 %vm336_vm0, %v988_v34  ;;  %v1185_v17 = vld [vmem:[#allocation2 + $0x160] sm:$0xff] }
 0x175   : > { %v8572_v43 = vunpack.i.h.bf16 %v8570_v40  ;;  %v8571_v44 = vunpack.i.l.bf16 %v8570_v40  ;;  %8864 = vrot.lane.b32.xlu1 %v9718_v18, %s9265_s14 }
 0x176   : > { %8859 = vrot.lane.b32.xlu0 %v8858_v35, %s9265_s14  ;;  %7469 = vmatprep.subr.bf16.mxu1 %v7468_v41  ;;  %v3953_v51 = vsel %vm3951_vm14, %v8576_v39, %v8577_v38 }
 0x177   : > { %7471 = vmatpush3.bf16.msra.mxu1 %v7468_v41  ;;  %v8585_v54 = vpop.permute.xlu1 %8584  ;;  %v3952_v55 = vsel %vm3951_vm14, %v8571_v44, %v8572_v43  ;;  %7157 = vmatmul.mubr.msk.f32.vlgmr.msra.gmra.mrb[0].mxu0 %vm336_vm0, %v3717_v42 }
 0x178   : > { %v8587_v18 = vunpack.i.h.bf16 %v8585_v54  ;;  %v8586_v56 = vunpack.i.l.bf16 %v8585_v54  ;;  %v8580_v57 = vpop.permute.xlu0 %8579  ;;  %v7692_v58 = vpack.c.bf16 %v3953_v51, %v3952_v55  ;;  %6768 = vmatmul.mubr.msk.f32.gmra.mrb[2].mxu1 %vm336_vm0, %v989_v16  ;;  %7159 = vmatprep.mubr.msk.f32.mxu0 %vm336_vm0, %v3718_v50  ;;  %v9124_v51 = vld [vmem:[%s9394_s11 + $0x58] sm:$0xff]  ;;  %v9125_v54 = vld [vmem:[%s9394_s11 + $0x48] sm:$0xff] }
 0x179   : > { %v8582_v15 = vunpack.i.h.bf16 %v8580_v57  ;;  %v8581_v59 = vunpack.i.l.bf16 %v8580_v57  ;;  %8874 = vrot.lane.b32.xlu1 %v8873_v45, %s9266_s15  ;;  %6770 = vmatprep.mubr.msk.f32.mxu1 %vm336_vm0, %v990_v52  ;;  %v10009_v52 = vpack.i.bf16 %v9124_v51, %v9931_v33  ;;  %v10015_v55 = vpack.i.bf16 %v9125_v54, %v9938_v5 }
 0x17a   : > { %8869 = vrot.lane.b32.xlu0 %v8858_v35, %s9266_s15  ;;  %7693 = vmatprep.subr.bf16.mxu0 %v7692_v58  ;;  %v1225_v63 = vsel %vm1221_vm13, %v8586_v56, %v8587_v18  ;;  %s10665_s15 = scalar_lea.hbm %s10717_s5, %s7997_s30 }
 0x17b   : > { %7695 = vmatpush3.bf16.msra.mxu0 %v7692_v58  ;;  %v8595_v0 = vpop.permute.xlu1 %8594  ;;  %v1224_v23 = vsel %vm1221_vm13, %v8581_v59, %v8582_v15 }
 0x17c   : > { %v8597_v1 = vunpack.i.h.bf16 %v8595_v0  ;;  %v8596_v4 = vunpack.i.l.bf16 %v8595_v0  ;;  %v8590_v2 = vpop.permute.xlu0 %8589  ;;  %v7472_v8 = vpack.c.bf16 %v1225_v63, %v1224_v23  ;;  %6771 = vmatmul.mubr.msk.f32.gmra.mrb[4].mxu1 %vm336_vm0, %v991_v60  ;;  %7160 = vmatmul.mubr.msk.f32.gmra.mrb[2].mxu0 %vm336_vm0, %v3719_v61 }
 0x17d   : > { %v8592_v21 = vunpack.i.h.bf16 %v8590_v2  ;;  %v8591_v9 = vunpack.i.l.bf16 %v8590_v2  ;;  %8884 = vrot.lane.b32.xlu1 %v9747_v47, %s9267_s16  ;;  %6773 = vmatprep.mubr.msk.f32.mxu1 %vm336_vm0, %v992_v22  ;;  %v1182_v2 = vld [vmem:[#allocation2 + $0x148] sm:$0xff] }
 0x17e   : > { %8879 = vrot.lane.b32.xlu0 %v9753_v53, %s9267_s16  ;;  %7473 = vmatprep.subr.bf16.mxu1 %v7472_v8  ;;  %v3955_v14 = vsel %vm3951_vm14, %v8596_v4, %v8597_v1 }
 0x17f   : > { %7475 = vmatpush3.bf16.msra.mxu1 %v7472_v8  ;;  %v8605_v25 = vpop.permute.xlu1 %8604  ;;  %v3954_v26 = vsel %vm3951_vm14, %v8591_v9, %v8592_v21  ;;  %7162 = vmatprep.mubr.msk.f32.mxu0 %vm336_vm0, %v3720_v6  ;;  %v9126_v21 = vld [vmem:[%s9394_s11 + $0x78] sm:$0xff] }
 0x180   : > { %v8607_v11 = vunpack.i.h.bf16 %v8605_v25  ;;  %v8606_v3 = vunpack.i.l.bf16 %v8605_v25  ;;  %v8600_v27 = vpop.permute.xlu0 %8599  ;;  %v7696_v7 = vpack.c.bf16 %v3955_v14, %v3954_v26  ;;  %6774 = vmatmul.mubr.msk.f32.gmra.mrb[6].mxu1 %vm336_vm0, %v993_v12  ;;  %7163 = vmatmul.mubr.msk.f32.gmra.mrb[4].mxu0 %vm336_vm0, %v3721_v13  ;;  %v10029_v9 = vpack.i.bf16 %v9126_v21, %v9958_v19  ;;  %v1183_v12 = vld [vmem:[#allocation2 + $0x150] sm:$0xff]  ;;  %v9127_v13 = vld [vmem:[%s9394_s11 + $0x68] sm:$0xff] }
 0x181   : > { %v8602_v46 = vunpack.i.h.bf16 %v8600_v27  ;;  %v8601_v29 = vunpack.i.l.bf16 %v8600_v27  ;;  %8894 = vrot.lane.b32.xlu1 %v9747_v47, %s9268_s17  ;;  %6792 = vmatprep.mubr.msk.f32.mxu1 %vm336_vm0, %v1181_v24  ;;  %v10035_v14 = vpack.i.bf16 %v9127_v13, %v9947_v48  ;;  %v1184_v48 = vld [vmem:[#allocation2 + $0x158] sm:$0xff] }
 0x182   : > { %8889 = vrot.lane.b32.xlu0 %v9753_v53, %s9268_s17  ;;  %7697 = vmatprep.subr.bf16.mxu0 %v7696_v7  ;;  %v1227_v49 = vsel %vm1221_vm13, %v8606_v3, %v8607_v11 }
 0x183   : > { %7699 = vmatpush3.bf16.msra.mxu0 %v7696_v7  ;;  %v8615_v34 = vpop.permute.xlu1 %8614  ;;  %v1226_v35 = vsel %vm1221_vm13, %v8601_v29, %v8602_v46  ;;  %7165 = vmatprep.mubr.msk.f32.mxu0 %vm336_vm0, %v3722_v28  ;;  %v3912_v7 = vld [vmem:[#allocation2 + $0x4c8] sm:$0xff]  ;;  %v3913_v29 = vld [vmem:[#allocation2 + $0x4d0] sm:$0xff] }
 0x184   : > { %v8617_v47 = vunpack.i.h.bf16 %v8615_v34  ;;  %v8616_v36 = vunpack.i.l.bf16 %v8615_v34  ;;  %v8610_v37 = vpop.permute.xlu0 %8609  ;;  %v7476_v10 = vpack.c.bf16 %v1227_v49, %v1226_v35  ;;  %7166 = vmatmul.mubr.msk.f32.gmra.mrb[6].mxu0 %vm336_vm0, %v3723_v32 }
 0x185   : > { %v8612_v38 = vunpack.i.h.bf16 %v8610_v37  ;;  %v8611_v39 = vunpack.i.l.bf16 %v8610_v37  ;;  %8904 = vrot.lane.b32.xlu1 %v9989_v31, %s9267_s16  ;;  %7184 = vmatprep.mubr.msk.f32.mxu0 %vm336_vm0, %v3911_v20 }
 0x186   : > { %8899 = vrot.lane.b32.xlu0 %v9918_v62, %s9267_s16  ;;  %7477 = vmatprep.subr.bf16.mxu1 %v7476_v10  ;;  %v3957_v53 = vsel %vm3951_vm14, %v8616_v36, %v8617_v47 }
 0x187   : > { %7479 = vmatpush3.bf16.msra.mxu1 %v7476_v10  ;;  %v8625_v40 = vpop.permute.xlu1 %8624  ;;  %v3956_v41 = vsel %vm3951_vm14, %v8611_v39, %v8612_v38  ;;  %v9128_v10 = vld [vmem:[%s9394_s11 + $0x10] sm:$0xff]  ;;  %v9129_v38 = vld [vmem:[%s9394_s11 + $0x18] sm:$0xff] }
 0x188   : > { %v8627_v42 = vunpack.i.h.bf16 %v8625_v40  ;;  %v8626_v43 = vunpack.i.l.bf16 %v8625_v40  ;;  %v8620_v44 = vpop.permute.xlu0 %8619  ;;  %v7700_v45 = vpack.c.bf16 %v3957_v53, %v3956_v41  ;;  %v8963_v39 = vpack.i.bf16 %v9129_v38, %v9128_v10  ;;  %v1186_v53 = vld [vmem:[#allocation2 + $0x168] sm:$0xff]  ;;  %v3914_v40 = vld [vmem:[#allocation2 + $0x4d8] sm:$0xff]  ;;  %v9130_v41 = vld [vmem:[%s9394_s11] sm:$0xff] }
 0x189   : > { %v8622_v16 = vunpack.i.h.bf16 %v8620_v44  ;;  %v8621_v50 = vunpack.i.l.bf16 %v8620_v44  ;;  %8914 = vrot.lane.b32.xlu1 %v9989_v31, %s9268_s17 }
 0x18a   : > { %8909 = vrot.lane.b32.xlu0 %v9918_v62, %s9268_s17  ;;  %7701 = vmatprep.subr.bf16.mxu0 %v7700_v45  ;;  %v1229_v18 = vsel %vm1221_vm13, %v8626_v43, %v8627_v42  ;;  %v9131_v42 = vld [vmem:[%s9394_s11 + $0x8] sm:$0xff] }
 0x18b   : > { %7703 = vmatpush3.bf16.msra.mxu0 %v7700_v45  ;;  %v8635_v56 = vpop.permute.xlu1 %8634  ;;  %v1228_v57 = vsel %vm1221_vm13, %v8621_v50, %v8622_v16  ;;  %v8958_v43 = vpack.i.bf16 %v9131_v42, %v9130_v41  ;;  %v1187_v45 = vld [vmem:[#allocation2 + $0x170] sm:$0xff] }
 0x18c   : > { %v8637_v58 = vunpack.i.h.bf16 %v8635_v56  ;;  %v8636_v15 = vunpack.i.l.bf16 %v8635_v56  ;;  %v8630_v59 = vpop.permute.xlu0 %8629  ;;  %v7480_v60 = vpack.c.bf16 %v1229_v18, %v1228_v57  ;;  %v3915_v57 = vld [vmem:[#allocation2 + $0x4e0] sm:$0xff] }
 0x18d   : > { %v8632_v33 = vunpack.i.h.bf16 %v8630_v59  ;;  %v8631_v61 = vunpack.i.l.bf16 %v8630_v59  ;;  %8924 = vrot.lane.b32.xlu1 %v10009_v52, %s9267_s16  ;;  %v1188_v59 = vld [vmem:[#allocation2 + $0x178] sm:$0xff] }
 0x18e   : > { %8919 = vrot.lane.b32.xlu0 %v10015_v55, %s9267_s16  ;;  %7481 = vmatprep.subr.bf16.mxu1 %v7480_v60  ;;  %v3959_v5 = vsel %vm3951_vm14, %v8636_v15, %v8637_v58 }
 0x18f   : > { %7483 = vmatpush3.bf16.msra.mxu1 %v7480_v60  ;;  %v8645_v63 = vpop.permute.xlu1 %8644  ;;  %v3958_v22 = vsel %vm3951_vm14, %v8631_v61, %v8632_v33  ;;  %v3916_v60 = vld [vmem:[#allocation2 + $0x4e8] sm:$0xff]  ;;  %v1376_v61 = vld [vmem:[#allocation2 + $0x180] sm:$0xff] }
 0x190   : > { %v8647_v0 = vunpack.i.h.bf16 %v8645_v63  ;;  %v8646_v23 = vunpack.i.l.bf16 %v8645_v63  ;;  %v8640_v1 = vpop.permute.xlu0 %8639  ;;  %v7704_v4 = vpack.c.bf16 %v3959_v5, %v3958_v22 }
 0x191   : > { %v8642_v8 = vunpack.i.h.bf16 %v8640_v1  ;;  %v8641_v6 = vunpack.i.l.bf16 %v8640_v1  ;;  %8934 = vrot.lane.b32.xlu1 %v10009_v52, %s9268_s17 }
 0x192   : > { %8929 = vrot.lane.b32.xlu0 %v10015_v55, %s9268_s17  ;;  %7705 = vmatprep.subr.bf16.mxu0 %v7704_v4  ;;  %v1418_v24 = vsel %vm1416_vm15, %v8646_v23, %v8647_v0 }
 0x193   : > { %7707 = vmatpush3.bf16.msra.mxu0 %v7704_v4  ;;  %v8655_v25 = vpop.permute.xlu1 %8654  ;;  %v1417_v26 = vsel %vm1416_vm15, %v8641_v6, %v8642_v8  ;;  %6793 = vmatmul.mubr.msk.f32.vlgmr.msra.gmra.mrb[0].mxu1 %vm336_vm0, %v1182_v2  ;;  %v3917_v4 = vld [vmem:[#allocation2 + $0x4f0] sm:$0xff]  ;;  %v3918_v6 = vld [vmem:[#allocation2 + $0x4f8] sm:$0xff] }
 0x194   : > { %v8657_v19 = vunpack.i.h.bf16 %v8655_v25  ;;  %v8656_v11 = vunpack.i.l.bf16 %v8655_v25  ;;  %v8650_v3 = vpop.permute.xlu0 %8649  ;;  %v7484_v27 = vpack.c.bf16 %v1418_v24, %v1417_v26  ;;  %6795 = vmatprep.mubr.msk.f32.mxu1 %vm336_vm0, %v1183_v12  ;;  %v4106_v12 = vld [vmem:[#allocation2 + $0x500] sm:$0xff] }
 0x195   : > { %v8652_v28 = vunpack.i.h.bf16 %v8650_v3  ;;  %v8651_v46 = vunpack.i.l.bf16 %v8650_v3  ;;  %8944 = vrot.lane.b32.xlu1 %v10029_v9, %s9267_s16 }
 0x196   : > { %8939 = vrot.lane.b32.xlu0 %v10035_v14, %s9267_s16  ;;  %7485 = vmatprep.subr.bf16.mxu1 %v7484_v27  ;;  %v4148_v30 = vsel %vm4146_vm1, %v8656_v11, %v8657_v19 }
 0x197   : > { %7487 = vmatpush3.bf16.msra.mxu1 %v7484_v27  ;;  %v8665_v32 = vpop.permute.xlu1 %8664  ;;  %v4147_v49 = vsel %vm4146_vm1, %v8651_v46, %v8652_v28  ;;  %7185 = vmatmul.mubr.msk.f32.vlgmr.msra.gmra.mrb[0].mxu0 %vm336_vm0, %v3912_v7 }
 0x198   : > { %v8667_v20 = vunpack.i.h.bf16 %v8665_v32  ;;  %v8666_v34 = vunpack.i.l.bf16 %v8665_v32  ;;  %v8660_v35 = vpop.permute.xlu0 %8659  ;;  %v7708_v47 = vpack.c.bf16 %v4148_v30, %v4147_v49  ;;  %6796 = vmatmul.mubr.msk.f32.gmra.mrb[2].mxu1 %vm336_vm0, %v1184_v48  ;;  %7187 = vmatprep.mubr.msk.f32.mxu0 %vm336_vm0, %v3913_v29 }
 0x199   : > { %v8662_v36 = vunpack.i.h.bf16 %v8660_v35  ;;  %v8661_v37 = vunpack.i.l.bf16 %v8660_v35  ;;  %8954 = vrot.lane.b32.xlu1 %v10029_v9, %s9268_s17  ;;  %6798 = vmatprep.mubr.msk.f32.mxu1 %vm336_vm0, %v1185_v17 }
 0x19a   : > { %8949 = vrot.lane.b32.xlu0 %v10035_v14, %s9268_s17  ;;  %7709 = vmatprep.subr.bf16.mxu0 %v7708_v47  ;;  %v1420_v44 = vsel %vm1416_vm15, %v8666_v34, %v8667_v20  ;;  %s9273_s17 = smov [#allocation5]  }
 0x19b   : > { %7711 = vmatpush3.bf16.msra.mxu0 %v7708_v47  ;;  %v8675_v16 = vpop.permute.xlu1 %8674  ;;  %v1419_v50 = vsel %vm1416_vm15, %v8661_v37, %v8662_v36 }
 0x19c   : > { %v8677_v51 = vunpack.i.h.bf16 %v8675_v16  ;;  %v8676_v54 = vunpack.i.l.bf16 %v8675_v16  ;;  %v8670_v18 = vpop.permute.xlu0 %8669  ;;  %v7488_v56 = vpack.c.bf16 %v1420_v44, %v1419_v50  ;;  %6799 = vmatmul.mubr.msk.f32.gmra.mrb[4].mxu1 %vm336_vm0, %v1186_v53  ;;  %7188 = vmatmul.mubr.msk.f32.gmra.mrb[2].mxu0 %vm336_vm0, %v3914_v40  ;;  %v1377_v44 = vld [vmem:[#allocation2 + $0x188] sm:$0xff]  ;;  %v1378_v50 = vld [vmem:[#allocation2 + $0x190] sm:$0xff] }
 0x19d   : > { %v8672_v58 = vunpack.i.h.bf16 %v8670_v18  ;;  %v8671_v15 = vunpack.i.l.bf16 %v8670_v18  ;;  %8964 = vrot.lane.b32.xlu1 %v8963_v39, %s9269_s23  ;;  %6801 = vmatprep.mubr.msk.f32.mxu1 %vm336_vm0, %v1187_v45 }
 0x19e   : > { %8959 = vrot.lane.b32.xlu0 %v8958_v43, %s9269_s23  ;;  %7489 = vmatprep.subr.bf16.mxu1 %v7488_v56  ;;  %v4150_v33 = vsel %vm4146_vm1, %v8676_v54, %v8677_v51 }
 0x19f   : > { %7491 = vmatpush3.bf16.msra.mxu1 %v7488_v56  ;;  %v8685_v5 = vpop.permute.xlu1 %8684  ;;  %v4149_v63 = vsel %vm4146_vm1, %v8671_v15, %v8672_v58  ;;  %7190 = vmatprep.mubr.msk.f32.mxu0 %vm336_vm0, %v3915_v57 }
 0x1a0   : > { %v8687_v22 = vunpack.i.h.bf16 %v8685_v5  ;;  %v8686_v0 = vunpack.i.l.bf16 %v8685_v5  ;;  %v8680_v23 = vpop.permute.xlu0 %8679  ;;  %v7712_v1 = vpack.c.bf16 %v4150_v33, %v4149_v63  ;;  %6802 = vmatmul.mubr.msk.f32.gmra.mrb[6].mxu1 %vm336_vm0, %v1188_v59  ;;  %7191 = vmatmul.mubr.msk.f32.gmra.mrb[4].mxu0 %vm336_vm0, %v3916_v60  ;;  %v4107_v59 = vld [vmem:[#allocation2 + $0x508] sm:$0xff]  ;;  %v4108_v33 = vld [vmem:[#allocation2 + $0x510] sm:$0xff]  ;;  %v1380_v5 = vld [vmem:[#allocation2 + $0x1a0] sm:$0xff] }
 0x1a1   : > { %v8682_v2 = vunpack.i.h.bf16 %v8680_v23  ;;  %v8681_v8 = vunpack.i.l.bf16 %v8680_v23  ;;  %8974 = vrot.lane.b32.xlu1 %v8963_v39, %s9270_s25  ;;  %6820 = vmatprep.mubr.msk.f32.mxu1 %vm336_vm0, %v1376_v61 }
 0x1a2   : > { %8969 = vrot.lane.b32.xlu0 %v8958_v43, %s9270_s25  ;;  %7713 = vmatprep.subr.bf16.mxu0 %v7712_v1  ;;  %v1422_v21 = vsel %vm1416_vm15, %v8686_v0, %v8687_v22 }
 0x1a3   : > { %7715 = vmatpush3.bf16.msra.mxu0 %v7712_v1  ;;  %v8695_v13 = vpop.permute.xlu1 %8694  ;;  %v1421_v24 = vsel %vm1416_vm15, %v8681_v8, %v8682_v2  ;;  %7193 = vmatprep.mubr.msk.f32.mxu0 %vm336_vm0, %v3917_v4 }
 0x1a4   : > { %v8697_v25 = vunpack.i.h.bf16 %v8695_v13  ;;  %v8696_v26 = vunpack.i.l.bf16 %v8695_v13  ;;  %v8690_v19 = vpop.permute.xlu0 %8689  ;;  %v7492_v11 = vpack.c.bf16 %v1422_v21, %v1421_v24  ;;  %7194 = vmatmul.mubr.msk.f32.gmra.mrb[6].mxu0 %vm336_vm0, %v3918_v6  ;;  %v1381_v6 = vld [vmem:[#allocation2 + $0x1a8] sm:$0xff]  ;;  %v4109_v21 = vld [vmem:[#allocation2 + $0x518] sm:$0xff]  ;;  %v1382_v13 = vld [vmem:[#allocation2 + $0x1b0] sm:$0xff] }
 0x1a5   : > { %v8692_v3 = vunpack.i.h.bf16 %v8690_v19  ;;  %v8691_v27 = vunpack.i.l.bf16 %v8690_v19  ;;  %8984 = vrot.lane.b32.xlu1 %v9989_v31, %s9269_s23  ;;  %7212 = vmatprep.mubr.msk.f32.mxu0 %vm336_vm0, %v4106_v12  ;;  %v4110_v24 = vld [vmem:[#allocation2 + $0x520] sm:$0xff] }
 0x1a6   : > { %8979 = vrot.lane.b32.xlu0 %v9918_v62, %s9269_s23  ;;  %7493 = vmatprep.subr.bf16.mxu1 %v7492_v11  ;;  %v4152_v7 = vsel %vm4146_vm1, %v8696_v26, %v8697_v25 }
 0x1a7   : > { %7495 = vmatpush3.bf16.msra.mxu1 %v7492_v11  ;;  %v8705_v28 = vpop.permute.xlu1 %8704  ;;  %v4151_v46 = vsel %vm4146_vm1, %v8691_v27, %v8692_v3 }
 0x1a8   : > { %v8707_v48 = vunpack.i.h.bf16 %v8705_v28  ;;  %v8706_v29 = vunpack.i.l.bf16 %v8705_v28  ;;  %v8700_v30 = vpop.permute.xlu0 %8699  ;;  %v7716_v17 = vpack.c.bf16 %v4152_v7, %v4151_v46  ;;  %v4111_v28 = vld [vmem:[#allocation2 + $0x528] sm:$0xff] }
 0x1a9   : > { %v8702_v32 = vunpack.i.h.bf16 %v8700_v30  ;;  %v8701_v49 = vunpack.i.l.bf16 %v8700_v30  ;;  %8994 = vrot.lane.b32.xlu1 %v9989_v31, %s9270_s25 }
 0x1aa   : > { %8989 = vrot.lane.b32.xlu0 %v9918_v62, %s9270_s25  ;;  %7717 = vmatprep.subr.bf16.mxu0 %v7716_v17  ;;  %v1424_v20 = vsel %vm1416_vm15, %v8706_v29, %v8707_v48  ;;  %v1571_v48 = vld [vmem:[#allocation2 + $0x1c0] sm:$0xff]  ;;  %v4112_v29 = vld [vmem:[#allocation2 + $0x530] sm:$0xff] }
 0x1ab   : > { %7719 = vmatpush3.bf16.msra.mxu0 %v7716_v17  ;;  %v8715_v34 = vpop.permute.xlu1 %8714  ;;  %v1423_v35 = vsel %vm1416_vm15, %v8701_v49, %v8702_v32 }
 0x1ac   : > { %v8717_v47 = vunpack.i.h.bf16 %v8715_v34  ;;  %v8716_v36 = vunpack.i.l.bf16 %v8715_v34  ;;  %v8710_v37 = vpop.permute.xlu0 %8709  ;;  %v7496_v10 = vpack.c.bf16 %v1424_v20, %v1423_v35 }
 0x1ad   : > { %v8712_v38 = vunpack.i.h.bf16 %v8710_v37  ;;  %v8711_v39 = vunpack.i.l.bf16 %v8710_v37  ;;  %9004 = vrot.lane.b32.xlu1 %v10009_v52, %s9269_s23 }
 0x1ae   : > { %8999 = vrot.lane.b32.xlu0 %v10015_v55, %s9269_s23  ;;  %7497 = vmatprep.subr.bf16.mxu1 %v7496_v10  ;;  %v4154_v62 = vsel %vm4146_vm1, %v8716_v36, %v8717_v47  ;;  %v4113_v36 = vld [vmem:[#allocation2 + $0x538] sm:$0xff] }
 0x1af   : > { %7499 = vmatpush3.bf16.msra.mxu1 %v7496_v10  ;;  %v8725_v31 = vpop.permute.xlu1 %8724  ;;  %v4153_v53 = vsel %vm4146_vm1, %v8711_v39, %v8712_v38  ;;  %v4301_v10 = vld [vmem:[#allocation2 + $0x540] sm:$0xff]  ;;  %v5081_v38 = vld [vmem:[%s10714_s2 + $0x8] sm:$0xff] }
 0x1b0   : > { %v8727_v40 = vunpack.i.h.bf16 %v8725_v31  ;;  %v8726_v41 = vunpack.i.l.bf16 %v8725_v31  ;;  %v8720_v42 = vpop.permute.xlu0 %8719  ;;  %v7720_v43 = vpack.c.bf16 %v4154_v62, %v4153_v53  ;;  %v9271_v31 = vmov 0   ;;  %v5080_v53 = vld [vmem:[%s10714_s2] sm:$0xff] }
 0x1b1   : > { %v8722_v45 = vunpack.i.h.bf16 %v8720_v42  ;;  %v8721_v16 = vunpack.i.l.bf16 %v8720_v42  ;;  %9014 = vrot.lane.b32.xlu1 %v10009_v52, %s9270_s25  ;;  %9038 = vset.pattern.permute.xlu0 %v9271_v31 }
 0x1b2   : > { %9009 = vrot.lane.b32.xlu0 %v10015_v55, %s9270_s25  ;;  %7721 = vmatprep.subr.bf16.mxu0 %v7720_v43  ;;  %v1613_v51 = vsel %vm1611_vm3, %v8726_v41, %v8727_v40  ;;  %v1379_v55 = vld [vmem:[#allocation2 + $0x198] sm:$0xff] }
 0x1b3   : > { %7723 = vmatpush3.bf16.msra.mxu0 %v7720_v43  ;;  %v8735_v54 = vpop.permute.xlu1 %8734  ;;  %v1612_v18 = vsel %vm1611_vm3, %v8721_v16, %v8722_v45  ;;  %6821 = vmatmul.mubr.msk.f32.vlgmr.msra.gmra.mrb[0].mxu1 %vm336_vm0, %v1377_v44 }
 0x1b4   : > { %v8737_v56 = vunpack.i.h.bf16 %v8735_v54  ;;  %v8736_v57 = vunpack.i.l.bf16 %v8735_v54  ;;  %v8730_v58 = vpop.permute.xlu0 %8729  ;;  %v7500_v15 = vpack.c.bf16 %v1613_v51, %v1612_v18  ;;  %6823 = vmatprep.mubr.msk.f32.mxu1 %vm336_vm0, %v1378_v50  ;;  %9039 = vset.pattern.permute.xlu1 %v9271_v31  ;;  %v5082_v50 = vld [vmem:[%s10714_s2 + $0x10] sm:$0xff]  ;;  %v5083_v18 = vld [vmem:[%s10714_s2 + $0x18] sm:$0xff]  ;;  %v4305_v31 = vld [vmem:[#allocation2 + $0x560] sm:$0xff] }
 0x1b5   : > { %v8732_v52 = vunpack.i.h.bf16 %v8730_v58  ;;  %v8731_v60 = vunpack.i.l.bf16 %v8730_v58  ;;  %9024 = vrot.lane.b32.xlu1 %v10029_v9, %s9269_s23 }
 0x1b6   : > { %9019 = vrot.lane.b32.xlu0 %v10035_v14, %s9269_s23  ;;  %7501 = vmatprep.subr.bf16.mxu1 %v7500_v15  ;;  %v4343_v61 = vsel %vm4341_vm4, %v8736_v57, %v8737_v56 }
 0x1b7   : > { %7503 = vmatpush3.bf16.msra.mxu1 %v7500_v15  ;;  %v8745_v63 = vpop.permute.xlu1 %8744  ;;  %v4342_v22 = vsel %vm4341_vm4, %v8731_v60, %v8732_v52  ;;  %7213 = vmatmul.mubr.msk.f32.vlgmr.msra.gmra.mrb[0].mxu0 %vm336_vm0, %v4107_v59 }
 0x1b8   : > { %v8747_v0 = vunpack.i.h.bf16 %v8745_v63  ;;  %v8746_v23 = vunpack.i.l.bf16 %v8745_v63  ;;  %v8740_v1 = vpop.permute.xlu0 %8739  ;;  %v7724_v4 = vpack.c.bf16 %v4343_v61, %v4342_v22  ;;  %6824 = vmatmul.mubr.msk.f32.gmra.mrb[2].mxu1 %vm336_vm0, %v1379_v55  ;;  %7215 = vmatprep.mubr.msk.f32.mxu0 %vm336_vm0, %v4108_v33  ;;  %v5084_v55 = vld [vmem:[%s10714_s2 + $0x20] sm:$0xff] }
 0x1b9   : > { %v8742_v2 = vunpack.i.h.bf16 %v8740_v1  ;;  %v8741_v8 = vunpack.i.l.bf16 %v8740_v1  ;;  %9034 = vrot.lane.b32.xlu1 %v10029_v9, %s9270_s25  ;;  %6826 = vmatprep.mubr.msk.f32.mxu1 %vm336_vm0, %v1380_v5  ;;  %v5085_v5 = vld [vmem:[%s10714_s2 + $0x28] sm:$0xff] }
 0x1ba   : > { %9029 = vrot.lane.b32.xlu0 %v10035_v14, %s9270_s25  ;;  %7725 = vmatprep.subr.bf16.mxu0 %v7724_v4  ;;  %v1615_v12 = vsel %vm1611_vm3, %v8746_v23, %v8747_v0  ;;  %v1383_v14 = vld [vmem:[#allocation2 + $0x1b8] sm:$0xff] }
 0x1bb   : > { %7727 = vmatpush3.bf16.msra.mxu0 %v7724_v4  ;;  %v8755_v25 = vpop.permute.xlu1 %8754  ;;  %v1614_v26 = vsel %vm1611_vm3, %v8741_v8, %v8742_v2  ;;  %v5086_v8 = vld [vmem:[%s10714_s2 + $0x30] sm:$0xff] }
 0x1bc   : > { %v8757_v19 = vunpack.i.h.bf16 %v8755_v25  ;;  %v8756_v11 = vunpack.i.l.bf16 %v8755_v25  ;;  %v8750_v3 = vpop.permute.xlu0 %8749  ;;  %v7504_v9 = vpack.c.bf16 %v1615_v12, %v1614_v26  ;;  %6827 = vmatmul.mubr.msk.f32.gmra.mrb[4].mxu1 %vm336_vm0, %v1381_v6  ;;  %7216 = vmatmul.mubr.msk.f32.gmra.mrb[2].mxu0 %vm336_vm0, %v4109_v21  ;;  %v1572_v12 = vld [vmem:[#allocation2 + $0x1c8] sm:$0xff] }
 0x1bd   : > { %v8752_v27 = vunpack.i.h.bf16 %v8750_v3  ;;  %v8751_v7 = vunpack.i.l.bf16 %v8750_v3  ;;  %6829 = vmatprep.mubr.msk.f32.mxu1 %vm336_vm0, %v1382_v13  ;;  %7218 = vmatprep.mubr.msk.f32.mxu0 %vm336_vm0, %v4110_v24 }
 0x1be   : > { %7505 = vmatprep.subr.bf16.mxu1 %v7504_v9  ;;  %v4345_v46 = vsel %vm4341_vm4, %v8756_v11, %v8757_v19  ;;  %5095 = vperm.xlu1 %9039, %v5081_v38   ;;  %v1573_v19 = vld [vmem:[#allocation2 + $0x1d0] sm:$0xff] }
 0x1bf   : > { %7507 = vmatpush3.bf16.msra.mxu1 %v7504_v9  ;;  %v8765_v30 = vpop.permute.xlu1 %8764  ;;  %v4344_v17 = vsel %vm4341_vm4, %v8751_v7, %v8752_v27  ;;  %5090 = vperm.xlu0 %9038, %v5080_v53   ;;  %v5087_v9 = vld [vmem:[%s10714_s2 + $0x38] sm:$0xff] }
 0x1c0   : > { %v8767_v32 = vunpack.i.h.bf16 %v8765_v30  ;;  %v8766_v49 = vunpack.i.l.bf16 %v8765_v30  ;;  %v8760_v20 = vpop.permute.xlu0 %8759  ;;  %v7728_v34 = vpack.c.bf16 %v4345_v46, %v4344_v17  ;;  %6830 = vmatmul.mubr.msk.f32.gmra.mrb[6].mxu1 %vm336_vm0, %v1383_v14  ;;  %7219 = vmatmul.mubr.msk.f32.gmra.mrb[4].mxu0 %vm336_vm0, %v4111_v28  ;;  %v4302_v28 = vld [vmem:[#allocation2 + $0x548] sm:$0xff]  ;;  %v4303_v17 = vld [vmem:[#allocation2 + $0x550] sm:$0xff] }
 0x1c1   : > { %v8762_v35 = vunpack.i.h.bf16 %v8760_v20  ;;  %v8761_v47 = vunpack.i.l.bf16 %v8760_v20  ;;  %6848 = vmatprep.mubr.msk.f32.mxu1 %vm336_vm0, %v1571_v48  ;;  %7221 = vmatprep.mubr.msk.f32.mxu0 %vm336_vm0, %v4112_v29  ;;  %v1574_v20 = vld [vmem:[#allocation2 + $0x1d8] sm:$0xff] }
 0x1c2   : > { %7729 = vmatprep.subr.bf16.mxu0 %v7728_v34  ;;  %v1617_v37 = vsel %vm1611_vm3, %v8766_v49, %v8767_v32  ;;  %5100 = vperm.xlu1 %9039, %v5082_v50  }
 0x1c3   : > { %7731 = vmatpush3.bf16.msra.mxu0 %v7728_v34  ;;  %v8775_v39 = vpop.permute.xlu1 %8774  ;;  %v1616_v62 = vsel %vm1611_vm3, %v8761_v47, %v8762_v35  ;;  %5105 = vperm.xlu0 %9038, %v5083_v18   ;;  %v1575_v35 = vld [vmem:[#allocation2 + $0x1e0] sm:$0xff] }
 0x1c4   : > { %v8777_v40 = vunpack.i.h.bf16 %v8775_v39  ;;  %v8776_v41 = vunpack.i.l.bf16 %v8775_v39  ;;  %v8770_v42 = vpop.permute.xlu0 %8769  ;;  %v7508_v43 = vpack.c.bf16 %v1617_v37, %v1616_v62  ;;  %7222 = vmatmul.mubr.msk.f32.gmra.mrb[6].mxu0 %vm336_vm0, %v4113_v36  ;;  %v4304_v37 = vld [vmem:[#allocation2 + $0x558] sm:$0xff] }
 0x1c5   : > { %v8772_v44 = vunpack.i.h.bf16 %v8770_v42  ;;  %v8771_v45 = vunpack.i.l.bf16 %v8770_v42  ;;  %7240 = vmatprep.mubr.msk.f32.mxu0 %vm336_vm0, %v4301_v10 }
 0x1c6   : > { %7509 = vmatprep.subr.bf16.mxu1 %v7508_v43  ;;  %v4347_v16 = vsel %vm4341_vm4, %v8776_v41, %v8777_v40  ;;  %5110 = vperm.xlu1 %9039, %v5084_v55   ;;  %v1576_v41 = vld [vmem:[#allocation2 + $0x1e8] sm:$0xff] }
 0x1c7   : > { %7511 = vmatpush3.bf16.msra.mxu1 %v7508_v43  ;;  %v8785_v51 = vpop.permute.xlu1 %8784  ;;  %v4346_v54 = vsel %vm4341_vm4, %v8771_v45, %v8772_v44  ;;  %5115 = vperm.xlu0 %9038, %v5085_v5   ;;  %v1577_v43 = vld [vmem:[#allocation2 + $0x1f0] sm:$0xff] }
 0x1c8   : > { %v8787_v56 = vunpack.i.h.bf16 %v8785_v51  ;;  %v8786_v57 = vunpack.i.l.bf16 %v8785_v51  ;;  %v8780_v58 = vpop.permute.xlu0 %8779  ;;  %v7732_v15 = vpack.c.bf16 %v4347_v16, %v4346_v54  ;;  %v4306_v16 = vld [vmem:[#allocation2 + $0x568] sm:$0xff] }
 0x1c9   : > { %v8782_v59 = vunpack.i.h.bf16 %v8780_v58  ;;  %v8781_v52 = vunpack.i.l.bf16 %v8780_v58 }
 0x1ca   : > { %7733 = vmatprep.subr.bf16.mxu0 %v7732_v15  ;;  %v1619_v60 = vsel %vm1611_vm3, %v8786_v57, %v8787_v56  ;;  %5120 = vperm.xlu1 %9039, %v5086_v8   ;;  %v4307_v56 = vld [vmem:[#allocation2 + $0x570] sm:$0xff] }
 0x1cb   : > { %7735 = vmatpush3.bf16.msra.mxu0 %v7732_v15  ;;  %v8795_v33 = vpop.permute.xlu1 %8794  ;;  %v1618_v61 = vsel %vm1611_vm3, %v8781_v52, %v8782_v59  ;;  %5125 = vperm.xlu0 %9038, %v5087_v9   ;;  %v1578_v15 = vld [vmem:[#allocation2 + $0x1f8] sm:$0xff]  ;;  %v1766_v52 = vld [vmem:[#allocation2 + $0x200] sm:$0xff] }
 0x1cc   : > { %v8797_v63 = vunpack.i.h.bf16 %v8795_v33  ;;  %v8796_v22 = vunpack.i.l.bf16 %v8795_v33  ;;  %v8790_v0 = vpop.permute.xlu0 %8789  ;;  %v7512_v23 = vpack.c.bf16 %v1619_v60, %v1618_v61  ;;  %v4308_v33 = vld [vmem:[#allocation2 + $0x578] sm:$0xff] }
 0x1cd   : > { %v8792_v1 = vunpack.i.h.bf16 %v8790_v0  ;;  %v8791_v4 = vunpack.i.l.bf16 %v8790_v0  ;;  %v4496_v0 = vld [vmem:[#allocation2 + $0x580] sm:$0xff] }
 0x1ce   : > { %7513 = vmatprep.subr.bf16.mxu1 %v7512_v23  ;;  %v4349_v2 = vsel %vm4341_vm4, %v8796_v22, %v8797_v63 }
 0x1cf   : > { %7515 = vmatpush3.bf16.msra.mxu1 %v7512_v23  ;;  %v8805_v6 = vpop.permute.xlu1 %8804  ;;  %v4348_v21 = vsel %vm4341_vm4, %v8791_v4, %v8792_v1 }
 0x1d0   : > { %v8807_v13 = vunpack.i.h.bf16 %v8805_v6  ;;  %v8806_v24 = vunpack.i.l.bf16 %v8805_v6  ;;  %v8800_v25 = vpop.permute.xlu0 %8799  ;;  %v7736_v26 = vpack.c.bf16 %v4349_v2, %v4348_v21 }
 0x1d1   : > { %v8802_v11 = vunpack.i.h.bf16 %v8800_v25  ;;  %v8801_v3 = vunpack.i.l.bf16 %v8800_v25 }
 0x1d2   : > { %7737 = vmatprep.subr.bf16.mxu0 %v7736_v26  ;;  %v1808_v27 = vsel %vm1806_vm5, %v8806_v24, %v8807_v13  ;;  %6849 = vmatmul.mubr.msk.f32.vlgmr.msra.gmra.mrb[0].mxu1 %vm336_vm0, %v1572_v12 }
 0x1d3   : > { %7739 = vmatpush3.bf16.msra.mxu0 %v7736_v26  ;;  %v8815_v7 = vpop.permute.xlu1 %8814  ;;  %v1807_v14 = vsel %vm1806_vm5, %v8801_v3, %v8802_v11  ;;  %6851 = vmatprep.mubr.msk.f32.mxu1 %vm336_vm0, %v1573_v19 }
 0x1d4   : > { %v8817_v46 = vunpack.i.h.bf16 %v8815_v7  ;;  %v8816_v48 = vunpack.i.l.bf16 %v8815_v7  ;;  %v8810_v29 = vpop.permute.xlu0 %8809  ;;  %v7516_v30 = vpack.c.bf16 %v1808_v27, %v1807_v14 }
 0x1d5   : > { %v8812_v32 = vunpack.i.h.bf16 %v8810_v29  ;;  %v8811_v49 = vunpack.i.l.bf16 %v8810_v29 }
 0x1d6   : > { %7517 = vmatprep.subr.bf16.mxu1 %v7516_v30  ;;  %v4538_v34 = vsel %vm4536_vm6, %v8816_v48, %v8817_v46  ;;  %7241 = vmatmul.mubr.msk.f32.vlgmr.msra.gmra.mrb[0].mxu0 %vm336_vm0, %v4302_v28 }
 0x1d7   : > { %7519 = vmatpush3.bf16.msra.mxu1 %v7516_v30  ;;  %v8825_v47 = vpop.permute.xlu1 %8824  ;;  %v4537_v36 = vsel %vm4536_vm6, %v8811_v49, %v8812_v32  ;;  %7243 = vmatprep.mubr.msk.f32.mxu0 %vm336_vm0, %v4303_v17 }
 0x1d8   : > { %v8827_v10 = vunpack.i.h.bf16 %v8825_v47  ;;  %v8826_v38 = vunpack.i.l.bf16 %v8825_v47  ;;  %v8820_v39 = vpop.permute.xlu0 %8819  ;;  %v7740_v62 = vpack.c.bf16 %v4538_v34, %v4537_v36  ;;  %6852 = vmatmul.mubr.msk.f32.gmra.mrb[2].mxu1 %vm336_vm0, %v1574_v20 }
 0x1d9   : > { %v8822_v53 = vunpack.i.h.bf16 %v8820_v39  ;;  %v8821_v40 = vunpack.i.l.bf16 %v8820_v39  ;;  %6854 = vmatprep.mubr.msk.f32.mxu1 %vm336_vm0, %v1575_v35 }
 0x1da   : > { %7741 = vmatprep.subr.bf16.mxu0 %v7740_v62  ;;  %v1810_v42 = vsel %vm1806_vm5, %v8826_v38, %v8827_v10  ;;  %7244 = vmatmul.mubr.msk.f32.gmra.mrb[2].mxu0 %vm336_vm0, %v4304_v37  ;;  %v1767_v37 = vld [vmem:[#allocation2 + $0x208] sm:$0xff] }
 0x1db   : > { %7743 = vmatpush3.bf16.msra.mxu0 %v7740_v62  ;;  %v8835_v44 = vpop.permute.xlu1 %8834  ;;  %v1809_v45 = vsel %vm1806_vm5, %v8821_v40, %v8822_v53  ;;  %7246 = vmatprep.mubr.msk.f32.mxu0 %vm336_vm0, %v4305_v31  ;;  %v1768_v31 = vld [vmem:[#allocation2 + $0x210] sm:$0xff] }
 0x1dc   : > { %v8837_v50 = vunpack.i.h.bf16 %v8835_v44  ;;  %v8836_v51 = vunpack.i.l.bf16 %v8835_v44  ;;  %v8830_v54 = vpop.permute.xlu0 %8829  ;;  %v7520_v18 = vpack.c.bf16 %v1810_v42, %v1809_v45  ;;  %6855 = vmatmul.mubr.msk.f32.gmra.mrb[4].mxu1 %vm336_vm0, %v1576_v41  ;;  %v4497_v44 = vld [vmem:[#allocation2 + $0x588] sm:$0xff] }
 0x1dd   : > { %v8832_v57 = vunpack.i.h.bf16 %v8830_v54  ;;  %v8831_v58 = vunpack.i.l.bf16 %v8830_v54  ;;  %6857 = vmatprep.mubr.msk.f32.mxu1 %vm336_vm0, %v1577_v43  ;;  %v4498_v54 = vld [vmem:[#allocation2 + $0x590] sm:$0xff] }
 0x1de   : > { %7521 = vmatprep.subr.bf16.mxu1 %v7520_v18  ;;  %v4540_v59 = vsel %vm4536_vm6, %v8836_v51, %v8837_v50  ;;  %7247 = vmatmul.mubr.msk.f32.gmra.mrb[4].mxu0 %vm336_vm0, %v4306_v16 }
 0x1df   : > { %7523 = vmatpush3.bf16.msra.mxu1 %v7520_v18  ;;  %v8845_v60 = vpop.permute.xlu1 %8844  ;;  %v4539_v55 = vsel %vm4536_vm6, %v8831_v58, %v8832_v57  ;;  %7249 = vmatprep.mubr.msk.f32.mxu0 %vm336_vm0, %v4307_v56  ;;  %v1769_v57 = vld [vmem:[#allocation2 + $0x218] sm:$0xff] }
 0x1e0   : > { %v8847_v61 = vunpack.i.h.bf16 %v8845_v60  ;;  %v8846_v5 = vunpack.i.l.bf16 %v8845_v60  ;;  %v8840_v63 = vpop.permute.xlu0 %8839  ;;  %v7744_v22 = vpack.c.bf16 %v4540_v59, %v4539_v55  ;;  %6858 = vmatmul.mubr.msk.f32.gmra.mrb[6].mxu1 %vm336_vm0, %v1578_v15  ;;  %v1770_v15 = vld [vmem:[#allocation2 + $0x220] sm:$0xff]  ;;  %v4499_v60 = vld [vmem:[#allocation2 + $0x598] sm:$0xff] }
 0x1e1   : > { %v8842_v23 = vunpack.i.h.bf16 %v8840_v63  ;;  %v8841_v1 = vunpack.i.l.bf16 %v8840_v63  ;;  %6876 = vmatprep.mubr.msk.f32.mxu1 %vm336_vm0, %v1766_v52  ;;  %v4500_v63 = vld [vmem:[#allocation2 + $0x5a0] sm:$0xff] }
 0x1e2   : > { %7745 = vmatprep.subr.bf16.mxu0 %v7744_v22  ;;  %v1812_v4 = vsel %vm1806_vm5, %v8846_v5, %v8847_v61  ;;  %7250 = vmatmul.mubr.msk.f32.gmra.mrb[6].mxu0 %vm336_vm0, %v4308_v33 }
 0x1e3   : > { %7747 = vmatpush3.bf16.msra.mxu0 %v7744_v22  ;;  %v8855_v2 = vpop.permute.xlu1 %8854  ;;  %v1811_v8 = vsel %vm1806_vm5, %v8841_v1, %v8842_v23  ;;  %7268 = vmatprep.mubr.msk.f32.mxu0 %vm336_vm0, %v4496_v0  ;;  %v1771_v23 = vld [vmem:[#allocation2 + $0x228] sm:$0xff] }
 0x1e4   : > { %v8857_v6 = vunpack.i.h.bf16 %v8855_v2  ;;  %v8856_v21 = vunpack.i.l.bf16 %v8855_v2  ;;  %v8850_v12 = vpop.permute.xlu0 %8849  ;;  %v7524_v13 = vpack.c.bf16 %v1812_v4, %v1811_v8  ;;  %v1772_v4 = vld [vmem:[#allocation2 + $0x230] sm:$0xff] }
 0x1e5   : > { %v8852_v24 = vunpack.i.h.bf16 %v8850_v12  ;;  %v8851_v25 = vunpack.i.l.bf16 %v8850_v12 }
 0x1e6   : > { %7525 = vmatprep.subr.bf16.mxu1 %v7524_v13  ;;  %v4542_v26 = vsel %vm4536_vm6, %v8856_v21, %v8857_v6  ;;  %v4501_v6 = vld [vmem:[#allocation2 + $0x5a8] sm:$0xff] }
 0x1e7   : > { %7527 = vmatpush3.bf16.msra.mxu1 %v7524_v13  ;;  %v8865_v19 = vpop.permute.xlu1 %8864  ;;  %v4541_v11 = vsel %vm4536_vm6, %v8851_v25, %v8852_v24  ;;  %v4502_v25 = vld [vmem:[#allocation2 + $0x5b0] sm:$0xff] }
 0x1e8   : > { %v8867_v3 = vunpack.i.h.bf16 %v8865_v19  ;;  %v8866_v9 = vunpack.i.l.bf16 %v8865_v19  ;;  %v8860_v27 = vpop.permute.xlu0 %8859  ;;  %v7748_v7 = vpack.c.bf16 %v4542_v26, %v4541_v11  ;;  %v1773_v11 = vld [vmem:[#allocation2 + $0x238] sm:$0xff] }
 0x1e9   : > { %v8862_v14 = vunpack.i.h.bf16 %v8860_v27  ;;  %v8861_v28 = vunpack.i.l.bf16 %v8860_v27 }
 0x1ea   : > { %7749 = vmatprep.subr.bf16.mxu0 %v7748_v7  ;;  %v1814_v46 = vsel %vm1806_vm5, %v8866_v9, %v8867_v3  ;;  %v1961_v9 = vld [vmem:[#allocation2 + $0x240] sm:$0xff] }
 0x1eb   : > { %7751 = vmatpush3.bf16.msra.mxu0 %v7748_v7  ;;  %v8875_v48 = vpop.permute.xlu1 %8874  ;;  %v1813_v29 = vsel %vm1806_vm5, %v8861_v28, %v8862_v14  ;;  %v4503_v14 = vld [vmem:[#allocation2 + $0x5b8] sm:$0xff] }
 0x1ec   : > { %v8877_v30 = vunpack.i.h.bf16 %v8875_v48  ;;  %v8876_v17 = vunpack.i.l.bf16 %v8875_v48  ;;  %v8870_v32 = vpop.permute.xlu0 %8869  ;;  %v7528_v49 = vpack.c.bf16 %v1814_v46, %v1813_v29 }
 0x1ed   : > { %v8872_v20 = vunpack.i.h.bf16 %v8870_v32  ;;  %v8871_v34 = vunpack.i.l.bf16 %v8870_v32 }
 0x1ee   : > { %7529 = vmatprep.subr.bf16.mxu1 %v7528_v49  ;;  %v4544_v35 = vsel %vm4536_vm6, %v8876_v17, %v8877_v30  ;;  %v4691_v30 = vld [vmem:[#allocation2 + $0x5c0] sm:$0xff] }
 0x1ef   : > { %7531 = vmatpush3.bf16.msra.mxu1 %v7528_v49  ;;  %v8885_v47 = vpop.permute.xlu1 %8884  ;;  %v4543_v36 = vsel %vm4536_vm6, %v8871_v34, %v8872_v20 }
 0x1f0   : > { %v8887_v10 = vunpack.i.h.bf16 %v8885_v47  ;;  %v8886_v38 = vunpack.i.l.bf16 %v8885_v47  ;;  %v8880_v39 = vpop.permute.xlu0 %8879  ;;  %v7752_v62 = vpack.c.bf16 %v4544_v35, %v4543_v36 }
 0x1f1   : > { %v8882_v53 = vunpack.i.h.bf16 %v8880_v39  ;;  %v8881_v40 = vunpack.i.l.bf16 %v8880_v39 }
 0x1f2   : > { %7753 = vmatprep.subr.bf16.mxu0 %v7752_v62  ;;  %v2003_v41 = vsel %vm2001_vm7, %v8886_v38, %v8887_v10  ;;  %6877 = vmatmul.mubr.msk.f32.vlgmr.msra.gmra.mrb[0].mxu1 %vm336_vm0, %v1767_v37 }
 0x1f3   : > { %7755 = vmatpush3.bf16.msra.mxu0 %v7752_v62  ;;  %v8895_v42 = vpop.permute.xlu1 %8894  ;;  %v2002_v43 = vsel %vm2001_vm7, %v8881_v40, %v8882_v53  ;;  %6879 = vmatprep.mubr.msk.f32.mxu1 %vm336_vm0, %v1768_v31 }
 0x1f4   : > { %v8897_v45 = vunpack.i.h.bf16 %v8895_v42  ;;  %v8896_v16 = vunpack.i.l.bf16 %v8895_v42  ;;  %v8890_v50 = vpop.permute.xlu0 %8889  ;;  %v7532_v51 = vpack.c.bf16 %v2003_v41, %v2002_v43 }
 0x1f5   : > { %v8892_v18 = vunpack.i.h.bf16 %v8890_v50  ;;  %v8891_v56 = vunpack.i.l.bf16 %v8890_v50 }
 0x1f6   : > { %7533 = vmatprep.subr.bf16.mxu1 %v7532_v51  ;;  %v4733_v58 = vsel %vm4731_vm8, %v8896_v16, %v8897_v45  ;;  %7269 = vmatmul.mubr.msk.f32.vlgmr.msra.gmra.mrb[0].mxu0 %vm336_vm0, %v4497_v44 }
 0x1f7   : > { %7535 = vmatpush3.bf16.msra.mxu1 %v7532_v51  ;;  %v8905_v59 = vpop.permute.xlu1 %8904  ;;  %v4732_v52 = vsel %vm4731_vm8, %v8891_v56, %v8892_v18  ;;  %7271 = vmatprep.mubr.msk.f32.mxu0 %vm336_vm0, %v4498_v54 }
 0x1f8   : > { %v8907_v55 = vunpack.i.h.bf16 %v8905_v59  ;;  %v8906_v33 = vunpack.i.l.bf16 %v8905_v59  ;;  %v8900_v61 = vpop.permute.xlu0 %8899  ;;  %v7756_v5 = vpack.c.bf16 %v4733_v58, %v4732_v52  ;;  %6880 = vmatmul.mubr.msk.f32.gmra.mrb[2].mxu1 %vm336_vm0, %v1769_v57 }
 0x1f9   : > { %v8902_v22 = vunpack.i.h.bf16 %v8900_v61  ;;  %v8901_v0 = vunpack.i.l.bf16 %v8900_v61  ;;  %6882 = vmatprep.mubr.msk.f32.mxu1 %vm336_vm0, %v1770_v15 }
 0x1fa   : > { %7757 = vmatprep.subr.bf16.mxu0 %v7756_v5  ;;  %v2005_v1 = vsel %vm2001_vm7, %v8906_v33, %v8907_v55  ;;  %7272 = vmatmul.mubr.msk.f32.gmra.mrb[2].mxu0 %vm336_vm0, %v4499_v60  ;;  %v1962_v60 = vld [vmem:[#allocation2 + $0x248] sm:$0xff] }
 0x1fb   : > { %7759 = vmatpush3.bf16.msra.mxu0 %v7756_v5  ;;  %v8915_v2 = vpop.permute.xlu1 %8914  ;;  %v2004_v8 = vsel %vm2001_vm7, %v8901_v0, %v8902_v22  ;;  %7274 = vmatprep.mubr.msk.f32.mxu0 %vm336_vm0, %v4500_v63  ;;  %v1963_v63 = vld [vmem:[#allocation2 + $0x250] sm:$0xff] }
 0x1fc   : > { %v8917_v21 = vunpack.i.h.bf16 %v8915_v2  ;;  %v8916_v12 = vunpack.i.l.bf16 %v8915_v2  ;;  %v8910_v13 = vpop.permute.xlu0 %8909  ;;  %v7536_v24 = vpack.c.bf16 %v2005_v1, %v2004_v8  ;;  %6883 = vmatmul.mubr.msk.f32.gmra.mrb[4].mxu1 %vm336_vm0, %v1771_v23  ;;  %v4692_v2 = vld [vmem:[#allocation2 + $0x5c8] sm:$0xff] }
 0x1fd   : > { %v8912_v26 = vunpack.i.h.bf16 %v8910_v13  ;;  %v8911_v19 = vunpack.i.l.bf16 %v8910_v13  ;;  %6885 = vmatprep.mubr.msk.f32.mxu1 %vm336_vm0, %v1772_v4  ;;  %v4693_v13 = vld [vmem:[#allocation2 + $0x5d0] sm:$0xff] }
 0x1fe   : > { %7537 = vmatprep.subr.bf16.mxu1 %v7536_v24  ;;  %v4735_v3 = vsel %vm4731_vm8, %v8916_v12, %v8917_v21  ;;  %7275 = vmatmul.mubr.msk.f32.gmra.mrb[4].mxu0 %vm336_vm0, %v4501_v6 }
 0x1ff   : > { %7539 = vmatpush3.bf16.msra.mxu1 %v7536_v24  ;;  %v8925_v27 = vpop.permute.xlu1 %8924  ;;  %v4734_v7 = vsel %vm4731_vm8, %v8911_v19, %v8912_v26  ;;  %7277 = vmatprep.mubr.msk.f32.mxu0 %vm336_vm0, %v4502_v25  ;;  %v1964_v26 = vld [vmem:[#allocation2 + $0x258] sm:$0xff] }
 0x200   : > { %v8927_v28 = vunpack.i.h.bf16 %v8925_v27  ;;  %v8926_v46 = vunpack.i.l.bf16 %v8925_v27  ;;  %v8920_v48 = vpop.permute.xlu0 %8919  ;;  %v7760_v29 = vpack.c.bf16 %v4735_v3, %v4734_v7  ;;  %6886 = vmatmul.mubr.msk.f32.gmra.mrb[6].mxu1 %vm336_vm0, %v1773_v11  ;;  %v1965_v11 = vld [vmem:[#allocation2 + $0x260] sm:$0xff]  ;;  %v4694_v27 = vld [vmem:[#allocation2 + $0x5d8] sm:$0xff] }
 0x201   : > { %v8922_v17 = vunpack.i.h.bf16 %v8920_v48  ;;  %v8921_v32 = vunpack.i.l.bf16 %v8920_v48  ;;  %6904 = vmatprep.mubr.msk.f32.mxu1 %vm336_vm0, %v1961_v9  ;;  %v4695_v48 = vld [vmem:[#allocation2 + $0x5e0] sm:$0xff] }
 0x202   : > { %7761 = vmatprep.subr.bf16.mxu0 %v7760_v29  ;;  %v2007_v49 = vsel %vm2001_vm7, %v8926_v46, %v8927_v28  ;;  %7278 = vmatmul.mubr.msk.f32.gmra.mrb[6].mxu0 %vm336_vm0, %v4503_v14 }
 0x203   : > { %7763 = vmatpush3.bf16.msra.mxu0 %v7760_v29  ;;  %v8935_v20 = vpop.permute.xlu1 %8934  ;;  %v2006_v34 = vsel %vm2001_vm7, %v8921_v32, %v8922_v17  ;;  %7296 = vmatprep.mubr.msk.f32.mxu0 %vm336_vm0, %v4691_v30  ;;  %v1966_v17 = vld [vmem:[#allocation2 + $0x268] sm:$0xff] }
 0x204   : > { %v8937_v35 = vunpack.i.h.bf16 %v8935_v20  ;;  %v8936_v47 = vunpack.i.l.bf16 %v8935_v20  ;;  %v8930_v36 = vpop.permute.xlu0 %8929  ;;  %v7540_v37 = vpack.c.bf16 %v2007_v49, %v2006_v34  ;;  %v1967_v49 = vld [vmem:[#allocation2 + $0x270] sm:$0xff] }
 0x205   : > { %v8932_v10 = vunpack.i.h.bf16 %v8930_v36  ;;  %v8931_v38 = vunpack.i.l.bf16 %v8930_v36 }
 0x206   : > { %7541 = vmatprep.subr.bf16.mxu1 %v7540_v37  ;;  %v4737_v39 = vsel %vm4731_vm8, %v8936_v47, %v8937_v35  ;;  %v4696_v35 = vld [vmem:[#allocation2 + $0x5e8] sm:$0xff] }
 0x207   : > { %7543 = vmatpush3.bf16.msra.mxu1 %v7540_v37  ;;  %v8945_v62 = vpop.permute.xlu1 %8944  ;;  %v4736_v31 = vsel %vm4731_vm8, %v8931_v38, %v8932_v10  ;;  %v4697_v38 = vld [vmem:[#allocation2 + $0x5f0] sm:$0xff] }
 0x208   : > { %v8947_v53 = vunpack.i.h.bf16 %v8945_v62  ;;  %v8946_v40 = vunpack.i.l.bf16 %v8945_v62  ;;  %v8940_v41 = vpop.permute.xlu0 %8939  ;;  %v7764_v42 = vpack.c.bf16 %v4737_v39, %v4736_v31  ;;  %v1968_v31 = vld [vmem:[#allocation2 + $0x278] sm:$0xff] }
 0x209   : > { %v8942_v43 = vunpack.i.h.bf16 %v8940_v41  ;;  %v8941_v44 = vunpack.i.l.bf16 %v8940_v41 }
 0x20a   : > { %7765 = vmatprep.subr.bf16.mxu0 %v7764_v42  ;;  %v2009_v45 = vsel %vm2001_vm7, %v8946_v40, %v8947_v53  ;;  %v2156_v40 = vld [vmem:[#allocation2 + $0x280] sm:$0xff] }
 0x20b   : > { %7767 = vmatpush3.bf16.msra.mxu0 %v7764_v42  ;;  %v8955_v16 = vpop.permute.xlu1 %8954  ;;  %v2008_v50 = vsel %vm2001_vm7, %v8941_v44, %v8942_v43  ;;  %v4698_v43 = vld [vmem:[#allocation2 + $0x5f8] sm:$0xff] }
 0x20c   : > { %v8957_v51 = vunpack.i.h.bf16 %v8955_v16  ;;  %v8956_v54 = vunpack.i.l.bf16 %v8955_v16  ;;  %v8950_v18 = vpop.permute.xlu0 %8949  ;;  %v7544_v56 = vpack.c.bf16 %v2009_v45, %v2008_v50 }
 0x20d   : > { %v8952_v57 = vunpack.i.h.bf16 %v8950_v18  ;;  %v8951_v58 = vunpack.i.l.bf16 %v8950_v18 }
 0x20e   : > { %7545 = vmatprep.subr.bf16.mxu1 %v7544_v56  ;;  %v4739_v15 = vsel %vm4731_vm8, %v8956_v54, %v8957_v51  ;;  %v4886_v51 = vld [vmem:[#allocation2 + $0x600] sm:$0xff] }
 0x20f   : > { %7547 = vmatpush3.bf16.msra.mxu1 %v7544_v56  ;;  %v8965_v59 = vpop.permute.xlu1 %8964  ;;  %v4738_v52 = vsel %vm4731_vm8, %v8951_v58, %v8952_v57 }
 0x210   : > { %v8967_v55 = vunpack.i.h.bf16 %v8965_v59  ;;  %v8966_v33 = vunpack.i.l.bf16 %v8965_v59  ;;  %v8960_v61 = vpop.permute.xlu0 %8959  ;;  %v7768_v5 = vpack.c.bf16 %v4739_v15, %v4738_v52 }
 0x211   : > { %v8962_v22 = vunpack.i.h.bf16 %v8960_v61  ;;  %v8961_v0 = vunpack.i.l.bf16 %v8960_v61 }
 0x212   : > { %7769 = vmatprep.subr.bf16.mxu0 %v7768_v5  ;;  %v2198_v23 = vsel %vm2196_vm9, %v8966_v33, %v8967_v55  ;;  %6905 = vmatmul.mubr.msk.f32.vlgmr.msra.gmra.mrb[0].mxu1 %vm336_vm0, %v1962_v60 }
 0x213   : > { %7771 = vmatpush3.bf16.msra.mxu0 %v7768_v5  ;;  %v8975_v1 = vpop.permute.xlu1 %8974  ;;  %v2197_v4 = vsel %vm2196_vm9, %v8961_v0, %v8962_v22  ;;  %6907 = vmatprep.mubr.msk.f32.mxu1 %vm336_vm0, %v1963_v63 }
 0x214   : > { %v8977_v8 = vunpack.i.h.bf16 %v8975_v1  ;;  %v8976_v6 = vunpack.i.l.bf16 %v8975_v1  ;;  %v8970_v21 = vpop.permute.xlu0 %8969  ;;  %v7548_v12 = vpack.c.bf16 %v2198_v23, %v2197_v4 }
 0x215   : > { %v8972_v24 = vunpack.i.h.bf16 %v8970_v21  ;;  %v8971_v25 = vunpack.i.l.bf16 %v8970_v21 }
 0x216   : > { %7549 = vmatprep.subr.bf16.mxu1 %v7548_v12  ;;  %v4928_v19 = vsel %vm4926_vm10, %v8976_v6, %v8977_v8  ;;  %7297 = vmatmul.mubr.msk.f32.vlgmr.msra.gmra.mrb[0].mxu0 %vm336_vm0, %v4692_v2 }
 0x217   : > { %7551 = vmatpush3.bf16.msra.mxu1 %v7548_v12  ;;  %v8985_v3 = vpop.permute.xlu1 %8984  ;;  %v4927_v9 = vsel %vm4926_vm10, %v8971_v25, %v8972_v24  ;;  %7299 = vmatprep.mubr.msk.f32.mxu0 %vm336_vm0, %v4693_v13 }
 0x218   : > { %v8987_v7 = vunpack.i.h.bf16 %v8985_v3  ;;  %v8986_v14 = vunpack.i.l.bf16 %v8985_v3  ;;  %v8980_v28 = vpop.permute.xlu0 %8979  ;;  %v7772_v46 = vpack.c.bf16 %v4928_v19, %v4927_v9  ;;  %6908 = vmatmul.mubr.msk.f32.gmra.mrb[2].mxu1 %vm336_vm0, %v1964_v26  ;;  %v2157_v3 = vld [vmem:[#allocation2 + $0x288] sm:$0xff] }
 0x219   : > { %v8982_v29 = vunpack.i.h.bf16 %v8980_v28  ;;  %v8981_v30 = vunpack.i.l.bf16 %v8980_v28  ;;  %6910 = vmatprep.mubr.msk.f32.mxu1 %vm336_vm0, %v1965_v11  ;;  %v4887_v28 = vld [vmem:[#allocation2 + $0x608] sm:$0xff] }
 0x21a   : > { %7773 = vmatprep.subr.bf16.mxu0 %v7772_v46  ;;  %v2200_v32 = vsel %vm2196_vm9, %v8986_v14, %v8987_v7  ;;  %7300 = vmatmul.mubr.msk.f32.gmra.mrb[2].mxu0 %vm336_vm0, %v4694_v27  ;;  %v2158_v7 = vld [vmem:[#allocation2 + $0x290] sm:$0xff]  ;;  %v2159_v14 = vld [vmem:[#allocation2 + $0x298] sm:$0xff] }
 0x21b   : > { %7775 = vmatpush3.bf16.msra.mxu0 %v7772_v46  ;;  %v8995_v20 = vpop.permute.xlu1 %8994  ;;  %v2199_v34 = vsel %vm2196_vm9, %v8981_v30, %v8982_v29  ;;  %7302 = vmatprep.mubr.msk.f32.mxu0 %vm336_vm0, %v4695_v48  ;;  %v2160_v46 = vld [vmem:[#allocation2 + $0x2a0] sm:$0xff]  ;;  %v4888_v48 = vld [vmem:[#allocation2 + $0x610] sm:$0xff]  ;;  %v2161_v29 = vld [vmem:[#allocation2 + $0x2a8] sm:$0xff] }
 0x21c   : > { %v8997_v47 = vunpack.i.h.bf16 %v8995_v20  ;;  %v8996_v36 = vunpack.i.l.bf16 %v8995_v20  ;;  %v8990_v37 = vpop.permute.xlu0 %8989  ;;  %v7552_v10 = vpack.c.bf16 %v2200_v32, %v2199_v34  ;;  %6911 = vmatmul.mubr.msk.f32.gmra.mrb[4].mxu1 %vm336_vm0, %v1966_v17  ;;  %v4889_v30 = vld [vmem:[#allocation2 + $0x618] sm:$0xff]  ;;  %v2162_v17 = vld [vmem:[#allocation2 + $0x2b0] sm:$0xff]  ;;  %v4890_v32 = vld [vmem:[#allocation2 + $0x620] sm:$0xff] }
 0x21d   : > { %v8992_v39 = vunpack.i.h.bf16 %v8990_v37  ;;  %v8991_v62 = vunpack.i.l.bf16 %v8990_v37  ;;  %6913 = vmatprep.mubr.msk.f32.mxu1 %vm336_vm0, %v1967_v49  ;;  %v2163_v49 = vld [vmem:[#allocation2 + $0x2b8] sm:$0xff]  ;;  %v4891_v20 = vld [vmem:[#allocation2 + $0x628] sm:$0xff]  ;;  %v4892_v34 = vld [vmem:[#allocation2 + $0x630] sm:$0xff] }
 0x21e   : > { %7553 = vmatprep.subr.bf16.mxu1 %v7552_v10  ;;  %v4930_v53 = vsel %vm4926_vm10, %v8996_v36, %v8997_v47  ;;  %7303 = vmatmul.mubr.msk.f32.gmra.mrb[4].mxu0 %vm336_vm0, %v4696_v35  ;;  %v4893_v35 = vld [vmem:[#allocation2 + $0x638] sm:$0xff] }
 0x21f   : > { %7555 = vmatpush3.bf16.msra.mxu1 %v7552_v10  ;;  %v9005_v41 = vpop.permute.xlu1 %9004  ;;  %v4929_v42 = vsel %vm4926_vm10, %v8991_v62, %v8992_v39  ;;  %7305 = vmatprep.mubr.msk.f32.mxu0 %vm336_vm0, %v4697_v38 }
 0x220   : > { %v9007_v44 = vunpack.i.h.bf16 %v9005_v41  ;;  %v9006_v45 = vunpack.i.l.bf16 %v9005_v41  ;;  %v9000_v16 = vpop.permute.xlu0 %8999  ;;  %v7776_v50 = vpack.c.bf16 %v4930_v53, %v4929_v42  ;;  %6914 = vmatmul.mubr.msk.f32.gmra.mrb[6].mxu1 %vm336_vm0, %v1968_v31 }
 0x221   : > { %v9002_v54 = vunpack.i.h.bf16 %v9000_v16  ;;  %v9001_v18 = vunpack.i.l.bf16 %v9000_v16  ;;  %6932 = vmatprep.mubr.msk.f32.mxu1 %vm336_vm0, %v2156_v40 }
 0x222   : > { %7777 = vmatprep.subr.bf16.mxu0 %v7776_v50  ;;  %v2202_v56 = vsel %vm2196_vm9, %v9006_v45, %v9007_v44  ;;  %7306 = vmatmul.mubr.msk.f32.gmra.mrb[6].mxu0 %vm336_vm0, %v4698_v43 }
 0x223   : > { %7779 = vmatpush3.bf16.msra.mxu0 %v7776_v50  ;;  %v9015_v57 = vpop.permute.xlu1 %9014  ;;  %v2201_v58 = vsel %vm2196_vm9, %v9001_v18, %v9002_v54  ;;  %7324 = vmatprep.mubr.msk.f32.mxu0 %vm336_vm0, %v4886_v51 }
 0x224   : > { %v9017_v15 = vunpack.i.h.bf16 %v9015_v57  ;;  %v9016_v59 = vunpack.i.l.bf16 %v9015_v57  ;;  %v9010_v52 = vpop.permute.xlu0 %9009  ;;  %v7556_v60 = vpack.c.bf16 %v2202_v56, %v2201_v58 }
 0x225   : > { %v9012_v55 = vunpack.i.h.bf16 %v9010_v52  ;;  %v9011_v33 = vunpack.i.l.bf16 %v9010_v52 }
 0x226   : > { %7557 = vmatprep.subr.bf16.mxu1 %v7556_v60  ;;  %v4932_v61 = vsel %vm4926_vm10, %v9016_v59, %v9017_v15 }
 0x227   : > { %7559 = vmatpush3.bf16.msra.mxu1 %v7556_v60  ;;  %v9025_v5 = vpop.permute.xlu1 %9024  ;;  %v4931_v63 = vsel %vm4926_vm10, %v9011_v33, %v9012_v55 }
 0x228   : > { %v9027_v22 = vunpack.i.h.bf16 %v9025_v5  ;;  %v9026_v0 = vunpack.i.l.bf16 %v9025_v5  ;;  %v9020_v23 = vpop.permute.xlu0 %9019  ;;  %v7780_v1 = vpack.c.bf16 %v4932_v61, %v4931_v63 }
 0x229   : > { %v9022_v4 = vunpack.i.h.bf16 %v9020_v23  ;;  %v9021_v2 = vunpack.i.l.bf16 %v9020_v23 }
 0x22a   : > { %7781 = vmatprep.subr.bf16.mxu0 %v7780_v1  ;;  %v2204_v8 = vsel %vm2196_vm9, %v9026_v0, %v9027_v22 }
 0x22b   : > { %7783 = vmatpush3.bf16.msra.mxu0 %v7780_v1  ;;  %v9035_v6 = vpop.permute.xlu1 %9034  ;;  %v2203_v21 = vsel %vm2196_vm9, %v9021_v2, %v9022_v4 }
 0x22c   : > { %v9037_v12 = vunpack.i.h.bf16 %v9035_v6  ;;  %v9036_v13 = vunpack.i.l.bf16 %v9035_v6  ;;  %v9030_v24 = vpop.permute.xlu0 %9029  ;;  %v7560_v25 = vpack.c.bf16 %v2204_v8, %v2203_v21 }
 0x22d   : > { %v9032_v26 = vunpack.i.h.bf16 %v9030_v24  ;;  %v9031_v19 = vunpack.i.l.bf16 %v9030_v24 }
 0x22e   : > { %7561 = vmatprep.subr.bf16.mxu1 %v7560_v25  ;;  %v4934_v11 = vsel %vm4926_vm10, %v9036_v13, %v9037_v12 }
 0x22f   : > { %7563 = vmatpush3.bf16.msra.mxu1 %v7560_v25  ;;  %v4933_v9 = vsel %vm4926_vm10, %v9031_v19, %v9032_v26 }
 0x230   : > { %v7784_v27 = vpack.c.bf16 %v4934_v11, %v4933_v9 }
 0x232   : > { %6933 = vmatmul.mubr.msk.f32.vlgmr.msra.gmra.mrb[0].mxu1 %vm336_vm0, %v2157_v3  ;;  %7785 = vmatprep.subr.bf16.mxu0 %v7784_v27 }
 0x233   : > { %7787 = vmatpush3.bf16.msra.mxu0 %v7784_v27  ;;  %6935 = vmatprep.mubr.msk.f32.mxu1 %vm336_vm0, %v2158_v7 }
 0x236   : > { %6936 = vmatmul.mubr.msk.f32.gmra.mrb[2].mxu1 %vm336_vm0, %v2159_v14  ;;  %7325 = vmatmul.mubr.msk.f32.vlgmr.msra.gmra.mrb[0].mxu0 %vm336_vm0, %v4887_v28 }
 0x237   : > { %6938 = vmatprep.mubr.msk.f32.mxu1 %vm336_vm0, %v2160_v46  ;;  %7327 = vmatprep.mubr.msk.f32.mxu0 %vm336_vm0, %v4888_v48 }
 0x23a   : > { %6939 = vmatmul.mubr.msk.f32.gmra.mrb[4].mxu1 %vm336_vm0, %v2161_v29  ;;  %7328 = vmatmul.mubr.msk.f32.gmra.mrb[2].mxu0 %vm336_vm0, %v4889_v30 }
 0x23b   : > { %6941 = vmatprep.mubr.msk.f32.mxu1 %vm336_vm0, %v2162_v17  ;;  %7330 = vmatprep.mubr.msk.f32.mxu0 %vm336_vm0, %v4890_v32 }
 0x23d   : > { %v5096_v47 = vpop.permute.xlu1 %5095 }
 0x23e   : > { %6942 = vmatmul.mubr.msk.f32.gmra.mrb[6].mxu1 %vm336_vm0, %v2163_v49  ;;  %7331 = vmatmul.mubr.msk.f32.gmra.mrb[4].mxu0 %vm336_vm0, %v4891_v20  ;;  %v5091_v36 = vpop.permute.xlu0 %5090 }
 0x23f   : > { %7333 = vmatprep.mubr.msk.f32.mxu0 %vm336_vm0, %v4892_v34 }
 0x241   : > { %v5101_v38 = vpop.permute.xlu1 %5100 }
 0x242   : > { %7334 = vmatmul.mubr.msk.f32.gmra.mrb[6].mxu0 %vm336_vm0, %v4893_v35  ;;  %v5106_v39 = vpop.permute.xlu0 %5105 }
 0x245   : > { %v5111_v58 = vpop.permute.xlu1 %5110 }
 0x246   : > { %v5116_v15 = vpop.permute.xlu0 %5115 }
 0x249   : > { %v5121_v24 = vpop.permute.xlu1 %5120 }
 0x24a   : > { %v5126_v21 = vpop.permute.xlu0 %5125 }
 0x305   : > { %v6934_v37 = vpop.f32.mrb[0].mxu1 }
 0x306   : > { %v2303_v10 = vpop.f32.mrb[1].mxu1 }
 0x309   : > { %v6937_v62 = vpop.f32.mrb[2].mxu1  ;;  %v7326_v31 = vpop.f32.mrb[0].mxu0 }
 0x30a   : > { %v7804_v53 = vadd.f32 %v7326_v31, %v6934_v37  ;;  %v2313_v40 = vpop.f32.mrb[3].mxu1  ;;  %v5033_v41 = vpop.f32.mrb[1].mxu0 }
 0x30b   : > { %v7805_v42 = vadd.f32 %v5033_v41, %v2303_v10 }
 0x30c   : > { %v5129_v43 = vadd.f32 %v7804_v53, %v5096_v47 }
 0x30d   : > { %v5128_v44 = vadd.f32 %v7805_v42, %v5091_v36  ;;  %v6940_v45 = vpop.f32.mrb[4].mxu1  ;;  %v7329_v16 = vpop.f32.mrb[2].mxu0 }
 0x30e   : > { %v5145_v50 = vmul.f32 0.70710677, %v5129_v43  ;;  %v7806_v51 = vadd.f32 %v7329_v16, %v6937_v62  ;;  %v2323_v54 = vpop.f32.mrb[5].mxu1  ;;  %v5043_v18 = vpop.f32.mrb[3].mxu0  ;;  %v5137_v9 = vmul.f32 0.5, %v5129_v43 }
 0x30f   : > { %v5144_v56 = vmul.f32 0.70710677, %v5128_v44  ;;  %v7807_v57 = vadd.f32 %v5043_v18, %v2313_v40  ;;  %v5136_v14 = vmul.f32 0.5, %v5128_v44  ;;  %v9133_v18 = vld [vmem:[%s9394_s11 + $0x18] sm:$0xff] }
 0x310   : > { %9080 = verf.f32 %v5145_v50  ;;  %v5131_v59 = vadd.f32 %v7806_v51, %v5106_v39  ;;  %v9132_v51 = vld [vmem:[%s9394_s11 + $0x10] sm:$0xff] }
 0x311   : > { %9082 = verf.f32 %v5144_v56  ;;  %v5130_v52 = vadd.f32 %v7807_v57, %v5101_v38  ;;  %v6943_v60 = vpop.f32.mrb[6].mxu1  ;;  %v7332_v55 = vpop.f32.mrb[4].mxu0 }
 0x312   : > { %v5147_v33 = vmul.f32 0.70710677, %v5131_v59  ;;  %v7808_v61 = vadd.f32 %v7332_v55, %v6940_v45  ;;  %v2333_v5 = vpop.f32.mrb[7].mxu1  ;;  %v5053_v63 = vpop.f32.mrb[5].mxu0  ;;  %v5139_v17 = vmul.f32 0.5, %v5131_v59  ;;  %v9135_v59 = vld [vmem:[%s9394_s11 + $0x8] sm:$0xff] }
 0x313   : > { %v5146_v22 = vmul.f32 0.70710677, %v5130_v52  ;;  %v7809_v0 = vadd.f32 %v5053_v63, %v2323_v54  ;;  %v5138_v49 = vmul.f32 0.5, %v5130_v52 }
 0x314   : > { %9084 = verf.f32 %v5147_v33  ;;  %v5133_v23 = vadd.f32 %v7808_v61, %v5116_v15 }
 0x315   : > { %9086 = verf.f32 %v5146_v22  ;;  %v5132_v1 = vadd.f32 %v7809_v0, %v5111_v58  ;;  %v7335_v4 = vpop.f32.mrb[6].mxu0  ;;  %v9134_v58 = vld [vmem:[%s9394_s11] sm:$0xff]  ;;  %v9136_v22 = vld [vmem:[%s9394_s11 + $0x30] sm:$0xff] }
 0x316   : > { %v5149_v2 = vmul.f32 0.70710677, %v5133_v23  ;;  %v7810_v8 = vadd.f32 %v7335_v4, %v6943_v60  ;;  %v5063_v6 = vpop.f32.mrb[7].mxu0  ;;  %v5141_v37 = vmul.f32 0.5, %v5133_v23  ;;  %v9137_v23 = vld [vmem:[%s9394_s11 + $0x38] sm:$0xff]  ;;  %v9138_v4 = vld [vmem:[%s9394_s11 + $0x20] sm:$0xff] }
 0x317   : > { %v5148_v12 = vmul.f32 0.70710677, %v5132_v1  ;;  %v7811_v13 = vadd.f32 %v5063_v6, %v2333_v5  ;;  %v5140_v38 = vmul.f32 0.5, %v5132_v1 }
 0x318   : > { %9088 = verf.f32 %v5149_v2  ;;  %v5135_v25 = vadd.f32 %v7810_v8, %v5126_v21  ;;  %v9139_v8 = vld [vmem:[%s9394_s11 + $0x28] sm:$0xff] }
 0x319   : > { %9090 = verf.f32 %v5148_v12  ;;  %v5134_v26 = vadd.f32 %v7811_v13, %v5121_v24 }
 0x31a   : > { %v9081_v19 = vpop.eup %9080  ;;  %v5151_v11 = vmul.f32 0.70710677, %v5135_v25  ;;  %v5143_v41 = vmul.f32 0.5, %v5135_v25 }
 0x31b   : > { %v9083_v3 = vpop.eup %9082  ;;  %v5161_v27 = vadd.f32 1.0, %v9081_v19  ;;  %v5150_v7 = vmul.f32 0.70710677, %v5134_v26  ;;  %v5142_v43 = vmul.f32 0.5, %v5134_v26 }
 0x31c   : > { %v5160_v28 = vadd.f32 1.0, %v9083_v3  ;;  %9092 = verf.f32 %v5151_v11  ;;  %v9140_v11 = vld [vmem:[%s9394_s11 + $0x50] sm:$0xff] }
 0x31d   : > { %v5169_v46 = vmul.f32 %v5161_v27, %v5137_v9  ;;  %9094 = verf.f32 %v5150_v7  ;;  %v9141_v9 = vld [vmem:[%s9394_s11 + $0x58] sm:$0xff] }
 0x31e   : > { %v9085_v48 = vpop.eup %9084  ;;  %v5168_v29 = vmul.f32 %v5160_v28, %v5136_v14 }
 0x31f   : > { %v9087_v30 = vpop.eup %9086  ;;  %v5163_v32 = vadd.f32 1.0, %v9085_v48  ;;  %5186 = vrot.lane.b32.xlu0 %v5169_v46, %s9272_s9  ;;  %v9142_v46 = vld [vmem:[%s9394_s11 + $0x40] sm:$0xff] }
 0x320   : > { %v5162_v20 = vadd.f32 1.0, %v9087_v30  ;;  %5184 = vrot.lane.b32.xlu1 %v5168_v29, %s9272_s9  ;;  %v9143_v29 = vld [vmem:[%s9394_s11 + $0x48] sm:$0xff] }
 0x321   : > { %v5171_v34 = vmul.f32 %v5163_v32, %v5139_v17 }
 0x322   : > { %v9089_v35 = vpop.eup %9088  ;;  %v5170_v47 = vmul.f32 %v5162_v20, %v5138_v49 }
 0x323   : > { %v9091_v36 = vpop.eup %9090  ;;  %v5165_v10 = vadd.f32 1.0, %v9089_v35  ;;  %5190 = vrot.lane.b32.xlu0 %v5171_v34, %s9272_s9 }
 0x324   : > { %v5164_v39 = vadd.f32 1.0, %v9091_v36  ;;  %5188 = vrot.lane.b32.xlu1 %v5170_v47, %s9272_s9 }
 0x325   : > { %v5173_v62 = vmul.f32 %v5165_v10, %v5141_v37 }
 0x326   : > { %v9093_v31 = vpop.eup %9092  ;;  %v5172_v53 = vmul.f32 %v5164_v39, %v5140_v38  ;;  %v9144_v38 = vld [vmem:[%s9394_s11 + $0x70] sm:$0xff] }
 0x327   : > { %v9095_v40 = vpop.eup %9094  ;;  %v5167_v42 = vadd.f32 1.0, %v9093_v31  ;;  %5194 = vrot.lane.b32.xlu0 %v5173_v62, %s9272_s9  ;;  %v9145_v62 = vld [vmem:[%s9394_s11 + $0x78] sm:$0xff] }
 0x328   : > { %v5166_v44 = vadd.f32 1.0, %v9095_v40  ;;  %5192 = vrot.lane.b32.xlu1 %v5172_v53, %s9272_s9  ;;  %v9146_v53 = vld [vmem:[%s9394_s11 + $0x60] sm:$0xff] }
 0x329   : > { %v5175_v45 = vmul.f32 %v5167_v42, %v5143_v41  ;;  %v9147_v41 = vld [vmem:[%s9394_s11 + $0x68] sm:$0xff]  ;;  %s230_s11 = sand.u32 1, %s9234_s19  }
 0x32a   : > { %v5174_v16 = vmul.f32 %v5166_v44, %v5142_v43  ;;  %s7996_s10 = smul.u32 192, %s230_s11  ;;  %s10671_s22 = scalar_lea.sflag [#allocation4], %s230_s11 }
 0x32b   : > { %5198 = vrot.lane.b32.xlu0 %v5175_v45, %s9272_s9 }
 0x32c   : > { %5196 = vrot.lane.b32.xlu1 %v5174_v16, %s9272_s9  ;;  %s10634_s8 = scalar_lea.vmem [#allocation5], %s7996_s10 }
 0x32d   : > { %s5894_s12 = sshll.u32 %s10634_s8, 4  ;;  %s10660_s12 = int_to_ptr.vmem [resolvable:$true] %s5894_s12 }
 0x32e   : > { %s9176_s16 = scalar_lea.vmem %s10660_s12, 3072 }
 0x32f   : > { %p9177_p6 = scmp.ne.s32.totalorder %s10660_s12, %s9176_s16 }
 0x331   : > { %p9178_p10 = pnand %p9177_p6, %p10728_p9 }
 0x333   : > { %p9179_p12 = pneg %p9178_p10 }
 0x391   : > { %v5187_v50 = vpop.permute.xlu0 %5186 }
 0x392   : > { %v10276_v54 = vadd.f32 %v9132_v51, %v5187_v50  ;;  %v10279_v56 = vadd.f32 %v9133_v18, %v5187_v50  ;;  %v5185_v57 = vpop.permute.xlu1 %5184 }
 0x393   : > { %v10282_v15 = vadd.f32 %v9134_v58, %v5185_v57  ;;  %v10285_v52 = vadd.f32 %v9135_v59, %v5185_v57 }
 0x394   : > { %v5226_v60 = vsel %vm5224_vm11, %v10276_v54, 0.0  ;;  %v5248_v55 = vsel %vm5246_vm12, %v10279_v56, 0.0 }
 0x395   : > { %v5225_v33 = vsel %vm5224_vm11, %v10282_v15, 0.0  ;;  %v5247_v61 = vsel %vm5246_vm12, %v10285_v52, 0.0  ;;  %v5191_v5 = vpop.permute.xlu0 %5190 }
 0x396   : > { %v5189_v63 = vpop.permute.xlu1 %5188  ;;  %v10296_v0 = vadd.f32 %v9136_v22, %v5191_v5  ;;  %v10299_v1 = vadd.f32 %v9137_v23, %v5191_v5  ;;  %v5227_v21 = vadd.f32 %v5226_v60, %v5225_v33  ;;  %v5249_v12 = vadd.f32 %v5248_v55, %v5247_v61 }
 0x397   : > { %v10302_v2 = vadd.f32 %v9138_v4, %v5189_v63  ;;  %v10305_v6 = vadd.f32 %v9139_v8, %v5189_v63 }
 0x398   : > { %v5230_v14 = vsel %vm5224_vm11, %v10296_v0, 0.0  ;;  %v5252_v28 = vsel %vm5246_vm12, %v10299_v1, 0.0 }
 0x399   : > { %v5228_v13 = vsel %vm5224_vm11, %v10302_v2, 0.0  ;;  %v5250_v24 = vsel %vm5246_vm12, %v10305_v6, 0.0  ;;  %v5195_v25 = vpop.permute.xlu0 %5194 }
 0x39a   : > { %v5229_v26 = vadd.f32 %v5228_v13, %v5227_v21  ;;  %v5251_v19 = vadd.f32 %v5250_v24, %v5249_v12  ;;  %v10312_v3 = vadd.f32 %v9140_v11, %v5195_v25  ;;  %v10315_v27 = vadd.f32 %v9141_v9, %v5195_v25  ;;  %v5193_v7 = vpop.permute.xlu1 %5192 }
 0x39b   : > { %v5216_v48 = vadd.f32 %v9142_v46, %v5193_v7  ;;  %v5217_v30 = vadd.f32 %v9143_v29, %v5193_v7 }
 0x39c   : > { %v5231_v17 = vadd.f32 %v5230_v14, %v5229_v26  ;;  %v5253_v32 = vadd.f32 %v5252_v28, %v5251_v19  ;;  %v5234_v35 = vsel %vm5224_vm11, %v10312_v3, 0.0  ;;  %v5256_v47 = vsel %vm5246_vm12, %v10315_v27, 0.0 }
 0x39d   : > { %v5232_v49 = vsel %vm5224_vm11, %v5216_v48, 0.0  ;;  %v5254_v20 = vsel %vm5246_vm12, %v5217_v30, 0.0  ;;  %v5199_v34 = vpop.permute.xlu0 %5198 }
 0x39e   : > { %v5233_v36 = vadd.f32 %v5232_v49, %v5231_v17  ;;  %v5255_v37 = vadd.f32 %v5254_v20, %v5253_v32  ;;  %v5197_v10 = vpop.permute.xlu1 %5196  ;;  %v5222_v39 = vadd.f32 %v9144_v38, %v5199_v34  ;;  %v10331_v31 = vadd.f32 %v9145_v62, %v5199_v34 }
 0x39f   : > { %v5220_v40 = vadd.f32 %v9146_v53, %v5197_v10  ;;  %v5221_v42 = vadd.f32 %v9147_v41, %v5197_v10 }
 0x3a0   : > { %v5235_v43 = vadd.f32 %v5234_v35, %v5233_v36  ;;  %v5257_v44 = vadd.f32 %v5256_v47, %v5255_v37  ;;  %v5238_v18 = vsel %vm5224_vm11, %v5222_v39, 0.0  ;;  %v5260_v57 = vsel %vm5246_vm12, %v10331_v31, 0.0 }
 0x3a1   : > { %v5236_v45 = vsel %vm5224_vm11, %v5220_v40, 0.0  ;;  %v5258_v16 = vsel %vm5246_vm12, %v5221_v42, 0.0 }
 0x3a2   : > { %v5237_v50 = vadd.f32 %v5236_v45, %v5235_v43  ;;  %v5259_v51 = vadd.f32 %v5258_v16, %v5257_v44 }
 0x3a4   : > { %v5239_v58 = vadd.f32 %v5238_v18, %v5237_v50  ;;  %v5261_v59 = vadd.f32 %v5260_v57, %v5259_v51 }
 0x3a6   : > { %v5240_v60 = vrot.slane %v5239_v58, 4  ;;  %v5262_v55 = vrot.slane %v5261_v59, 4 }
 0x3a8   : > { %v5241_v33 = vadd.f32 %v5240_v60, %v5239_v58  ;;  %v5263_v61 = vadd.f32 %v5262_v55, %v5261_v59 }
 0x3aa   : > { %v5242_v5 = vrot.slane %v5241_v33, 2  ;;  %v5264_v63 = vrot.slane %v5263_v61, 2 }
 0x3ac   : > { %v5243_v22 = vadd.f32 %v5242_v5, %v5241_v33  ;;  %v5265_v23 = vadd.f32 %v5264_v63, %v5263_v61 }
 0x3ae   : > { %v5244_v4 = vrot.slane %v5243_v22, 1  ;;  %v5266_v8 = vrot.slane %v5265_v23, 1 }
 0x3b0   : > { %v5245_v21 = vadd.f32 %v5244_v4, %v5243_v22  ;;  %v5267_v12 = vadd.f32 %v5266_v8, %v5265_v23 }
 0x3b2   : > { %v5269_v13 = vmul.f32 0.015625, %v5245_v21  ;;  %v5270_v24 = vmul.f32 0.015625, %v5267_v12 }
 0x3b4   : > { %v10341_v25 = vsub.f32 %v10282_v15, %v5269_v13  ;;  %v10344_v26 = vsub.f32 %v10276_v54, %v5269_v13  ;;  %v10347_v19 = vsub.f32 %v10285_v52, %v5270_v24  ;;  %v10350_v11 = vsub.f32 %v10279_v56, %v5270_v24 }
 0x3b5   : > { %v10353_v9 = vsub.f32 %v10302_v2, %v5269_v13  ;;  %v10356_v7 = vsub.f32 %v10305_v6, %v5270_v24  ;;  %v10359_v14 = vsub.f32 %v10296_v0, %v5269_v13  ;;  %v10366_v52 = vsub.f32 %v10299_v1, %v5270_v24 }
 0x3b6   : > { %v5287_v15 = vmul.f32 %v10341_v25, %v10341_v25  ;;  %v5289_v54 = vmul.f32 %v10344_v26, %v10344_v26  ;;  %v10368_v56 = vsub.f32 %v5216_v48, %v5269_v13  ;;  %v5288_v2 = vmul.f32 %v10347_v19, %v10347_v19 }
 0x3b7   : > { %v5290_v6 = vmul.f32 %v10350_v11, %v10350_v11  ;;  %v5291_v0 = vmul.f32 %v10353_v9, %v10353_v9  ;;  %v10376_v28 = vsub.f32 %v5217_v30, %v5270_v24  ;;  %v10379_v46 = vsub.f32 %v10312_v3, %v5269_v13 }
 0x3b8   : > { %v5292_v1 = vmul.f32 %v10356_v7, %v10356_v7  ;;  %v5293_v48 = vmul.f32 %v10359_v14, %v10359_v14  ;;  %v5303_v29 = vsel %vm5224_vm11, %v5287_v15, 0.0  ;;  %v5304_v17 = vsel %vm5224_vm11, %v5289_v54, 0.0 }
 0x3b9   : > { %v10388_v32 = vsub.f32 %v10315_v27, %v5270_v24  ;;  %v10390_v49 = vsub.f32 %v5220_v40, %v5269_v13  ;;  %v5294_v30 = vmul.f32 %v10366_v52, %v10366_v52  ;;  %v5305_v3 = vadd.f32 %v5304_v17, %v5303_v29 }
 0x3ba   : > { %v5295_v20 = vmul.f32 %v10368_v56, %v10368_v56  ;;  %v5306_v34 = vsel %vm5224_vm11, %v5291_v0, 0.0  ;;  %v5324_v35 = vsel %vm5246_vm12, %v5288_v2, 0.0  ;;  %v5325_v47 = vsel %vm5246_vm12, %v5290_v6, 0.0 }
 0x3bb   : > { %v10399_v36 = vsub.f32 %v5221_v42, %v5270_v24  ;;  %v10401_v37 = vsub.f32 %v5222_v39, %v5269_v13  ;;  %v5307_v27 = vadd.f32 %v5306_v34, %v5305_v3  ;;  %v5326_v10 = vadd.f32 %v5325_v47, %v5324_v35 }
 0x3bc   : > { %v5296_v38 = vmul.f32 %v10376_v28, %v10376_v28  ;;  %v5297_v62 = vmul.f32 %v10379_v46, %v10379_v46  ;;  %v5308_v53 = vsel %vm5224_vm11, %v5293_v48, 0.0  ;;  %v5327_v40 = vsel %vm5246_vm12, %v5292_v1, 0.0 }
 0x3bd   : > { %v10410_v41 = vsub.f32 %v10331_v31, %v5270_v24  ;;  %v5309_v43 = vadd.f32 %v5308_v53, %v5307_v27  ;;  %v5328_v42 = vadd.f32 %v5327_v40, %v5326_v10  ;;  %v5298_v39 = vmul.f32 %v10388_v32, %v10388_v32 }
 0x3be   : > { %v5299_v44 = vmul.f32 %v10390_v49, %v10390_v49  ;;  %v5310_v45 = vsel %vm5224_vm11, %v5295_v20, 0.0  ;;  %v5329_v16 = vsel %vm5246_vm12, %v5294_v30, 0.0  ;;  %v5300_v18 = vmul.f32 %v10399_v36, %v10399_v36 }
 0x3bf   : > { %v5311_v50 = vadd.f32 %v5310_v45, %v5309_v43  ;;  %v5330_v51 = vadd.f32 %v5329_v16, %v5328_v42  ;;  %v5301_v31 = vmul.f32 %v10401_v37, %v10401_v37  ;;  %v5312_v57 = vsel %vm5224_vm11, %v5297_v62, 0.0 }
 0x3c0   : > { %v5331_v58 = vsel %vm5246_vm12, %v5296_v38, 0.0  ;;  %v5302_v55 = vmul.f32 %v10410_v41, %v10410_v41  ;;  %v5314_v33 = vsel %vm5224_vm11, %v5299_v44, 0.0  ;;  %v5333_v61 = vsel %vm5246_vm12, %v5298_v39, 0.0 }
 0x3c1   : > { %v5313_v59 = vadd.f32 %v5312_v57, %v5311_v50  ;;  %v5332_v60 = vadd.f32 %v5331_v58, %v5330_v51  ;;  %v5316_v22 = vsel %vm5224_vm11, %v5301_v31, 0.0  ;;  %v5335_v23 = vsel %vm5246_vm12, %v5300_v18, 0.0  ;;  %v5393_v51 = vld [vmem:[%s10716_s4 + $0x10] sm:$0xff]  ;;  %v5396_v18 = vld [vmem:[%s10716_s4 + $0x28] sm:$0xff]  ;;  %v5395_v31 = vld [vmem:[%s10716_s4 + $0x20] sm:$0xff] }
 0x3c2   : > { %v5337_v21 = vsel %vm5246_vm12, %v5302_v55, 0.0  ;;  %v5398_v57 = vld [vmem:[%s10716_s4 + $0x38] sm:$0xff]  ;;  %v5397_v58 = vld [vmem:[%s10716_s4 + $0x30] sm:$0xff] }
 0x3c3   : > { %v5315_v5 = vadd.f32 %v5314_v33, %v5313_v59  ;;  %v5334_v63 = vadd.f32 %v5333_v61, %v5332_v60  ;;  %v5400_v59 = vld [vmem:[%s10716_s4 + $0x48] sm:$0xff]  ;;  %v5399_v60 = vld [vmem:[%s10716_s4 + $0x40] sm:$0xff]  ;;  %v5402_v55 = vld [vmem:[%s10716_s4 + $0x58] sm:$0xff] }
 0x3c4   : > { %v5401_v33 = vld [vmem:[%s10716_s4 + $0x50] sm:$0xff]  ;;  %v5404_v61 = vld [vmem:[%s10716_s4 + $0x68] sm:$0xff] }
 0x3c5   : > { %v5317_v4 = vadd.f32 %v5316_v22, %v5315_v5  ;;  %v5336_v8 = vadd.f32 %v5335_v23, %v5334_v63  ;;  %v5403_v5 = vld [vmem:[%s10716_s4 + $0x60] sm:$0xff]  ;;  %v5406_v63 = vld [vmem:[%s10716_s4 + $0x78] sm:$0xff]  ;;  %v5405_v22 = vld [vmem:[%s10716_s4 + $0x70] sm:$0xff] }
 0x3c6   : > { %v5408_v23 = vld [vmem:[%s10716_s4 + $0x88] sm:$0xff] }
 0x3c7   : > { %v5318_v12 = vrot.slane %v5317_v4, 4  ;;  %v5338_v13 = vadd.f32 %v5337_v21, %v5336_v8  ;;  %v5410_v8 = vld [vmem:[%s10716_s4 + $0x98] sm:$0xff]  ;;  %v5409_v21 = vld [vmem:[%s10716_s4 + $0x90] sm:$0xff] }
 0x3c9   : > { %v5319_v24 = vadd.f32 %v5318_v12, %v5317_v4  ;;  %v5339_v15 = vrot.slane %v5338_v13, 4  ;;  %v5407_v4 = vld [vmem:[%s10716_s4 + $0x80] sm:$0xff]  ;;  %v5412_v12 = vld [vmem:[%s10716_s4 + $0xa8] sm:$0xff] }
 0x3cb   : > { %v5320_v54 = vrot.slane %v5319_v24, 2  ;;  %v5340_v2 = vadd.f32 %v5339_v15, %v5338_v13  ;;  %v5411_v13 = vld [vmem:[%s10716_s4 + $0xa0] sm:$0xff]  ;;  %v5413_v15 = vld [vmem:[%s10716_s4 + $0xb0] sm:$0xff] }
 0x3cd   : > { %v5321_v6 = vadd.f32 %v5320_v54, %v5319_v24  ;;  %v5341_v0 = vrot.slane %v5340_v2, 2  ;;  %v5414_v24 = vld [vmem:[%s10716_s4 + $0xb8] sm:$0xff] }
 0x3cf   : > { %v5322_v1 = vrot.slane %v5321_v6, 1  ;;  %v5342_v48 = vadd.f32 %v5341_v0, %v5340_v2 }
 0x3d1   : > { %v5323_v29 = vadd.f32 %v5322_v1, %v5321_v6  ;;  %v5343_v17 = vrot.slane %v5342_v48, 1 }
 0x3d3   : > { %v5344_v30 = vadd.f32 %v5343_v17, %v5342_v48  ;;  %v5345_v3 = vmul.f32 0.015625, %v5323_v29 }
 0x3d5   : > { %v5346_v20 = vmul.f32 0.015625, %v5344_v30  ;;  %v5347_v34 = vadd.f32 1e-05, %v5345_v3 }
 0x3d7   : > { %v5348_v35 = vadd.f32 1e-05, %v5346_v20  ;;  %9096 = vrsqrt.f32 %v5347_v34 }
 0x3d9   : > { %9098 = vrsqrt.f32 %v5348_v35 }
 0x3e1   : > { %v9097_v47 = vpop.eup %9096 }
 0x3e2   : > { %v5353_v27 = vmul.f32 %v9097_v47, %v10344_v26  ;;  %v5351_v10 = vmul.f32 %v9097_v47, %v10341_v25  ;;  %v5357_v40 = vmul.f32 %v9097_v47, %v10359_v14  ;;  %v5355_v43 = vmul.f32 %v9097_v47, %v10353_v9 }
 0x3e3   : > { %v9099_v38 = vpop.eup %9098  ;;  %v5361_v25 = vmul.f32 %v9097_v47, %v10379_v46  ;;  %v5359_v26 = vmul.f32 %v9097_v47, %v10368_v56  ;;  %v5367_v46 = vld [vmem:[%s10715_s3] sm:$0xff] }
 0x3e4   : > { %v5354_v62 = vmul.f32 %v9099_v38, %v10350_v11  ;;  %v5352_v53 = vmul.f32 %v9099_v38, %v10347_v19  ;;  %v5358_v44 = vmul.f32 %v9099_v38, %v10366_v52  ;;  %v5356_v45 = vmul.f32 %v9099_v38, %v10356_v7  ;;  %7352 = vmatprep.mubr.msk.f32.mxu1 %vm336_vm0, %v5367_v46 }
 0x3e5   : > { %v5362_v14 = vmul.f32 %v9099_v38, %v10388_v32  ;;  %v5360_v9 = vmul.f32 %v9099_v38, %v10376_v28  ;;  %v5363_v7 = vmul.f32 %v9097_v47, %v10390_v49  ;;  %v5365_v52 = vmul.f32 %v9097_v47, %v10401_v37  ;;  %v5391_v37 = vld [vmem:[%s10716_s4] sm:$0xff] }
 0x3e6   : > { %v9045_v42 = vpack.i.bf16 %v5354_v62, %v5353_v27  ;;  %v9040_v39 = vpack.i.bf16 %v5352_v53, %v5351_v10  ;;  %v9055_v11 = vpack.i.bf16 %v5358_v44, %v5357_v40  ;;  %v9050_v19 = vpack.i.bf16 %v5356_v45, %v5355_v43 }
 0x3e7   : > { %v5364_v56 = vmul.f32 %v9099_v38, %v10399_v36  ;;  %v9065_v16 = vpack.i.bf16 %v5362_v14, %v5361_v25  ;;  %v9060_v50 = vpack.i.bf16 %v5360_v9, %v5359_v26  ;;  %v5366_v32 = vmul.f32 %v9099_v38, %v10410_v41  ;;  %v5392_v36 = vld [vmem:[%s10716_s4 + $0x8] sm:$0xff]  ;;  %v5394_v41 = vld [vmem:[%s10716_s4 + $0x18] sm:$0xff] }
 0x3e8   : > { %9046 = vrot.lane.b32.xlu0 %v9045_v42, %s9248_s7  ;;  %9041 = vrot.lane.b32.xlu1 %v9040_v39, %s9248_s7 }
 0x3e9   : > { %v9075_v28 = vpack.i.bf16 %v5366_v32, %v5365_v52  ;;  %v9070_v49 = vpack.i.bf16 %v5364_v56, %v5363_v7  ;;  %v5369_v32 = vld [vmem:[%s10715_s3 + $0x10] sm:$0xff] }
 0x3ec   : > { %9056 = vrot.lane.b32.xlu0 %v9055_v11, %s9248_s7  ;;  %9051 = vrot.lane.b32.xlu1 %v9050_v19, %s9248_s7 }
 0x3f0   : > { %9066 = vrot.lane.b32.xlu0 %v9065_v16, %s9248_s7  ;;  %9061 = vrot.lane.b32.xlu1 %v9060_v50, %s9248_s7  ;;  %v5368_v50 = vld [vmem:[%s10715_s3 + $0x8] sm:$0xff] }
 0x3f4   : > { %9076 = vrot.lane.b32.xlu0 %v9075_v28, %s9248_s7  ;;  %9071 = vrot.lane.b32.xlu1 %v9070_v49, %s9248_s7  ;;  %v5370_v28 = vld [vmem:[%s10715_s3 + $0x18] sm:$0xff]  ;;  %v5371_v49 = vld [vmem:[%s10715_s3 + $0x20] sm:$0xff]  ;;  %s9180_s7 = sshll.u32 %s9273_s17, 4  ;;  %s9181_s7 = int_to_ptr.vmem [resolvable:$false] %s9180_s7 }
 0x3f5   : > { %s9182_s23 = scalar_lea.vmem %s9181_s7, 6144  ;;  %p9183_p2 = scmp.lt.s32.totalorder %s10660_s12, %s9181_s7 }
 0x3f6   : > { %p9184_p3 = scmp.lt.s32.totalorder %s9182_s23, %s9176_s16 }
 0x3f8   : > { %5422 = vperm.xlu0 %9038, %v5392_v36   ;;  %5417 = vperm.xlu1 %9039, %v5391_v37   ;;  %v5372_v36 = vld [vmem:[%s10715_s3 + $0x28] sm:$0xff]  ;;  %v5373_v37 = vld [vmem:[%s10715_s3 + $0x30] sm:$0xff]  ;;  %p9185_p4 = por %p9184_p3, %p9183_p2 }
 0x3fa   : > { %p9186_p7 = pnand %p9185_p4, %p9179_p12 }
 0x3fc   : > { %5432 = vperm.xlu0 %9038, %v5394_v41   ;;  %5427 = vperm.xlu1 %9039, %v5393_v51   ;;  %v5374_v41 = vld [vmem:[%s10715_s3 + $0x38] sm:$0xff]  ;;  %v5375_v51 = vld [vmem:[%s10715_s3 + $0x40] sm:$0xff] }
 0x400   : > { %5442 = vperm.xlu0 %9038, %v5396_v18   ;;  %5437 = vperm.xlu1 %9039, %v5395_v31   ;;  %v5376_v18 = vld [vmem:[%s10715_s3 + $0x48] sm:$0xff]  ;;  %v5377_v31 = vld [vmem:[%s10715_s3 + $0x50] sm:$0xff] }
 0x404   : > { %5452 = vperm.xlu0 %9038, %v5398_v57   ;;  %5447 = vperm.xlu1 %9039, %v5397_v58   ;;  %v5378_v57 = vld [vmem:[%s10715_s3 + $0x58] sm:$0xff]  ;;  %v5379_v58 = vld [vmem:[%s10715_s3 + $0x60] sm:$0xff] }
 0x408   : > { %5462 = vperm.xlu0 %9038, %v5400_v59   ;;  %5457 = vperm.xlu1 %9039, %v5399_v60   ;;  %v5380_v59 = vld [vmem:[%s10715_s3 + $0x68] sm:$0xff]  ;;  %v5381_v60 = vld [vmem:[%s10715_s3 + $0x70] sm:$0xff] }
 0x40c   : > { %5472 = vperm.xlu0 %9038, %v5402_v55   ;;  %5467 = vperm.xlu1 %9039, %v5401_v33   ;;  %v5382_v55 = vld [vmem:[%s10715_s3 + $0x78] sm:$0xff]  ;;  %v5383_v33 = vld [vmem:[%s10715_s3 + $0x80] sm:$0xff] }
 0x410   : > { %5482 = vperm.xlu0 %9038, %v5404_v61   ;;  %5477 = vperm.xlu1 %9039, %v5403_v5   ;;  %v5384_v61 = vld [vmem:[%s10715_s3 + $0x88] sm:$0xff]  ;;  %v5385_v5 = vld [vmem:[%s10715_s3 + $0x90] sm:$0xff] }
 0x414   : > { %5492 = vperm.xlu0 %9038, %v5406_v63   ;;  %5487 = vperm.xlu1 %9039, %v5405_v22   ;;  %v5386_v63 = vld [vmem:[%s10715_s3 + $0x98] sm:$0xff]  ;;  %v5387_v22 = vld [vmem:[%s10715_s3 + $0xa0] sm:$0xff] }
 0x418   : > { %5502 = vperm.xlu0 %9038, %v5408_v23   ;;  %5497 = vperm.xlu1 %9039, %v5407_v4   ;;  %v5388_v23 = vld [vmem:[%s10715_s3 + $0xa8] sm:$0xff]  ;;  %v5389_v4 = vld [vmem:[%s10715_s3 + $0xb0] sm:$0xff] }
 0x41c   : > { %5512 = vperm.xlu0 %9038, %v5410_v8   ;;  %5507 = vperm.xlu1 %9039, %v5409_v21   ;;  %v5390_v8 = vld [vmem:[%s10715_s3 + $0xb8] sm:$0xff] }
 0x420   : > { %5522 = vperm.xlu0 %9038, %v5412_v12   ;;  %5517 = vperm.xlu1 %9039, %v5411_v13  }
 0x424   : > { %5532 = vperm.xlu0 %9038, %v5414_v24   ;;  %5527 = vperm.xlu1 %9039, %v5413_v15  }
 0x45a   : > { %v9047_v54 = vpop.permute.xlu0 %9046  ;;  %v9042_v2 = vpop.permute.xlu1 %9041 }
 0x45b   : > { %v9049_v6 = vunpack.i.h.bf16 %v9047_v54  ;;  %v9048_v0 = vunpack.i.l.bf16 %v9047_v54  ;;  %v9044_v1 = vunpack.i.h.bf16 %v9042_v2  ;;  %v9043_v48 = vunpack.i.l.bf16 %v9042_v2 }
 0x45d   : > { %v5583_v29 = vsel %vm2586_vm2, %v9043_v48, %v9044_v1  ;;  %v5584_v17 = vsel %vm2586_vm2, %v9048_v0, %v9049_v6 }
 0x45e   : > { %v9057_v30 = vpop.permute.xlu0 %9056  ;;  %v9052_v3 = vpop.permute.xlu1 %9051  ;;  %v7788_v20 = vpack.c.bf16 %v5584_v17, %v5583_v29 }
 0x45f   : > { %v9059_v34 = vunpack.i.h.bf16 %v9057_v30  ;;  %v9058_v35 = vunpack.i.l.bf16 %v9057_v30  ;;  %v9054_v47 = vunpack.i.h.bf16 %v9052_v3  ;;  %v9053_v27 = vunpack.i.l.bf16 %v9052_v3 }
 0x460   : > { %7789 = vmatprep.subr.bf16.mxu1 %v7788_v20 }
 0x461   : > { %7791 = vmatpush3.bf16.msra.mxu1 %v7788_v20  ;;  %v5585_v10 = vsel %vm2586_vm2, %v9053_v27, %v9054_v47  ;;  %v5586_v38 = vsel %vm2586_vm2, %v9058_v35, %v9059_v34 }
 0x462   : > { %v9067_v62 = vpop.permute.xlu0 %9066  ;;  %v9062_v53 = vpop.permute.xlu1 %9061  ;;  %v7792_v40 = vpack.c.bf16 %v5586_v38, %v5585_v10 }
 0x463   : > { %v9069_v43 = vunpack.i.h.bf16 %v9067_v62  ;;  %v9068_v42 = vunpack.i.l.bf16 %v9067_v62  ;;  %v9064_v39 = vunpack.i.h.bf16 %v9062_v53  ;;  %v9063_v44 = vunpack.i.l.bf16 %v9062_v53 }
 0x464   : > { %7793 = vmatprep.subr.bf16.mxu1 %v7792_v40 }
 0x465   : > { %7795 = vmatpush3.bf16.msra.mxu1 %v7792_v40  ;;  %v5587_v45 = vsel %vm2586_vm2, %v9063_v44, %v9064_v39  ;;  %v5588_v25 = vsel %vm2586_vm2, %v9068_v42, %v9069_v43 }
 0x466   : > { %v9077_v26 = vpop.permute.xlu0 %9076  ;;  %v9072_v11 = vpop.permute.xlu1 %9071  ;;  %v7796_v19 = vpack.c.bf16 %v5588_v25, %v5587_v45 }
 0x467   : > { %v9079_v14 = vunpack.i.h.bf16 %v9077_v26  ;;  %v9078_v9 = vunpack.i.l.bf16 %v9077_v26  ;;  %v9074_v7 = vunpack.i.h.bf16 %v9072_v11  ;;  %v9073_v52 = vunpack.i.l.bf16 %v9072_v11 }
 0x468   : > { %7797 = vmatprep.subr.bf16.mxu1 %v7796_v19 }
 0x469   : > { %7799 = vmatpush3.bf16.msra.mxu1 %v7796_v19  ;;  %v5589_v46 = vsel %vm2586_vm2, %v9073_v52, %v9074_v7  ;;  %v5590_v56 = vsel %vm2586_vm2, %v9078_v9, %v9079_v14 }
 0x46a   : > { %v7800_v16 = vpack.c.bf16 %v5590_v56, %v5589_v46 }
 0x46c   : > { %7801 = vmatprep.subr.bf16.mxu1 %v7800_v16 }
 0x46d   : > { %7803 = vmatpush3.bf16.msra.mxu1 %v7800_v16 }
 0x470   : > { %7353 = vmatmul.mubr.msk.f32.vlgmr.msra.gmra.mrb[8].mxu1 %vm336_vm0, %v5368_v50 }
 0x471   : > { %7355 = vmatprep.mubr.msk.f32.mxu1 %vm336_vm0, %v5369_v32 }
 0x474   : > { %7356 = vmatmul.mubr.msk.f32.gmra.mrb[10].mxu1 %vm336_vm0, %v5370_v28 }
 0x475   : > { %7358 = vmatprep.mubr.msk.f32.mxu1 %vm336_vm0, %v5371_v49 }
 0x477   : > { %v5423_v21 = vpop.permute.xlu0 %5422  ;;  %v5418_v12 = vpop.permute.xlu1 %5417 }
 0x478   : > { %7359 = vmatmul.mubr.msk.f32.gmra.mrb[12].mxu1 %vm336_vm0, %v5372_v36 }
 0x479   : > { %7361 = vmatprep.mubr.msk.f32.mxu1 %vm336_vm0, %v5373_v37 }
 0x47b   : > { %v5433_v13 = vpop.permute.xlu0 %5432  ;;  %v5428_v24 = vpop.permute.xlu1 %5427 }
 0x47c   : > { %7362 = vmatmul.mubr.msk.f32.gmra.mrb[14].mxu1 %vm336_vm0, %v5374_v41 }
 0x47d   : > { %7364 = vmatprep.mubr.msk.f32.mxu1 %vm336_vm0, %v5375_v51 }
 0x47f   : > { %v5443_v15 = vpop.permute.xlu0 %5442  ;;  %v5438_v54 = vpop.permute.xlu1 %5437 }
 0x480   : > { %7365 = vmatmul.mubr.msk.f32.gmra.mrb[16].mxu1 %vm336_vm0, %v5376_v18 }
 0x481   : > { %7367 = vmatprep.mubr.msk.f32.mxu1 %vm336_vm0, %v5377_v31 }
 0x483   : > { %v5453_v2 = vpop.permute.xlu0 %5452  ;;  %v5448_v6 = vpop.permute.xlu1 %5447 }
 0x484   : > { %7368 = vmatmul.mubr.msk.f32.gmra.mrb[18].mxu1 %vm336_vm0, %v5378_v57 }
 0x485   : > { %7370 = vmatprep.mubr.msk.f32.mxu1 %vm336_vm0, %v5379_v58 }
 0x487   : > { %v5463_v29 = vpop.permute.xlu0 %5462  ;;  %v5458_v30 = vpop.permute.xlu1 %5457 }
 0x488   : > { %7371 = vmatmul.mubr.msk.f32.gmra.mrb[20].mxu1 %vm336_vm0, %v5380_v59 }
 0x489   : > { %7373 = vmatprep.mubr.msk.f32.mxu1 %vm336_vm0, %v5381_v60 }
 0x48b   : > { %v5473_v47 = vpop.permute.xlu0 %5472  ;;  %v5468_v10 = vpop.permute.xlu1 %5467 }
 0x48c   : > { %7374 = vmatmul.mubr.msk.f32.gmra.mrb[22].mxu1 %vm336_vm0, %v5382_v55 }
 0x48d   : > { %7376 = vmatprep.mubr.msk.f32.mxu1 %vm336_vm0, %v5383_v33 }
 0x48f   : > { %v5483_v39 = vpop.permute.xlu0 %5482  ;;  %v5478_v45 = vpop.permute.xlu1 %5477 }
 0x490   : > { %7377 = vmatmul.mubr.msk.f32.gmra.mrb[24].mxu1 %vm336_vm0, %v5384_v61 }
 0x491   : > { %7379 = vmatprep.mubr.msk.f32.mxu1 %vm336_vm0, %v5385_v5 }
 0x493   : > { %v5493_v14 = vpop.permute.xlu0 %5492  ;;  %v5488_v7 = vpop.permute.xlu1 %5487 }
 0x494   : > { %7380 = vmatmul.mubr.msk.f32.gmra.mrb[26].mxu1 %vm336_vm0, %v5386_v63 }
 0x495   : > { %7382 = vmatprep.mubr.msk.f32.mxu1 %vm336_vm0, %v5387_v22 }
 0x497   : > { %v5503_v28 = vpop.permute.xlu0 %5502  ;;  %v5498_v36 = vpop.permute.xlu1 %5497 }
 0x498   : > { %7383 = vmatmul.mubr.msk.f32.gmra.mrb[28].mxu1 %vm336_vm0, %v5388_v23 }
 0x499   : > { %7385 = vmatprep.mubr.msk.f32.mxu1 %vm336_vm0, %v5389_v4 }
 0x49b   : > { %v5513_v31 = vpop.permute.xlu0 %5512  ;;  %v5508_v58 = vpop.permute.xlu1 %5507 }
 0x49c   : > { %7386 = vmatmul.mubr.msk.f32.gmra.mrb[30].mxu1 %vm336_vm0, %v5390_v8 }
 0x49f   : > { %v5523_v63 = vpop.permute.xlu0 %5522  ;;  %v5518_v23 = vpop.permute.xlu1 %5517 }
 0x543   : > { %v7354_v0 = vpop.f32.mrb[8].mxu1 }
 0x544   : > { %v5743_v1 = vadd.f32 %v7354_v0, %v5423_v21  ;;  %v5737_v48 = vpop.f32.mrb[9].mxu1 }
 0x545   : > { %v5738_v17 = vadd.f32 %v5737_v48, %v5418_v12 }
 0x546   : > { %5857 = vst [vmem:[%s10634_s8 + $0x8] sm:$0xff] %v5743_v1 }
 0x547   : > { %5856 = vst [vmem:[%s10634_s8] sm:$0xff] %v5738_v17  ;;  %v7357_v3 = vpop.f32.mrb[10].mxu1 }
 0x548   : > { %v5753_v20 = vadd.f32 %v7357_v3, %v5433_v13  ;;  %v5747_v34 = vpop.f32.mrb[11].mxu1  ;;  %v5533_v13 = vpop.permute.xlu0 %5532 }
 0x549   : > { %v5748_v35 = vadd.f32 %v5747_v34, %v5428_v24 }
 0x54a   : > { %5859 = vst [vmem:[%s10634_s8 + $0x18] sm:$0xff] %v5753_v20 }
 0x54b   : > { %5858 = vst [vmem:[%s10634_s8 + $0x10] sm:$0xff] %v5748_v35  ;;  %v7360_v27 = vpop.f32.mrb[12].mxu1 }
 0x54c   : > { %v5763_v38 = vadd.f32 %v7360_v27, %v5443_v15  ;;  %v5757_v62 = vpop.f32.mrb[13].mxu1  ;;  %v5528_v15 = vpop.permute.xlu1 %5527 }
 0x54d   : > { %v5758_v53 = vadd.f32 %v5757_v62, %v5438_v54 }
 0x54e   : > { %5861 = vst [vmem:[%s10634_s8 + $0x28] sm:$0xff] %v5763_v38 }
 0x54f   : > { %5860 = vst [vmem:[%s10634_s8 + $0x20] sm:$0xff] %v5758_v53  ;;  %v7363_v40 = vpop.f32.mrb[14].mxu1 }
 0x550   : > { %v5773_v43 = vadd.f32 %v7363_v40, %v5453_v2  ;;  %v5767_v42 = vpop.f32.mrb[15].mxu1 }
 0x551   : > { %v5768_v44 = vadd.f32 %v5767_v42, %v5448_v6 }
 0x552   : > { %5863 = vst [vmem:[%s10634_s8 + $0x38] sm:$0xff] %v5773_v43 }
 0x553   : > { %5862 = vst [vmem:[%s10634_s8 + $0x30] sm:$0xff] %v5768_v44  ;;  %v7366_v25 = vpop.f32.mrb[16].mxu1 }
 0x554   : > { %v5783_v26 = vadd.f32 %v7366_v25, %v5463_v29  ;;  %v5777_v11 = vpop.f32.mrb[17].mxu1 }
 0x555   : > { %v5778_v19 = vadd.f32 %v5777_v11, %v5458_v30 }
 0x556   : > { %5865 = vst [vmem:[%s10634_s8 + $0x48] sm:$0xff] %v5783_v26 }
 0x557   : > { %5864 = vst [vmem:[%s10634_s8 + $0x40] sm:$0xff] %v5778_v19  ;;  %v7369_v9 = vpop.f32.mrb[18].mxu1 }
 0x558   : > { %v5793_v52 = vadd.f32 %v7369_v9, %v5473_v47  ;;  %v5787_v46 = vpop.f32.mrb[19].mxu1 }
 0x559   : > { %v5788_v56 = vadd.f32 %v5787_v46, %v5468_v10 }
 0x55a   : > { %5867 = vst [vmem:[%s10634_s8 + $0x58] sm:$0xff] %v5793_v52 }
 0x55b   : > { %5866 = vst [vmem:[%s10634_s8 + $0x50] sm:$0xff] %v5788_v56  ;;  %v7372_v16 = vpop.f32.mrb[20].mxu1 }
 0x55c   : > { %v5803_v50 = vadd.f32 %v7372_v16, %v5483_v39  ;;  %v5797_v32 = vpop.f32.mrb[21].mxu1 }
 0x55d   : > { %v5798_v49 = vadd.f32 %v5797_v32, %v5478_v45 }
 0x55e   : > { %5869 = vst [vmem:[%s10634_s8 + $0x68] sm:$0xff] %v5803_v50 }
 0x55f   : > { %5868 = vst [vmem:[%s10634_s8 + $0x60] sm:$0xff] %v5798_v49  ;;  %v7375_v37 = vpop.f32.mrb[22].mxu1 }
 0x560   : > { %v5813_v41 = vadd.f32 %v7375_v37, %v5493_v14  ;;  %v5807_v51 = vpop.f32.mrb[23].mxu1 }
 0x561   : > { %v5808_v18 = vadd.f32 %v5807_v51, %v5488_v7 }
 0x562   : > { %5871 = vst [vmem:[%s10634_s8 + $0x78] sm:$0xff] %v5813_v41 }
 0x563   : > { %5870 = vst [vmem:[%s10634_s8 + $0x70] sm:$0xff] %v5808_v18  ;;  %v7378_v57 = vpop.f32.mrb[24].mxu1 }
 0x564   : > { %v5823_v59 = vadd.f32 %v7378_v57, %v5503_v28  ;;  %v5817_v60 = vpop.f32.mrb[25].mxu1 }
 0x565   : > { %v5818_v55 = vadd.f32 %v5817_v60, %v5498_v36 }
 0x566   : > { %5873 = vst [vmem:[%s10634_s8 + $0x88] sm:$0xff] %v5823_v59 }
 0x567   : > { %5872 = vst [vmem:[%s10634_s8 + $0x80] sm:$0xff] %v5818_v55  ;;  %v7381_v33 = vpop.f32.mrb[26].mxu1 }
 0x568   : > { %v5833_v61 = vadd.f32 %v7381_v33, %v5513_v31  ;;  %v5827_v5 = vpop.f32.mrb[27].mxu1 }
 0x569   : > { %v5828_v22 = vadd.f32 %v5827_v5, %v5508_v58 }
 0x56a   : > { %5875 = vst [vmem:[%s10634_s8 + $0x98] sm:$0xff] %v5833_v61 }
 0x56b   : > { %5874 = vst [vmem:[%s10634_s8 + $0x90] sm:$0xff] %v5828_v22  ;;  %v7384_v4 = vpop.f32.mrb[28].mxu1 }
 0x56c   : > { %v5843_v8 = vadd.f32 %v7384_v4, %v5523_v63  ;;  %v5837_v21 = vpop.f32.mrb[29].mxu1 }
 0x56d   : > { %v5838_v12 = vadd.f32 %v5837_v21, %v5518_v23 }
 0x56e   : > { %5877 = vst [vmem:[%s10634_s8 + $0xa8] sm:$0xff] %v5843_v8 }
 0x56f   : > { %5876 = vst [vmem:[%s10634_s8 + $0xa0] sm:$0xff] %v5838_v12  ;;  %v7387_v24 = vpop.f32.mrb[30].mxu1 }
 0x570   : > { %v5853_v54 = vadd.f32 %v7387_v24, %v5533_v13  ;;  %v5847_v2 = vpop.f32.mrb[31].mxu1 }
 0x571   : > { %v5848_v6 = vadd.f32 %v5847_v2, %v5528_v15 }
 0x572   : > { %5879 = vst [vmem:[%s10634_s8 + $0xb8] sm:$0xff] %v5853_v54 }
 0x573   : > { %5878 = vst [vmem:[%s10634_s8 + $0xb0] sm:$0xff] %v5848_v6 }
 0x574   : > { %9189 = shalt.err (!%p9186_p7)
}
 0x575   : > { %s9190_s25 = scalar_lea.hbm %s10665_s15, 3072  ;;  %s9194_s9 = scalar_lea.hbm %s10717_s5, 6144 }
 0x576   : > { %p9191_p8 = scmp.ne.s32.totalorder %s10665_s15, %s9190_s25  ;;  %p9195_p1 = scmp.lt.u32.totalorder %s10665_s15, %s10717_s5 }
 0x577   : > { %p9196_p0 = scmp.lt.u32.totalorder %s9194_s9, %s9190_s25  ;;  %p9198_p6 = scmp.lt.u32.totalorder %s9190_s25, %s10665_s15 }
 0x578   : > { %p9192_p11 = pnand %p9191_p8, %p10728_p9 }
 0x579   : > { %p9197_p5 = por %p9196_p0, %p9195_p1 }
 0x57a   : > { %p9193_p13 = pneg %p9192_p11 }
 0x57b   : > { %p9199_p10 = por %p9198_p6, %p9197_p5 }
 0x57d   : > { %p9200_p12 = pnand %p9199_p10, %p9193_p13 }
 0x57f   : > { %9203 = shalt.err (!%p9200_p12)
}
 0x580   : > { %s9274_s8 = smov 128   ;;  %s9275_s30 = smov 8  }
 0x581   : > { %8002 = dma.vmem_to_hbm [thread:$0]  (%p10728_p9), %s10660_s12, 3072, %s10665_s15, %s10671_s22, %s9274_s8, %s9274_s8, %s9275_s30  }
 0x582 PF: > { %p8014_p2 = scmp.ge.s32.totalorder %s9242_s21, 2  ;;  %s5909_s13 = sand.u32 1, %s9230_s18  }
 0x583   : > { %p10729_p3 = scmp.ne.s32.totalorder %s10722_s29, 0  ;;  %s5910_s14 = scalar_lea.sflag [#allocation4], %s5909_s13 }
 0x585   : > { %p8009_p4 = pnand %p8014_p2, %p10729_p3 }
 0x587   : > { %9225 = dma.done.wait (!%p8009_p4), %s5910_s14, 3072  }
 0x588   : > { %9227 = vsyncadd (!%p8009_p4), %s5910_s14, 4294964224  ;;  %p16_p7 = scmp.ge.s32.totalorder %s9331_s24, 4   ;;  %s10730_s18 = smov %s9234_s19 }
 0x589   : > { %s10731_s19 = smov %s9238_s20  ;;  %s10732_s20 = smov %s9342_s27 }
 0x58a   : > { %s10733_s21 = smov %s9331_s24  ;;  %18 = sbr.rel (!%p16_p7) target bundleno = 4 (0x4), region = 104 }
 0x591   :  { %5915 = vsyncpa [#allocation3], 1 }
 0x592   :  { %5917 = vsyncpa [#allocation3 + $0x1], 1 }
 0x593   :  { %5918 = vsyncpa [#allocation4], 1 }
 0x594   :  { %5920 = vsyncpa [#allocation4 + $0x1], 1 }

</bundles_post_ra>
